<compile_context>
chip_gen: v6e
topology: v6e:2x2x1
jax: 0.10.0
libtpu: 0.0.40
codegen_flags: <defaults>
</compile_context>

<pallas_src>
import jax
import jax.numpy as jnp
from jax import lax
from jax.experimental import pallas as pl
from jax.experimental.pallas import tpu as pltpu

# ---- hyper-parameters (module __init__ args) --------------------------------
X_LEN = 4          # conv in-channels  (x_len)
Y_LEN = 2          # conv out-channels (y_len)
KERNEL = 3
STRIDE = 1
PAD = 1
OUT_DIM = X_LEN    # output_dim (= x_len so fc_two composes after fc_one)
BATCH = 2
H = W = 16

H_OUT = (H + 2 * PAD - KERNEL) // STRIDE + 1   # 16
W_OUT = (W + 2 * PAD - KERNEL) // STRIDE + 1   # 16
H_POOL, W_POOL = H_OUT // 2, W_OUT // 2        # 8, 8
N_TILES = BATCH * Y_LEN                        # 4 stacked (n, co) conv maps
V_ROWS = N_TILES * H_OUT                       # 64 stacked conv rows
P_ROWS = N_TILES * H_POOL                      # 32 pooled "tokens"
FLAT = P_ROWS * OUT_DIM                        # 128 output elements (lane-dense)

assert W_POOL == Y_LEN * X_LEN, "fc_one in-features must equal pooled width"
assert OUT_DIM == X_LEN, "fc_two in-features must equal fc_one out-features"


# ---- Pallas kernel ----------------------------------------------------------
def music_cnn_kernel(wc_ref, bc_ref, x_ref, w1t_ref, b1_ref, w2t_ref, b2_ref, o_ref):
    f32 = jnp.float32

    # ---- conv_one (cross-correlation on zero-padded input) + bias + ReLU ----
    # Hoist each input tap once per (n, ci) and reuse it for both output
    # channels; stack all (n, co) activation maps along sublanes.
    tiles = []
    for n in range(BATCH):
        accs = [jnp.full((H_OUT, W_OUT), bc_ref[co], dtype=f32)
                for co in range(Y_LEN)]
        for ci in range(X_LEN):
            plane = x_ref[n, ci, :, :]                              # (18, 18)
            for kh in range(KERNEL):
                for kw in range(KERNEL):
                    tap = plane[kh:kh + H_OUT, kw:kw + W_OUT]       # (16, 16)
                    for co in range(Y_LEN):
                        wv = wc_ref[((co * X_LEN + ci) * KERNEL + kh) * KERNEL + kw]
                        accs[co] = accs[co] + tap * wv
        for co in range(Y_LEN):
            tiles.append(jnp.maximum(accs[co], 0.0))                # ReLU
    v = jnp.concatenate(tiles, axis=0)          # (64, 16), rows = (n, co, h)

    # ---- 2x2 / stride-2 max-pool via pairwise max + 0/1 selection matmuls ----
    # Done once on the stacked tile: 4 small matmuls total for the whole batch.
    r = lax.broadcasted_iota(jnp.int32, (W_OUT, W_POOL), 0)
    c = lax.broadcasted_iota(jnp.int32, (W_OUT, W_POOL), 1)
    sel_col_even = (r == 2 * c).astype(f32)     # (16, 8): pick even columns
    sel_col_odd = (r == 2 * c + 1).astype(f32)  # (16, 8): pick odd columns
    pw = jnp.maximum(
        jnp.dot(v, sel_col_even, preferred_element_type=f32),
        jnp.dot(v, sel_col_odd, preferred_element_type=f32))        # (64, 8)

    rr = lax.broadcasted_iota(jnp.int32, (P_ROWS, V_ROWS), 0)
    cc = lax.broadcasted_iota(jnp.int32, (P_ROWS, V_ROWS), 1)
    sel_row_even = (cc == 2 * rr).astype(f32)   # (32, 64): pick even rows
    sel_row_odd = (cc == 2 * rr + 1).astype(f32)
    pooled = jnp.maximum(
        jnp.dot(sel_row_even, pw, preferred_element_type=f32),
        jnp.dot(sel_row_odd, pw, preferred_element_type=f32))       # (32, 8)

    # ---- fc_one (+ReLU), fc_two — batched over all (n, co, h_pool) tokens ----
    y1 = jnp.maximum(
        jnp.dot(pooled, w1t_ref[...], preferred_element_type=f32) + b1_ref[...],
        0.0)                                                        # (32, 4)
    y2 = jnp.dot(y1, w2t_ref[...], preferred_element_type=f32) + b2_ref[...]  # (32, 4)

    # ---- lane-dense flatten: (32, 4) -> (1, 128) row-major slab -------------
    # z[t, j] = y2[t, j % 4]  (gather matmul), then keep only the block-diagonal
    # entries (j // 4 == t) and reduce over sublanes -> flat[0, 4t + d] = y2[t, d].
    gc = lax.broadcasted_iota(jnp.int32, (OUT_DIM, FLAT), 0)
    gj = lax.broadcasted_iota(jnp.int32, (OUT_DIM, FLAT), 1)
    gather_cols = (gj % OUT_DIM == gc).astype(f32)                  # (4, 128)
    z = jnp.dot(y2, gather_cols, preferred_element_type=f32)        # (32, 128)

    mr = lax.broadcasted_iota(jnp.int32, (P_ROWS, FLAT), 0)
    mj = lax.broadcasted_iota(jnp.int32, (P_ROWS, FLAT), 1)
    diag = ((mj >= mr * OUT_DIM) & (mj < (mr + 1) * OUT_DIM)).astype(f32)  # (32, 128)

    o_ref[...] = jnp.sum(z * diag, axis=0, keepdims=True)           # (1, 128)


# ---- wrapper ----------------------------------------------------------------
def music_genre_cnn_forward(x, params):
    wc, bc, w1, b1, w2, b2 = params
    n = x.shape[0]
    assert n == BATCH, "kernel is specialized for the configured batch size"
    hp, wp = H + 2 * PAD, W + 2 * PAD

    x_pad = jnp.pad(x.astype(jnp.float32),
                    ((0, 0), (0, 0), (PAD, PAD), (PAD, PAD)))
    wc_flat = wc.reshape(-1).astype(jnp.float32)        # (Y*X*K*K,) = (72,)
    bc_f = bc.astype(jnp.float32)                       # (2,)
    w1t = w1.T.astype(jnp.float32)                      # (8, 4)
    b1r = b1.reshape(1, -1).astype(jnp.float32)         # (1, 4)
    w2t = w2.T.astype(jnp.float32)                      # (4, 4)
    b2r = b2.reshape(1, -1).astype(jnp.float32)         # (1, 4)

    conv_flops = 2 * BATCH * Y_LEN * X_LEN * H_OUT * W_OUT * KERNEL * KERNEL
    fc_flops = 2 * P_ROWS * (W_POOL * OUT_DIM + OUT_DIM * OUT_DIM)
    bytes_accessed = (x_pad.size + wc_flat.size + bc_f.size + w1t.size
                      + b1r.size + w2t.size + b2r.size + FLAT) * 4

    flat = pl.pallas_call(
        music_cnn_kernel,
        out_shape=jax.ShapeDtypeStruct((1, FLAT), jnp.float32),
        grid=(1,),
        in_specs=[
            pl.BlockSpec(memory_space=pltpu.MemorySpace.SMEM),            # conv weights (flat)
            pl.BlockSpec(memory_space=pltpu.MemorySpace.SMEM),            # conv bias
            pl.BlockSpec((BATCH, X_LEN, hp, wp), lambda i: (0, 0, 0, 0)),  # padded input (whole batch)
            pl.BlockSpec((W_POOL, OUT_DIM), lambda i: (0, 0)),            # w1.T
            pl.BlockSpec((1, OUT_DIM), lambda i: (0, 0)),                 # b1
            pl.BlockSpec((OUT_DIM, OUT_DIM), lambda i: (0, 0)),           # w2.T
            pl.BlockSpec((1, OUT_DIM), lambda i: (0, 0)),                 # b2
        ],
        out_specs=pl.BlockSpec((1, FLAT), lambda i: (0, 0)),
        compiler_params=pltpu.CompilerParams(dimension_semantics=("arbitrary",)),
        cost_estimate=pl.CostEstimate(flops=conv_flops + fc_flops,
                                      transcendentals=0,
                                      bytes_accessed=bytes_accessed),
    )(wc_flat, bc_f, x_pad, w1t, b1r, w2t, b2r)

    return flat.reshape(n, Y_LEN, H_POOL, OUT_DIM)


# ---- pure-JAX reference (for correctness check) -----------------------------
def reference_forward(x, params):
    wc, bc, w1, b1, w2, b2 = params
    y = lax.conv_general_dilated(
        x, wc, window_strides=(STRIDE, STRIDE),
        padding=[(PAD, PAD), (PAD, PAD)],
        dimension_numbers=("NCHW", "OIHW", "NCHW"))
    y = jnp.maximum(y + bc.reshape(1, -1, 1, 1), 0.0)
    y = lax.reduce_window(y, -jnp.inf, lax.max, (1, 1, 2, 2), (1, 1, 2, 2), "VALID")
    y = jnp.maximum(jnp.einsum("nchw,ow->ncho", y, w1) + b1, 0.0)
    y = jnp.einsum("nchd,od->ncho", y, w2) + b2
    return y


if __name__ == "__main__":
    key = jax.random.PRNGKey(0)
    ks = jax.random.split(key, 7)
    x = jax.random.normal(ks[0], (BATCH, X_LEN, H, W), jnp.float32)
    wc = jax.random.normal(ks[1], (Y_LEN, X_LEN, KERNEL, KERNEL), jnp.float32) * 0.1
    bc = jax.random.normal(ks[2], (Y_LEN,), jnp.float32) * 0.1
    w1 = jax.random.normal(ks[3], (OUT_DIM, Y_LEN * X_LEN), jnp.float32) * 0.1
    b1 = jax.random.normal(ks[4], (OUT_DIM,), jnp.float32) * 0.1
    w2 = jax.random.normal(ks[5], (OUT_DIM, X_LEN), jnp.float32) * 0.1
    b2 = jax.random.normal(ks[6], (OUT_DIM,), jnp.float32) * 0.1
    params = (wc, bc, w1, b1, w2, b2)

    out = jax.block_until_ready(music_genre_cnn_forward(x, params))

    ref = reference_forward(x, params)
    assert out.shape == (BATCH, Y_LEN, H_POOL, OUT_DIM)
    if not jnp.allclose(out, ref, atol=1e-4, rtol=1e-4):
        raise AssertionError(
            f"mismatch vs reference, max abs diff = {jnp.max(jnp.abs(out - ref))}")
    print("KERNEL_OK")
</pallas_src>

<mosaic_0001>
module attributes {stable_mosaic.version = 11 : i64} {
  func.func @music_cnn_kernel(%arg0: i32, %arg1: memref<72xf32, #tpu.memory_space<smem>>, %arg2: memref<2xf32, #tpu.memory_space<smem>>, %arg3: memref<2x4x18x18xf32, #tpu.memory_space<vmem>>, %arg4: memref<8x4xf32, #tpu.memory_space<vmem>>, %arg5: memref<1x4xf32, #tpu.memory_space<vmem>>, %arg6: memref<4x4xf32, #tpu.memory_space<vmem>>, %arg7: memref<1x4xf32, #tpu.memory_space<vmem>>, %arg8: memref<1x128xf32, #tpu.memory_space<vmem>>) attributes {dimension_semantics = [#tpu.dimension_semantics<arbitrary>], iteration_bounds = array<i64: 1>, scalar_prefetch = 0 : i64, scratch_operands = 0 : i64, tpu.core_type = #tpu.core_type<tc>, window_params = [{transform_indices = @transform_0, window_bounds = array<i64: 72>}, {transform_indices = @transform_1, window_bounds = array<i64: 2>}, {pipeline_mode = #tpu.pipeline_mode<synchronous>, transform_indices = @transform_2, window_bounds = array<i64: 2, 4, 18, 18>}, {pipeline_mode = #tpu.pipeline_mode<synchronous>, transform_indices = @transform_3, window_bounds = array<i64: 8, 4>}, {pipeline_mode = #tpu.pipeline_mode<synchronous>, transform_indices = @transform_4, window_bounds = array<i64: 1, 4>}, {pipeline_mode = #tpu.pipeline_mode<synchronous>, transform_indices = @transform_5, window_bounds = array<i64: 4, 4>}, {pipeline_mode = #tpu.pipeline_mode<synchronous>, transform_indices = @transform_6, window_bounds = array<i64: 1, 4>}, {pipeline_mode = #tpu.pipeline_mode<synchronous>, transform_indices = @transform_7, window_bounds = array<i64: 1, 128>}]} {
    %c0 = arith.constant 0 : index
    %0 = memref.load %arg2[%c0] : memref<2xf32, #tpu.memory_space<smem>>
    %1 = vector.broadcast %0 : f32 to vector<16x16xf32>
    %c1 = arith.constant 1 : index
    %2 = memref.load %arg2[%c1] : memref<2xf32, #tpu.memory_space<smem>>
    %3 = vector.broadcast %2 : f32 to vector<16x16xf32>
    %c0_0 = arith.constant 0 : index
    %c0_1 = arith.constant 0 : index
    %c0_2 = arith.constant 0 : index
    %c0_3 = arith.constant 0 : index
    %4 = vector.load %arg3[%c0_0, %c0_1, %c0_2, %c0_3] : memref<2x4x18x18xf32, #tpu.memory_space<vmem>>, vector<1x1x18x18xf32>
    %5 = vector.shape_cast %4 : vector<1x1x18x18xf32> to vector<18x18xf32>
    %6 = vector.extract_strided_slice %5 {offsets = [0, 0], sizes = [16, 16], strides = [1, 1]} : vector<18x18xf32> to vector<16x16xf32>
    %c0_4 = arith.constant 0 : index
    %7 = memref.load %arg1[%c0_4] : memref<72xf32, #tpu.memory_space<smem>>
    %8 = vector.broadcast %7 : f32 to vector<16x16xf32>
    %9 = arith.mulf %6, %8 : vector<16x16xf32>
    %10 = arith.addf %1, %9 : vector<16x16xf32>
    %c36 = arith.constant 36 : index
    %11 = memref.load %arg1[%c36] : memref<72xf32, #tpu.memory_space<smem>>
    %12 = vector.broadcast %11 : f32 to vector<16x16xf32>
    %13 = arith.mulf %6, %12 : vector<16x16xf32>
    %14 = arith.addf %3, %13 : vector<16x16xf32>
    %15 = vector.extract_strided_slice %5 {offsets = [0, 1], sizes = [16, 16], strides = [1, 1]} : vector<18x18xf32> to vector<16x16xf32>
    %c1_5 = arith.constant 1 : index
    %16 = memref.load %arg1[%c1_5] : memref<72xf32, #tpu.memory_space<smem>>
    %17 = vector.broadcast %16 : f32 to vector<16x16xf32>
    %18 = arith.mulf %15, %17 : vector<16x16xf32>
    %19 = arith.addf %10, %18 : vector<16x16xf32>
    %c37 = arith.constant 37 : index
    %20 = memref.load %arg1[%c37] : memref<72xf32, #tpu.memory_space<smem>>
    %21 = vector.broadcast %20 : f32 to vector<16x16xf32>
    %22 = arith.mulf %15, %21 : vector<16x16xf32>
    %23 = arith.addf %14, %22 : vector<16x16xf32>
    %24 = vector.extract_strided_slice %5 {offsets = [0, 2], sizes = [16, 16], strides = [1, 1]} : vector<18x18xf32> to vector<16x16xf32>
    %c2 = arith.constant 2 : index
    %25 = memref.load %arg1[%c2] : memref<72xf32, #tpu.memory_space<smem>>
    %26 = vector.broadcast %25 : f32 to vector<16x16xf32>
    %27 = arith.mulf %24, %26 : vector<16x16xf32>
    %28 = arith.addf %19, %27 : vector<16x16xf32>
    %c38 = arith.constant 38 : index
    %29 = memref.load %arg1[%c38] : memref<72xf32, #tpu.memory_space<smem>>
    %30 = vector.broadcast %29 : f32 to vector<16x16xf32>
    %31 = arith.mulf %24, %30 : vector<16x16xf32>
    %32 = arith.addf %23, %31 : vector<16x16xf32>
    %33 = vector.extract_strided_slice %5 {offsets = [1, 0], sizes = [16, 16], strides = [1, 1]} : vector<18x18xf32> to vector<16x16xf32>
    %c3 = arith.constant 3 : index
    %34 = memref.load %arg1[%c3] : memref<72xf32, #tpu.memory_space<smem>>
    %35 = vector.broadcast %34 : f32 to vector<16x16xf32>
    %36 = arith.mulf %33, %35 : vector<16x16xf32>
    %37 = arith.addf %28, %36 : vector<16x16xf32>
    %c39 = arith.constant 39 : index
    %38 = memref.load %arg1[%c39] : memref<72xf32, #tpu.memory_space<smem>>
    %39 = vector.broadcast %38 : f32 to vector<16x16xf32>
    %40 = arith.mulf %33, %39 : vector<16x16xf32>
    %41 = arith.addf %32, %40 : vector<16x16xf32>
    %42 = vector.extract_strided_slice %5 {offsets = [1, 1], sizes = [16, 16], strides = [1, 1]} : vector<18x18xf32> to vector<16x16xf32>
    %c4 = arith.constant 4 : index
    %43 = memref.load %arg1[%c4] : memref<72xf32, #tpu.memory_space<smem>>
    %44 = vector.broadcast %43 : f32 to vector<16x16xf32>
    %45 = arith.mulf %42, %44 : vector<16x16xf32>
    %46 = arith.addf %37, %45 : vector<16x16xf32>
    %c40 = arith.constant 40 : index
    %47 = memref.load %arg1[%c40] : memref<72xf32, #tpu.memory_space<smem>>
    %48 = vector.broadcast %47 : f32 to vector<16x16xf32>
    %49 = arith.mulf %42, %48 : vector<16x16xf32>
    %50 = arith.addf %41, %49 : vector<16x16xf32>
    %51 = vector.extract_strided_slice %5 {offsets = [1, 2], sizes = [16, 16], strides = [1, 1]} : vector<18x18xf32> to vector<16x16xf32>
    %c5 = arith.constant 5 : index
    %52 = memref.load %arg1[%c5] : memref<72xf32, #tpu.memory_space<smem>>
    %53 = vector.broadcast %52 : f32 to vector<16x16xf32>
    %54 = arith.mulf %51, %53 : vector<16x16xf32>
    %55 = arith.addf %46, %54 : vector<16x16xf32>
    %c41 = arith.constant 41 : index
    %56 = memref.load %arg1[%c41] : memref<72xf32, #tpu.memory_space<smem>>
    %57 = vector.broadcast %56 : f32 to vector<16x16xf32>
    %58 = arith.mulf %51, %57 : vector<16x16xf32>
    %59 = arith.addf %50, %58 : vector<16x16xf32>
    %60 = vector.extract_strided_slice %5 {offsets = [2, 0], sizes = [16, 16], strides = [1, 1]} : vector<18x18xf32> to vector<16x16xf32>
    %c6 = arith.constant 6 : index
    %61 = memref.load %arg1[%c6] : memref<72xf32, #tpu.memory_space<smem>>
    %62 = vector.broadcast %61 : f32 to vector<16x16xf32>
    %63 = arith.mulf %60, %62 : vector<16x16xf32>
    %64 = arith.addf %55, %63 : vector<16x16xf32>
    %c42 = arith.constant 42 : index
    %65 = memref.load %arg1[%c42] : memref<72xf32, #tpu.memory_space<smem>>
    %66 = vector.broadcast %65 : f32 to vector<16x16xf32>
    %67 = arith.mulf %60, %66 : vector<16x16xf32>
    %68 = arith.addf %59, %67 : vector<16x16xf32>
    %69 = vector.extract_strided_slice %5 {offsets = [2, 1], sizes = [16, 16], strides = [1, 1]} : vector<18x18xf32> to vector<16x16xf32>
    %c7 = arith.constant 7 : index
    %70 = memref.load %arg1[%c7] : memref<72xf32, #tpu.memory_space<smem>>
    %71 = vector.broadcast %70 : f32 to vector<16x16xf32>
    %72 = arith.mulf %69, %71 : vector<16x16xf32>
    %73 = arith.addf %64, %72 : vector<16x16xf32>
    %c43 = arith.constant 43 : index
    %74 = memref.load %arg1[%c43] : memref<72xf32, #tpu.memory_space<smem>>
    %75 = vector.broadcast %74 : f32 to vector<16x16xf32>
    %76 = arith.mulf %69, %75 : vector<16x16xf32>
    %77 = arith.addf %68, %76 : vector<16x16xf32>
    %78 = vector.extract_strided_slice %5 {offsets = [2, 2], sizes = [16, 16], strides = [1, 1]} : vector<18x18xf32> to vector<16x16xf32>
    %c8 = arith.constant 8 : index
    %79 = memref.load %arg1[%c8] : memref<72xf32, #tpu.memory_space<smem>>
    %80 = vector.broadcast %79 : f32 to vector<16x16xf32>
    %81 = arith.mulf %78, %80 : vector<16x16xf32>
    %82 = arith.addf %73, %81 : vector<16x16xf32>
    %c44 = arith.constant 44 : index
    %83 = memref.load %arg1[%c44] : memref<72xf32, #tpu.memory_space<smem>>
    %84 = vector.broadcast %83 : f32 to vector<16x16xf32>
    %85 = arith.mulf %78, %84 : vector<16x16xf32>
    %86 = arith.addf %77, %85 : vector<16x16xf32>
    %c0_6 = arith.constant 0 : index
    %c1_7 = arith.constant 1 : index
    %c0_8 = arith.constant 0 : index
    %c0_9 = arith.constant 0 : index
    %87 = vector.load %arg3[%c0_6, %c1_7, %c0_8, %c0_9] : memref<2x4x18x18xf32, #tpu.memory_space<vmem>>, vector<1x1x18x18xf32>
    %88 = vector.shape_cast %87 : vector<1x1x18x18xf32> to vector<18x18xf32>
    %89 = vector.extract_strided_slice %88 {offsets = [0, 0], sizes = [16, 16], strides = [1, 1]} : vector<18x18xf32> to vector<16x16xf32>
    %c9 = arith.constant 9 : index
    %90 = memref.load %arg1[%c9] : memref<72xf32, #tpu.memory_space<smem>>
    %91 = vector.broadcast %90 : f32 to vector<16x16xf32>
    %92 = arith.mulf %89, %91 : vector<16x16xf32>
    %93 = arith.addf %82, %92 : vector<16x16xf32>
    %c45 = arith.constant 45 : index
    %94 = memref.load %arg1[%c45] : memref<72xf32, #tpu.memory_space<smem>>
    %95 = vector.broadcast %94 : f32 to vector<16x16xf32>
    %96 = arith.mulf %89, %95 : vector<16x16xf32>
    %97 = arith.addf %86, %96 : vector<16x16xf32>
    %98 = vector.extract_strided_slice %88 {offsets = [0, 1], sizes = [16, 16], strides = [1, 1]} : vector<18x18xf32> to vector<16x16xf32>
    %c10 = arith.constant 10 : index
    %99 = memref.load %arg1[%c10] : memref<72xf32, #tpu.memory_space<smem>>
    %100 = vector.broadcast %99 : f32 to vector<16x16xf32>
    %101 = arith.mulf %98, %100 : vector<16x16xf32>
    %102 = arith.addf %93, %101 : vector<16x16xf32>
    %c46 = arith.constant 46 : index
    %103 = memref.load %arg1[%c46] : memref<72xf32, #tpu.memory_space<smem>>
    %104 = vector.broadcast %103 : f32 to vector<16x16xf32>
    %105 = arith.mulf %98, %104 : vector<16x16xf32>
    %106 = arith.addf %97, %105 : vector<16x16xf32>
    %107 = vector.extract_strided_slice %88 {offsets = [0, 2], sizes = [16, 16], strides = [1, 1]} : vector<18x18xf32> to vector<16x16xf32>
    %c11 = arith.constant 11 : index
    %108 = memref.load %arg1[%c11] : memref<72xf32, #tpu.memory_space<smem>>
    %109 = vector.broadcast %108 : f32 to vector<16x16xf32>
    %110 = arith.mulf %107, %109 : vector<16x16xf32>
    %111 = arith.addf %102, %110 : vector<16x16xf32>
    %c47 = arith.constant 47 : index
    %112 = memref.load %arg1[%c47] : memref<72xf32, #tpu.memory_space<smem>>
    %113 = vector.broadcast %112 : f32 to vector<16x16xf32>
    %114 = arith.mulf %107, %113 : vector<16x16xf32>
    %115 = arith.addf %106, %114 : vector<16x16xf32>
    %116 = vector.extract_strided_slice %88 {offsets = [1, 0], sizes = [16, 16], strides = [1, 1]} : vector<18x18xf32> to vector<16x16xf32>
    %c12 = arith.constant 12 : index
    %117 = memref.load %arg1[%c12] : memref<72xf32, #tpu.memory_space<smem>>
    %118 = vector.broadcast %117 : f32 to vector<16x16xf32>
    %119 = arith.mulf %116, %118 : vector<16x16xf32>
    %120 = arith.addf %111, %119 : vector<16x16xf32>
    %c48 = arith.constant 48 : index
    %121 = memref.load %arg1[%c48] : memref<72xf32, #tpu.memory_space<smem>>
    %122 = vector.broadcast %121 : f32 to vector<16x16xf32>
    %123 = arith.mulf %116, %122 : vector<16x16xf32>
    %124 = arith.addf %115, %123 : vector<16x16xf32>
    %125 = vector.extract_strided_slice %88 {offsets = [1, 1], sizes = [16, 16], strides = [1, 1]} : vector<18x18xf32> to vector<16x16xf32>
    %c13 = arith.constant 13 : index
    %126 = memref.load %arg1[%c13] : memref<72xf32, #tpu.memory_space<smem>>
    %127 = vector.broadcast %126 : f32 to vector<16x16xf32>
    %128 = arith.mulf %125, %127 : vector<16x16xf32>
    %129 = arith.addf %120, %128 : vector<16x16xf32>
    %c49 = arith.constant 49 : index
    %130 = memref.load %arg1[%c49] : memref<72xf32, #tpu.memory_space<smem>>
    %131 = vector.broadcast %130 : f32 to vector<16x16xf32>
    %132 = arith.mulf %125, %131 : vector<16x16xf32>
    %133 = arith.addf %124, %132 : vector<16x16xf32>
    %134 = vector.extract_strided_slice %88 {offsets = [1, 2], sizes = [16, 16], strides = [1, 1]} : vector<18x18xf32> to vector<16x16xf32>
    %c14 = arith.constant 14 : index
    %135 = memref.load %arg1[%c14] : memref<72xf32, #tpu.memory_space<smem>>
    %136 = vector.broadcast %135 : f32 to vector<16x16xf32>
    %137 = arith.mulf %134, %136 : vector<16x16xf32>
    %138 = arith.addf %129, %137 : vector<16x16xf32>
    %c50 = arith.constant 50 : index
    %139 = memref.load %arg1[%c50] : memref<72xf32, #tpu.memory_space<smem>>
    %140 = vector.broadcast %139 : f32 to vector<16x16xf32>
    %141 = arith.mulf %134, %140 : vector<16x16xf32>
    %142 = arith.addf %133, %141 : vector<16x16xf32>
    %143 = vector.extract_strided_slice %88 {offsets = [2, 0], sizes = [16, 16], strides = [1, 1]} : vector<18x18xf32> to vector<16x16xf32>
    %c15 = arith.constant 15 : index
    %144 = memref.load %arg1[%c15] : memref<72xf32, #tpu.memory_space<smem>>
    %145 = vector.broadcast %144 : f32 to vector<16x16xf32>
    %146 = arith.mulf %143, %145 : vector<16x16xf32>
    %147 = arith.addf %138, %146 : vector<16x16xf32>
    %c51 = arith.constant 51 : index
    %148 = memref.load %arg1[%c51] : memref<72xf32, #tpu.memory_space<smem>>
    %149 = vector.broadcast %148 : f32 to vector<16x16xf32>
    %150 = arith.mulf %143, %149 : vector<16x16xf32>
    %151 = arith.addf %142, %150 : vector<16x16xf32>
    %152 = vector.extract_strided_slice %88 {offsets = [2, 1], sizes = [16, 16], strides = [1, 1]} : vector<18x18xf32> to vector<16x16xf32>
    %c16 = arith.constant 16 : index
    %153 = memref.load %arg1[%c16] : memref<72xf32, #tpu.memory_space<smem>>
    %154 = vector.broadcast %153 : f32 to vector<16x16xf32>
    %155 = arith.mulf %152, %154 : vector<16x16xf32>
    %156 = arith.addf %147, %155 : vector<16x16xf32>
    %c52 = arith.constant 52 : index
    %157 = memref.load %arg1[%c52] : memref<72xf32, #tpu.memory_space<smem>>
    %158 = vector.broadcast %157 : f32 to vector<16x16xf32>
    %159 = arith.mulf %152, %158 : vector<16x16xf32>
    %160 = arith.addf %151, %159 : vector<16x16xf32>
    %161 = vector.extract_strided_slice %88 {offsets = [2, 2], sizes = [16, 16], strides = [1, 1]} : vector<18x18xf32> to vector<16x16xf32>
    %c17 = arith.constant 17 : index
    %162 = memref.load %arg1[%c17] : memref<72xf32, #tpu.memory_space<smem>>
    %163 = vector.broadcast %162 : f32 to vector<16x16xf32>
    %164 = arith.mulf %161, %163 : vector<16x16xf32>
    %165 = arith.addf %156, %164 : vector<16x16xf32>
    %c53 = arith.constant 53 : index
    %166 = memref.load %arg1[%c53] : memref<72xf32, #tpu.memory_space<smem>>
    %167 = vector.broadcast %166 : f32 to vector<16x16xf32>
    %168 = arith.mulf %161, %167 : vector<16x16xf32>
    %169 = arith.addf %160, %168 : vector<16x16xf32>
    %c0_10 = arith.constant 0 : index
    %c2_11 = arith.constant 2 : index
    %c0_12 = arith.constant 0 : index
    %c0_13 = arith.constant 0 : index
    %170 = vector.load %arg3[%c0_10, %c2_11, %c0_12, %c0_13] : memref<2x4x18x18xf32, #tpu.memory_space<vmem>>, vector<1x1x18x18xf32>
    %171 = vector.shape_cast %170 : vector<1x1x18x18xf32> to vector<18x18xf32>
    %172 = vector.extract_strided_slice %171 {offsets = [0, 0], sizes = [16, 16], strides = [1, 1]} : vector<18x18xf32> to vector<16x16xf32>
    %c18 = arith.constant 18 : index
    %173 = memref.load %arg1[%c18] : memref<72xf32, #tpu.memory_space<smem>>
    %174 = vector.broadcast %173 : f32 to vector<16x16xf32>
    %175 = arith.mulf %172, %174 : vector<16x16xf32>
    %176 = arith.addf %165, %175 : vector<16x16xf32>
    %c54 = arith.constant 54 : index
    %177 = memref.load %arg1[%c54] : memref<72xf32, #tpu.memory_space<smem>>
    %178 = vector.broadcast %177 : f32 to vector<16x16xf32>
    %179 = arith.mulf %172, %178 : vector<16x16xf32>
    %180 = arith.addf %169, %179 : vector<16x16xf32>
    %181 = vector.extract_strided_slice %171 {offsets = [0, 1], sizes = [16, 16], strides = [1, 1]} : vector<18x18xf32> to vector<16x16xf32>
    %c19 = arith.constant 19 : index
    %182 = memref.load %arg1[%c19] : memref<72xf32, #tpu.memory_space<smem>>
    %183 = vector.broadcast %182 : f32 to vector<16x16xf32>
    %184 = arith.mulf %181, %183 : vector<16x16xf32>
    %185 = arith.addf %176, %184 : vector<16x16xf32>
    %c55 = arith.constant 55 : index
    %186 = memref.load %arg1[%c55] : memref<72xf32, #tpu.memory_space<smem>>
    %187 = vector.broadcast %186 : f32 to vector<16x16xf32>
    %188 = arith.mulf %181, %187 : vector<16x16xf32>
    %189 = arith.addf %180, %188 : vector<16x16xf32>
    %190 = vector.extract_strided_slice %171 {offsets = [0, 2], sizes = [16, 16], strides = [1, 1]} : vector<18x18xf32> to vector<16x16xf32>
    %c20 = arith.constant 20 : index
    %191 = memref.load %arg1[%c20] : memref<72xf32, #tpu.memory_space<smem>>
    %192 = vector.broadcast %191 : f32 to vector<16x16xf32>
    %193 = arith.mulf %190, %192 : vector<16x16xf32>
    %194 = arith.addf %185, %193 : vector<16x16xf32>
    %c56 = arith.constant 56 : index
    %195 = memref.load %arg1[%c56] : memref<72xf32, #tpu.memory_space<smem>>
    %196 = vector.broadcast %195 : f32 to vector<16x16xf32>
    %197 = arith.mulf %190, %196 : vector<16x16xf32>
    %198 = arith.addf %189, %197 : vector<16x16xf32>
    %199 = vector.extract_strided_slice %171 {offsets = [1, 0], sizes = [16, 16], strides = [1, 1]} : vector<18x18xf32> to vector<16x16xf32>
    %c21 = arith.constant 21 : index
    %200 = memref.load %arg1[%c21] : memref<72xf32, #tpu.memory_space<smem>>
    %201 = vector.broadcast %200 : f32 to vector<16x16xf32>
    %202 = arith.mulf %199, %201 : vector<16x16xf32>
    %203 = arith.addf %194, %202 : vector<16x16xf32>
    %c57 = arith.constant 57 : index
    %204 = memref.load %arg1[%c57] : memref<72xf32, #tpu.memory_space<smem>>
    %205 = vector.broadcast %204 : f32 to vector<16x16xf32>
    %206 = arith.mulf %199, %205 : vector<16x16xf32>
    %207 = arith.addf %198, %206 : vector<16x16xf32>
    %208 = vector.extract_strided_slice %171 {offsets = [1, 1], sizes = [16, 16], strides = [1, 1]} : vector<18x18xf32> to vector<16x16xf32>
    %c22 = arith.constant 22 : index
    %209 = memref.load %arg1[%c22] : memref<72xf32, #tpu.memory_space<smem>>
    %210 = vector.broadcast %209 : f32 to vector<16x16xf32>
    %211 = arith.mulf %208, %210 : vector<16x16xf32>
    %212 = arith.addf %203, %211 : vector<16x16xf32>
    %c58 = arith.constant 58 : index
    %213 = memref.load %arg1[%c58] : memref<72xf32, #tpu.memory_space<smem>>
    %214 = vector.broadcast %213 : f32 to vector<16x16xf32>
    %215 = arith.mulf %208, %214 : vector<16x16xf32>
    %216 = arith.addf %207, %215 : vector<16x16xf32>
    %217 = vector.extract_strided_slice %171 {offsets = [1, 2], sizes = [16, 16], strides = [1, 1]} : vector<18x18xf32> to vector<16x16xf32>
    %c23 = arith.constant 23 : index
    %218 = memref.load %arg1[%c23] : memref<72xf32, #tpu.memory_space<smem>>
    %219 = vector.broadcast %218 : f32 to vector<16x16xf32>
    %220 = arith.mulf %217, %219 : vector<16x16xf32>
    %221 = arith.addf %212, %220 : vector<16x16xf32>
    %c59 = arith.constant 59 : index
    %222 = memref.load %arg1[%c59] : memref<72xf32, #tpu.memory_space<smem>>
    %223 = vector.broadcast %222 : f32 to vector<16x16xf32>
    %224 = arith.mulf %217, %223 : vector<16x16xf32>
    %225 = arith.addf %216, %224 : vector<16x16xf32>
    %226 = vector.extract_strided_slice %171 {offsets = [2, 0], sizes = [16, 16], strides = [1, 1]} : vector<18x18xf32> to vector<16x16xf32>
    %c24 = arith.constant 24 : index
    %227 = memref.load %arg1[%c24] : memref<72xf32, #tpu.memory_space<smem>>
    %228 = vector.broadcast %227 : f32 to vector<16x16xf32>
    %229 = arith.mulf %226, %228 : vector<16x16xf32>
    %230 = arith.addf %221, %229 : vector<16x16xf32>
    %c60 = arith.constant 60 : index
    %231 = memref.load %arg1[%c60] : memref<72xf32, #tpu.memory_space<smem>>
    %232 = vector.broadcast %231 : f32 to vector<16x16xf32>
    %233 = arith.mulf %226, %232 : vector<16x16xf32>
    %234 = arith.addf %225, %233 : vector<16x16xf32>
    %235 = vector.extract_strided_slice %171 {offsets = [2, 1], sizes = [16, 16], strides = [1, 1]} : vector<18x18xf32> to vector<16x16xf32>
    %c25 = arith.constant 25 : index
    %236 = memref.load %arg1[%c25] : memref<72xf32, #tpu.memory_space<smem>>
    %237 = vector.broadcast %236 : f32 to vector<16x16xf32>
    %238 = arith.mulf %235, %237 : vector<16x16xf32>
    %239 = arith.addf %230, %238 : vector<16x16xf32>
    %c61 = arith.constant 61 : index
    %240 = memref.load %arg1[%c61] : memref<72xf32, #tpu.memory_space<smem>>
    %241 = vector.broadcast %240 : f32 to vector<16x16xf32>
    %242 = arith.mulf %235, %241 : vector<16x16xf32>
    %243 = arith.addf %234, %242 : vector<16x16xf32>
    %244 = vector.extract_strided_slice %171 {offsets = [2, 2], sizes = [16, 16], strides = [1, 1]} : vector<18x18xf32> to vector<16x16xf32>
    %c26 = arith.constant 26 : index
    %245 = memref.load %arg1[%c26] : memref<72xf32, #tpu.memory_space<smem>>
    %246 = vector.broadcast %245 : f32 to vector<16x16xf32>
    %247 = arith.mulf %244, %246 : vector<16x16xf32>
    %248 = arith.addf %239, %247 : vector<16x16xf32>
    %c62 = arith.constant 62 : index
    %249 = memref.load %arg1[%c62] : memref<72xf32, #tpu.memory_space<smem>>
    %250 = vector.broadcast %249 : f32 to vector<16x16xf32>
    %251 = arith.mulf %244, %250 : vector<16x16xf32>
    %252 = arith.addf %243, %251 : vector<16x16xf32>
    %c0_14 = arith.constant 0 : index
    %c3_15 = arith.constant 3 : index
    %c0_16 = arith.constant 0 : index
    %c0_17 = arith.constant 0 : index
    %253 = vector.load %arg3[%c0_14, %c3_15, %c0_16, %c0_17] : memref<2x4x18x18xf32, #tpu.memory_space<vmem>>, vector<1x1x18x18xf32>
    %254 = vector.shape_cast %253 : vector<1x1x18x18xf32> to vector<18x18xf32>
    %255 = vector.extract_strided_slice %254 {offsets = [0, 0], sizes = [16, 16], strides = [1, 1]} : vector<18x18xf32> to vector<16x16xf32>
    %c27 = arith.constant 27 : index
    %256 = memref.load %arg1[%c27] : memref<72xf32, #tpu.memory_space<smem>>
    %257 = vector.broadcast %256 : f32 to vector<16x16xf32>
    %258 = arith.mulf %255, %257 : vector<16x16xf32>
    %259 = arith.addf %248, %258 : vector<16x16xf32>
    %c63 = arith.constant 63 : index
    %260 = memref.load %arg1[%c63] : memref<72xf32, #tpu.memory_space<smem>>
    %261 = vector.broadcast %260 : f32 to vector<16x16xf32>
    %262 = arith.mulf %255, %261 : vector<16x16xf32>
    %263 = arith.addf %252, %262 : vector<16x16xf32>
    %264 = vector.extract_strided_slice %254 {offsets = [0, 1], sizes = [16, 16], strides = [1, 1]} : vector<18x18xf32> to vector<16x16xf32>
    %c28 = arith.constant 28 : index
    %265 = memref.load %arg1[%c28] : memref<72xf32, #tpu.memory_space<smem>>
    %266 = vector.broadcast %265 : f32 to vector<16x16xf32>
    %267 = arith.mulf %264, %266 : vector<16x16xf32>
    %268 = arith.addf %259, %267 : vector<16x16xf32>
    %c64 = arith.constant 64 : index
    %269 = memref.load %arg1[%c64] : memref<72xf32, #tpu.memory_space<smem>>
    %270 = vector.broadcast %269 : f32 to vector<16x16xf32>
    %271 = arith.mulf %264, %270 : vector<16x16xf32>
    %272 = arith.addf %263, %271 : vector<16x16xf32>
    %273 = vector.extract_strided_slice %254 {offsets = [0, 2], sizes = [16, 16], strides = [1, 1]} : vector<18x18xf32> to vector<16x16xf32>
    %c29 = arith.constant 29 : index
    %274 = memref.load %arg1[%c29] : memref<72xf32, #tpu.memory_space<smem>>
    %275 = vector.broadcast %274 : f32 to vector<16x16xf32>
    %276 = arith.mulf %273, %275 : vector<16x16xf32>
    %277 = arith.addf %268, %276 : vector<16x16xf32>
    %c65 = arith.constant 65 : index
    %278 = memref.load %arg1[%c65] : memref<72xf32, #tpu.memory_space<smem>>
    %279 = vector.broadcast %278 : f32 to vector<16x16xf32>
    %280 = arith.mulf %273, %279 : vector<16x16xf32>
    %281 = arith.addf %272, %280 : vector<16x16xf32>
    %282 = vector.extract_strided_slice %254 {offsets = [1, 0], sizes = [16, 16], strides = [1, 1]} : vector<18x18xf32> to vector<16x16xf32>
    %c30 = arith.constant 30 : index
    %283 = memref.load %arg1[%c30] : memref<72xf32, #tpu.memory_space<smem>>
    %284 = vector.broadcast %283 : f32 to vector<16x16xf32>
    %285 = arith.mulf %282, %284 : vector<16x16xf32>
    %286 = arith.addf %277, %285 : vector<16x16xf32>
    %c66 = arith.constant 66 : index
    %287 = memref.load %arg1[%c66] : memref<72xf32, #tpu.memory_space<smem>>
    %288 = vector.broadcast %287 : f32 to vector<16x16xf32>
    %289 = arith.mulf %282, %288 : vector<16x16xf32>
    %290 = arith.addf %281, %289 : vector<16x16xf32>
    %291 = vector.extract_strided_slice %254 {offsets = [1, 1], sizes = [16, 16], strides = [1, 1]} : vector<18x18xf32> to vector<16x16xf32>
    %c31 = arith.constant 31 : index
    %292 = memref.load %arg1[%c31] : memref<72xf32, #tpu.memory_space<smem>>
    %293 = vector.broadcast %292 : f32 to vector<16x16xf32>
    %294 = arith.mulf %291, %293 : vector<16x16xf32>
    %295 = arith.addf %286, %294 : vector<16x16xf32>
    %c67 = arith.constant 67 : index
    %296 = memref.load %arg1[%c67] : memref<72xf32, #tpu.memory_space<smem>>
    %297 = vector.broadcast %296 : f32 to vector<16x16xf32>
    %298 = arith.mulf %291, %297 : vector<16x16xf32>
    %299 = arith.addf %290, %298 : vector<16x16xf32>
    %300 = vector.extract_strided_slice %254 {offsets = [1, 2], sizes = [16, 16], strides = [1, 1]} : vector<18x18xf32> to vector<16x16xf32>
    %c32 = arith.constant 32 : index
    %301 = memref.load %arg1[%c32] : memref<72xf32, #tpu.memory_space<smem>>
    %302 = vector.broadcast %301 : f32 to vector<16x16xf32>
    %303 = arith.mulf %300, %302 : vector<16x16xf32>
    %304 = arith.addf %295, %303 : vector<16x16xf32>
    %c68 = arith.constant 68 : index
    %305 = memref.load %arg1[%c68] : memref<72xf32, #tpu.memory_space<smem>>
    %306 = vector.broadcast %305 : f32 to vector<16x16xf32>
    %307 = arith.mulf %300, %306 : vector<16x16xf32>
    %308 = arith.addf %299, %307 : vector<16x16xf32>
    %309 = vector.extract_strided_slice %254 {offsets = [2, 0], sizes = [16, 16], strides = [1, 1]} : vector<18x18xf32> to vector<16x16xf32>
    %c33 = arith.constant 33 : index
    %310 = memref.load %arg1[%c33] : memref<72xf32, #tpu.memory_space<smem>>
    %311 = vector.broadcast %310 : f32 to vector<16x16xf32>
    %312 = arith.mulf %309, %311 : vector<16x16xf32>
    %313 = arith.addf %304, %312 : vector<16x16xf32>
    %c69 = arith.constant 69 : index
    %314 = memref.load %arg1[%c69] : memref<72xf32, #tpu.memory_space<smem>>
    %315 = vector.broadcast %314 : f32 to vector<16x16xf32>
    %316 = arith.mulf %309, %315 : vector<16x16xf32>
    %317 = arith.addf %308, %316 : vector<16x16xf32>
    %318 = vector.extract_strided_slice %254 {offsets = [2, 1], sizes = [16, 16], strides = [1, 1]} : vector<18x18xf32> to vector<16x16xf32>
    %c34 = arith.constant 34 : index
    %319 = memref.load %arg1[%c34] : memref<72xf32, #tpu.memory_space<smem>>
    %320 = vector.broadcast %319 : f32 to vector<16x16xf32>
    %321 = arith.mulf %318, %320 : vector<16x16xf32>
    %322 = arith.addf %313, %321 : vector<16x16xf32>
    %c70 = arith.constant 70 : index
    %323 = memref.load %arg1[%c70] : memref<72xf32, #tpu.memory_space<smem>>
    %324 = vector.broadcast %323 : f32 to vector<16x16xf32>
    %325 = arith.mulf %318, %324 : vector<16x16xf32>
    %326 = arith.addf %317, %325 : vector<16x16xf32>
    %327 = vector.extract_strided_slice %254 {offsets = [2, 2], sizes = [16, 16], strides = [1, 1]} : vector<18x18xf32> to vector<16x16xf32>
    %c35 = arith.constant 35 : index
    %328 = memref.load %arg1[%c35] : memref<72xf32, #tpu.memory_space<smem>>
    %329 = vector.broadcast %328 : f32 to vector<16x16xf32>
    %330 = arith.mulf %327, %329 : vector<16x16xf32>
    %331 = arith.addf %322, %330 : vector<16x16xf32>
    %c71 = arith.constant 71 : index
    %332 = memref.load %arg1[%c71] : memref<72xf32, #tpu.memory_space<smem>>
    %333 = vector.broadcast %332 : f32 to vector<16x16xf32>
    %334 = arith.mulf %327, %333 : vector<16x16xf32>
    %335 = arith.addf %326, %334 : vector<16x16xf32>
    %cst = arith.constant 0.000000e+00 : f32
    %336 = vector.broadcast %cst : f32 to vector<16x16xf32>
    %337 = arith.maximumf %331, %336 : vector<16x16xf32>
    %cst_18 = arith.constant 0.000000e+00 : f32
    %338 = vector.broadcast %cst_18 : f32 to vector<16x16xf32>
    %339 = arith.maximumf %335, %338 : vector<16x16xf32>
    %c0_19 = arith.constant 0 : index
    %340 = memref.load %arg2[%c0_19] : memref<2xf32, #tpu.memory_space<smem>>
    %341 = vector.broadcast %340 : f32 to vector<16x16xf32>
    %c1_20 = arith.constant 1 : index
    %342 = memref.load %arg2[%c1_20] : memref<2xf32, #tpu.memory_space<smem>>
    %343 = vector.broadcast %342 : f32 to vector<16x16xf32>
    %c1_21 = arith.constant 1 : index
    %c0_22 = arith.constant 0 : index
    %c0_23 = arith.constant 0 : index
    %c0_24 = arith.constant 0 : index
    %344 = vector.load %arg3[%c1_21, %c0_22, %c0_23, %c0_24] : memref<2x4x18x18xf32, #tpu.memory_space<vmem>>, vector<1x1x18x18xf32>
    %345 = vector.shape_cast %344 : vector<1x1x18x18xf32> to vector<18x18xf32>
    %346 = vector.extract_strided_slice %345 {offsets = [0, 0], sizes = [16, 16], strides = [1, 1]} : vector<18x18xf32> to vector<16x16xf32>
    %c0_25 = arith.constant 0 : index
    %347 = memref.load %arg1[%c0_25] : memref<72xf32, #tpu.memory_space<smem>>
    %348 = vector.broadcast %347 : f32 to vector<16x16xf32>
    %349 = arith.mulf %346, %348 : vector<16x16xf32>
    %350 = arith.addf %341, %349 : vector<16x16xf32>
    %c36_26 = arith.constant 36 : index
    %351 = memref.load %arg1[%c36_26] : memref<72xf32, #tpu.memory_space<smem>>
    %352 = vector.broadcast %351 : f32 to vector<16x16xf32>
    %353 = arith.mulf %346, %352 : vector<16x16xf32>
    %354 = arith.addf %343, %353 : vector<16x16xf32>
    %355 = vector.extract_strided_slice %345 {offsets = [0, 1], sizes = [16, 16], strides = [1, 1]} : vector<18x18xf32> to vector<16x16xf32>
    %c1_27 = arith.constant 1 : index
    %356 = memref.load %arg1[%c1_27] : memref<72xf32, #tpu.memory_space<smem>>
    %357 = vector.broadcast %356 : f32 to vector<16x16xf32>
    %358 = arith.mulf %355, %357 : vector<16x16xf32>
    %359 = arith.addf %350, %358 : vector<16x16xf32>
    %c37_28 = arith.constant 37 : index
    %360 = memref.load %arg1[%c37_28] : memref<72xf32, #tpu.memory_space<smem>>
    %361 = vector.broadcast %360 : f32 to vector<16x16xf32>
    %362 = arith.mulf %355, %361 : vector<16x16xf32>
    %363 = arith.addf %354, %362 : vector<16x16xf32>
    %364 = vector.extract_strided_slice %345 {offsets = [0, 2], sizes = [16, 16], strides = [1, 1]} : vector<18x18xf32> to vector<16x16xf32>
    %c2_29 = arith.constant 2 : index
    %365 = memref.load %arg1[%c2_29] : memref<72xf32, #tpu.memory_space<smem>>
    %366 = vector.broadcast %365 : f32 to vector<16x16xf32>
    %367 = arith.mulf %364, %366 : vector<16x16xf32>
    %368 = arith.addf %359, %367 : vector<16x16xf32>
    %c38_30 = arith.constant 38 : index
    %369 = memref.load %arg1[%c38_30] : memref<72xf32, #tpu.memory_space<smem>>
    %370 = vector.broadcast %369 : f32 to vector<16x16xf32>
    %371 = arith.mulf %364, %370 : vector<16x16xf32>
    %372 = arith.addf %363, %371 : vector<16x16xf32>
    %373 = vector.extract_strided_slice %345 {offsets = [1, 0], sizes = [16, 16], strides = [1, 1]} : vector<18x18xf32> to vector<16x16xf32>
    %c3_31 = arith.constant 3 : index
    %374 = memref.load %arg1[%c3_31] : memref<72xf32, #tpu.memory_space<smem>>
    %375 = vector.broadcast %374 : f32 to vector<16x16xf32>
    %376 = arith.mulf %373, %375 : vector<16x16xf32>
    %377 = arith.addf %368, %376 : vector<16x16xf32>
    %c39_32 = arith.constant 39 : index
    %378 = memref.load %arg1[%c39_32] : memref<72xf32, #tpu.memory_space<smem>>
    %379 = vector.broadcast %378 : f32 to vector<16x16xf32>
    %380 = arith.mulf %373, %379 : vector<16x16xf32>
    %381 = arith.addf %372, %380 : vector<16x16xf32>
    %382 = vector.extract_strided_slice %345 {offsets = [1, 1], sizes = [16, 16], strides = [1, 1]} : vector<18x18xf32> to vector<16x16xf32>
    %c4_33 = arith.constant 4 : index
    %383 = memref.load %arg1[%c4_33] : memref<72xf32, #tpu.memory_space<smem>>
    %384 = vector.broadcast %383 : f32 to vector<16x16xf32>
    %385 = arith.mulf %382, %384 : vector<16x16xf32>
    %386 = arith.addf %377, %385 : vector<16x16xf32>
    %c40_34 = arith.constant 40 : index
    %387 = memref.load %arg1[%c40_34] : memref<72xf32, #tpu.memory_space<smem>>
    %388 = vector.broadcast %387 : f32 to vector<16x16xf32>
    %389 = arith.mulf %382, %388 : vector<16x16xf32>
    %390 = arith.addf %381, %389 : vector<16x16xf32>
    %391 = vector.extract_strided_slice %345 {offsets = [1, 2], sizes = [16, 16], strides = [1, 1]} : vector<18x18xf32> to vector<16x16xf32>
    %c5_35 = arith.constant 5 : index
    %392 = memref.load %arg1[%c5_35] : memref<72xf32, #tpu.memory_space<smem>>
    %393 = vector.broadcast %392 : f32 to vector<16x16xf32>
    %394 = arith.mulf %391, %393 : vector<16x16xf32>
    %395 = arith.addf %386, %394 : vector<16x16xf32>
    %c41_36 = arith.constant 41 : index
    %396 = memref.load %arg1[%c41_36] : memref<72xf32, #tpu.memory_space<smem>>
    %397 = vector.broadcast %396 : f32 to vector<16x16xf32>
    %398 = arith.mulf %391, %397 : vector<16x16xf32>
    %399 = arith.addf %390, %398 : vector<16x16xf32>
    %400 = vector.extract_strided_slice %345 {offsets = [2, 0], sizes = [16, 16], strides = [1, 1]} : vector<18x18xf32> to vector<16x16xf32>
    %c6_37 = arith.constant 6 : index
    %401 = memref.load %arg1[%c6_37] : memref<72xf32, #tpu.memory_space<smem>>
    %402 = vector.broadcast %401 : f32 to vector<16x16xf32>
    %403 = arith.mulf %400, %402 : vector<16x16xf32>
    %404 = arith.addf %395, %403 : vector<16x16xf32>
    %c42_38 = arith.constant 42 : index
    %405 = memref.load %arg1[%c42_38] : memref<72xf32, #tpu.memory_space<smem>>
    %406 = vector.broadcast %405 : f32 to vector<16x16xf32>
    %407 = arith.mulf %400, %406 : vector<16x16xf32>
    %408 = arith.addf %399, %407 : vector<16x16xf32>
    %409 = vector.extract_strided_slice %345 {offsets = [2, 1], sizes = [16, 16], strides = [1, 1]} : vector<18x18xf32> to vector<16x16xf32>
    %c7_39 = arith.constant 7 : index
    %410 = memref.load %arg1[%c7_39] : memref<72xf32, #tpu.memory_space<smem>>
    %411 = vector.broadcast %410 : f32 to vector<16x16xf32>
    %412 = arith.mulf %409, %411 : vector<16x16xf32>
    %413 = arith.addf %404, %412 : vector<16x16xf32>
    %c43_40 = arith.constant 43 : index
    %414 = memref.load %arg1[%c43_40] : memref<72xf32, #tpu.memory_space<smem>>
    %415 = vector.broadcast %414 : f32 to vector<16x16xf32>
    %416 = arith.mulf %409, %415 : vector<16x16xf32>
    %417 = arith.addf %408, %416 : vector<16x16xf32>
    %418 = vector.extract_strided_slice %345 {offsets = [2, 2], sizes = [16, 16], strides = [1, 1]} : vector<18x18xf32> to vector<16x16xf32>
    %c8_41 = arith.constant 8 : index
    %419 = memref.load %arg1[%c8_41] : memref<72xf32, #tpu.memory_space<smem>>
    %420 = vector.broadcast %419 : f32 to vector<16x16xf32>
    %421 = arith.mulf %418, %420 : vector<16x16xf32>
    %422 = arith.addf %413, %421 : vector<16x16xf32>
    %c44_42 = arith.constant 44 : index
    %423 = memref.load %arg1[%c44_42] : memref<72xf32, #tpu.memory_space<smem>>
    %424 = vector.broadcast %423 : f32 to vector<16x16xf32>
    %425 = arith.mulf %418, %424 : vector<16x16xf32>
    %426 = arith.addf %417, %425 : vector<16x16xf32>
    %c1_43 = arith.constant 1 : index
    %c1_44 = arith.constant 1 : index
    %c0_45 = arith.constant 0 : index
    %c0_46 = arith.constant 0 : index
    %427 = vector.load %arg3[%c1_43, %c1_44, %c0_45, %c0_46] : memref<2x4x18x18xf32, #tpu.memory_space<vmem>>, vector<1x1x18x18xf32>
    %428 = vector.shape_cast %427 : vector<1x1x18x18xf32> to vector<18x18xf32>
    %429 = vector.extract_strided_slice %428 {offsets = [0, 0], sizes = [16, 16], strides = [1, 1]} : vector<18x18xf32> to vector<16x16xf32>
    %c9_47 = arith.constant 9 : index
    %430 = memref.load %arg1[%c9_47] : memref<72xf32, #tpu.memory_space<smem>>
    %431 = vector.broadcast %430 : f32 to vector<16x16xf32>
    %432 = arith.mulf %429, %431 : vector<16x16xf32>
    %433 = arith.addf %422, %432 : vector<16x16xf32>
    %c45_48 = arith.constant 45 : index
    %434 = memref.load %arg1[%c45_48] : memref<72xf32, #tpu.memory_space<smem>>
    %435 = vector.broadcast %434 : f32 to vector<16x16xf32>
    %436 = arith.mulf %429, %435 : vector<16x16xf32>
    %437 = arith.addf %426, %436 : vector<16x16xf32>
    %438 = vector.extract_strided_slice %428 {offsets = [0, 1], sizes = [16, 16], strides = [1, 1]} : vector<18x18xf32> to vector<16x16xf32>
    %c10_49 = arith.constant 10 : index
    %439 = memref.load %arg1[%c10_49] : memref<72xf32, #tpu.memory_space<smem>>
    %440 = vector.broadcast %439 : f32 to vector<16x16xf32>
    %441 = arith.mulf %438, %440 : vector<16x16xf32>
    %442 = arith.addf %433, %441 : vector<16x16xf32>
    %c46_50 = arith.constant 46 : index
    %443 = memref.load %arg1[%c46_50] : memref<72xf32, #tpu.memory_space<smem>>
    %444 = vector.broadcast %443 : f32 to vector<16x16xf32>
    %445 = arith.mulf %438, %444 : vector<16x16xf32>
    %446 = arith.addf %437, %445 : vector<16x16xf32>
    %447 = vector.extract_strided_slice %428 {offsets = [0, 2], sizes = [16, 16], strides = [1, 1]} : vector<18x18xf32> to vector<16x16xf32>
    %c11_51 = arith.constant 11 : index
    %448 = memref.load %arg1[%c11_51] : memref<72xf32, #tpu.memory_space<smem>>
    %449 = vector.broadcast %448 : f32 to vector<16x16xf32>
    %450 = arith.mulf %447, %449 : vector<16x16xf32>
    %451 = arith.addf %442, %450 : vector<16x16xf32>
    %c47_52 = arith.constant 47 : index
    %452 = memref.load %arg1[%c47_52] : memref<72xf32, #tpu.memory_space<smem>>
    %453 = vector.broadcast %452 : f32 to vector<16x16xf32>
    %454 = arith.mulf %447, %453 : vector<16x16xf32>
    %455 = arith.addf %446, %454 : vector<16x16xf32>
    %456 = vector.extract_strided_slice %428 {offsets = [1, 0], sizes = [16, 16], strides = [1, 1]} : vector<18x18xf32> to vector<16x16xf32>
    %c12_53 = arith.constant 12 : index
    %457 = memref.load %arg1[%c12_53] : memref<72xf32, #tpu.memory_space<smem>>
    %458 = vector.broadcast %457 : f32 to vector<16x16xf32>
    %459 = arith.mulf %456, %458 : vector<16x16xf32>
    %460 = arith.addf %451, %459 : vector<16x16xf32>
    %c48_54 = arith.constant 48 : index
    %461 = memref.load %arg1[%c48_54] : memref<72xf32, #tpu.memory_space<smem>>
    %462 = vector.broadcast %461 : f32 to vector<16x16xf32>
    %463 = arith.mulf %456, %462 : vector<16x16xf32>
    %464 = arith.addf %455, %463 : vector<16x16xf32>
    %465 = vector.extract_strided_slice %428 {offsets = [1, 1], sizes = [16, 16], strides = [1, 1]} : vector<18x18xf32> to vector<16x16xf32>
    %c13_55 = arith.constant 13 : index
    %466 = memref.load %arg1[%c13_55] : memref<72xf32, #tpu.memory_space<smem>>
    %467 = vector.broadcast %466 : f32 to vector<16x16xf32>
    %468 = arith.mulf %465, %467 : vector<16x16xf32>
    %469 = arith.addf %460, %468 : vector<16x16xf32>
    %c49_56 = arith.constant 49 : index
    %470 = memref.load %arg1[%c49_56] : memref<72xf32, #tpu.memory_space<smem>>
    %471 = vector.broadcast %470 : f32 to vector<16x16xf32>
    %472 = arith.mulf %465, %471 : vector<16x16xf32>
    %473 = arith.addf %464, %472 : vector<16x16xf32>
    %474 = vector.extract_strided_slice %428 {offsets = [1, 2], sizes = [16, 16], strides = [1, 1]} : vector<18x18xf32> to vector<16x16xf32>
    %c14_57 = arith.constant 14 : index
    %475 = memref.load %arg1[%c14_57] : memref<72xf32, #tpu.memory_space<smem>>
    %476 = vector.broadcast %475 : f32 to vector<16x16xf32>
    %477 = arith.mulf %474, %476 : vector<16x16xf32>
    %478 = arith.addf %469, %477 : vector<16x16xf32>
    %c50_58 = arith.constant 50 : index
    %479 = memref.load %arg1[%c50_58] : memref<72xf32, #tpu.memory_space<smem>>
    %480 = vector.broadcast %479 : f32 to vector<16x16xf32>
    %481 = arith.mulf %474, %480 : vector<16x16xf32>
    %482 = arith.addf %473, %481 : vector<16x16xf32>
    %483 = vector.extract_strided_slice %428 {offsets = [2, 0], sizes = [16, 16], strides = [1, 1]} : vector<18x18xf32> to vector<16x16xf32>
    %c15_59 = arith.constant 15 : index
    %484 = memref.load %arg1[%c15_59] : memref<72xf32, #tpu.memory_space<smem>>
    %485 = vector.broadcast %484 : f32 to vector<16x16xf32>
    %486 = arith.mulf %483, %485 : vector<16x16xf32>
    %487 = arith.addf %478, %486 : vector<16x16xf32>
    %c51_60 = arith.constant 51 : index
    %488 = memref.load %arg1[%c51_60] : memref<72xf32, #tpu.memory_space<smem>>
    %489 = vector.broadcast %488 : f32 to vector<16x16xf32>
    %490 = arith.mulf %483, %489 : vector<16x16xf32>
    %491 = arith.addf %482, %490 : vector<16x16xf32>
    %492 = vector.extract_strided_slice %428 {offsets = [2, 1], sizes = [16, 16], strides = [1, 1]} : vector<18x18xf32> to vector<16x16xf32>
    %c16_61 = arith.constant 16 : index
    %493 = memref.load %arg1[%c16_61] : memref<72xf32, #tpu.memory_space<smem>>
    %494 = vector.broadcast %493 : f32 to vector<16x16xf32>
    %495 = arith.mulf %492, %494 : vector<16x16xf32>
    %496 = arith.addf %487, %495 : vector<16x16xf32>
    %c52_62 = arith.constant 52 : index
    %497 = memref.load %arg1[%c52_62] : memref<72xf32, #tpu.memory_space<smem>>
    %498 = vector.broadcast %497 : f32 to vector<16x16xf32>
    %499 = arith.mulf %492, %498 : vector<16x16xf32>
    %500 = arith.addf %491, %499 : vector<16x16xf32>
    %501 = vector.extract_strided_slice %428 {offsets = [2, 2], sizes = [16, 16], strides = [1, 1]} : vector<18x18xf32> to vector<16x16xf32>
    %c17_63 = arith.constant 17 : index
    %502 = memref.load %arg1[%c17_63] : memref<72xf32, #tpu.memory_space<smem>>
    %503 = vector.broadcast %502 : f32 to vector<16x16xf32>
    %504 = arith.mulf %501, %503 : vector<16x16xf32>
    %505 = arith.addf %496, %504 : vector<16x16xf32>
    %c53_64 = arith.constant 53 : index
    %506 = memref.load %arg1[%c53_64] : memref<72xf32, #tpu.memory_space<smem>>
    %507 = vector.broadcast %506 : f32 to vector<16x16xf32>
    %508 = arith.mulf %501, %507 : vector<16x16xf32>
    %509 = arith.addf %500, %508 : vector<16x16xf32>
    %c1_65 = arith.constant 1 : index
    %c2_66 = arith.constant 2 : index
    %c0_67 = arith.constant 0 : index
    %c0_68 = arith.constant 0 : index
    %510 = vector.load %arg3[%c1_65, %c2_66, %c0_67, %c0_68] : memref<2x4x18x18xf32, #tpu.memory_space<vmem>>, vector<1x1x18x18xf32>
    %511 = vector.shape_cast %510 : vector<1x1x18x18xf32> to vector<18x18xf32>
    %512 = vector.extract_strided_slice %511 {offsets = [0, 0], sizes = [16, 16], strides = [1, 1]} : vector<18x18xf32> to vector<16x16xf32>
    %c18_69 = arith.constant 18 : index
    %513 = memref.load %arg1[%c18_69] : memref<72xf32, #tpu.memory_space<smem>>
    %514 = vector.broadcast %513 : f32 to vector<16x16xf32>
    %515 = arith.mulf %512, %514 : vector<16x16xf32>
    %516 = arith.addf %505, %515 : vector<16x16xf32>
    %c54_70 = arith.constant 54 : index
    %517 = memref.load %arg1[%c54_70] : memref<72xf32, #tpu.memory_space<smem>>
    %518 = vector.broadcast %517 : f32 to vector<16x16xf32>
    %519 = arith.mulf %512, %518 : vector<16x16xf32>
    %520 = arith.addf %509, %519 : vector<16x16xf32>
    %521 = vector.extract_strided_slice %511 {offsets = [0, 1], sizes = [16, 16], strides = [1, 1]} : vector<18x18xf32> to vector<16x16xf32>
    %c19_71 = arith.constant 19 : index
    %522 = memref.load %arg1[%c19_71] : memref<72xf32, #tpu.memory_space<smem>>
    %523 = vector.broadcast %522 : f32 to vector<16x16xf32>
    %524 = arith.mulf %521, %523 : vector<16x16xf32>
    %525 = arith.addf %516, %524 : vector<16x16xf32>
    %c55_72 = arith.constant 55 : index
    %526 = memref.load %arg1[%c55_72] : memref<72xf32, #tpu.memory_space<smem>>
    %527 = vector.broadcast %526 : f32 to vector<16x16xf32>
    %528 = arith.mulf %521, %527 : vector<16x16xf32>
    %529 = arith.addf %520, %528 : vector<16x16xf32>
    %530 = vector.extract_strided_slice %511 {offsets = [0, 2], sizes = [16, 16], strides = [1, 1]} : vector<18x18xf32> to vector<16x16xf32>
    %c20_73 = arith.constant 20 : index
    %531 = memref.load %arg1[%c20_73] : memref<72xf32, #tpu.memory_space<smem>>
    %532 = vector.broadcast %531 : f32 to vector<16x16xf32>
    %533 = arith.mulf %530, %532 : vector<16x16xf32>
    %534 = arith.addf %525, %533 : vector<16x16xf32>
    %c56_74 = arith.constant 56 : index
    %535 = memref.load %arg1[%c56_74] : memref<72xf32, #tpu.memory_space<smem>>
    %536 = vector.broadcast %535 : f32 to vector<16x16xf32>
    %537 = arith.mulf %530, %536 : vector<16x16xf32>
    %538 = arith.addf %529, %537 : vector<16x16xf32>
    %539 = vector.extract_strided_slice %511 {offsets = [1, 0], sizes = [16, 16], strides = [1, 1]} : vector<18x18xf32> to vector<16x16xf32>
    %c21_75 = arith.constant 21 : index
    %540 = memref.load %arg1[%c21_75] : memref<72xf32, #tpu.memory_space<smem>>
    %541 = vector.broadcast %540 : f32 to vector<16x16xf32>
    %542 = arith.mulf %539, %541 : vector<16x16xf32>
    %543 = arith.addf %534, %542 : vector<16x16xf32>
    %c57_76 = arith.constant 57 : index
    %544 = memref.load %arg1[%c57_76] : memref<72xf32, #tpu.memory_space<smem>>
    %545 = vector.broadcast %544 : f32 to vector<16x16xf32>
    %546 = arith.mulf %539, %545 : vector<16x16xf32>
    %547 = arith.addf %538, %546 : vector<16x16xf32>
    %548 = vector.extract_strided_slice %511 {offsets = [1, 1], sizes = [16, 16], strides = [1, 1]} : vector<18x18xf32> to vector<16x16xf32>
    %c22_77 = arith.constant 22 : index
    %549 = memref.load %arg1[%c22_77] : memref<72xf32, #tpu.memory_space<smem>>
    %550 = vector.broadcast %549 : f32 to vector<16x16xf32>
    %551 = arith.mulf %548, %550 : vector<16x16xf32>
    %552 = arith.addf %543, %551 : vector<16x16xf32>
    %c58_78 = arith.constant 58 : index
    %553 = memref.load %arg1[%c58_78] : memref<72xf32, #tpu.memory_space<smem>>
    %554 = vector.broadcast %553 : f32 to vector<16x16xf32>
    %555 = arith.mulf %548, %554 : vector<16x16xf32>
    %556 = arith.addf %547, %555 : vector<16x16xf32>
    %557 = vector.extract_strided_slice %511 {offsets = [1, 2], sizes = [16, 16], strides = [1, 1]} : vector<18x18xf32> to vector<16x16xf32>
    %c23_79 = arith.constant 23 : index
    %558 = memref.load %arg1[%c23_79] : memref<72xf32, #tpu.memory_space<smem>>
    %559 = vector.broadcast %558 : f32 to vector<16x16xf32>
    %560 = arith.mulf %557, %559 : vector<16x16xf32>
    %561 = arith.addf %552, %560 : vector<16x16xf32>
    %c59_80 = arith.constant 59 : index
    %562 = memref.load %arg1[%c59_80] : memref<72xf32, #tpu.memory_space<smem>>
    %563 = vector.broadcast %562 : f32 to vector<16x16xf32>
    %564 = arith.mulf %557, %563 : vector<16x16xf32>
    %565 = arith.addf %556, %564 : vector<16x16xf32>
    %566 = vector.extract_strided_slice %511 {offsets = [2, 0], sizes = [16, 16], strides = [1, 1]} : vector<18x18xf32> to vector<16x16xf32>
    %c24_81 = arith.constant 24 : index
    %567 = memref.load %arg1[%c24_81] : memref<72xf32, #tpu.memory_space<smem>>
    %568 = vector.broadcast %567 : f32 to vector<16x16xf32>
    %569 = arith.mulf %566, %568 : vector<16x16xf32>
    %570 = arith.addf %561, %569 : vector<16x16xf32>
    %c60_82 = arith.constant 60 : index
    %571 = memref.load %arg1[%c60_82] : memref<72xf32, #tpu.memory_space<smem>>
    %572 = vector.broadcast %571 : f32 to vector<16x16xf32>
    %573 = arith.mulf %566, %572 : vector<16x16xf32>
    %574 = arith.addf %565, %573 : vector<16x16xf32>
    %575 = vector.extract_strided_slice %511 {offsets = [2, 1], sizes = [16, 16], strides = [1, 1]} : vector<18x18xf32> to vector<16x16xf32>
    %c25_83 = arith.constant 25 : index
    %576 = memref.load %arg1[%c25_83] : memref<72xf32, #tpu.memory_space<smem>>
    %577 = vector.broadcast %576 : f32 to vector<16x16xf32>
    %578 = arith.mulf %575, %577 : vector<16x16xf32>
    %579 = arith.addf %570, %578 : vector<16x16xf32>
    %c61_84 = arith.constant 61 : index
    %580 = memref.load %arg1[%c61_84] : memref<72xf32, #tpu.memory_space<smem>>
    %581 = vector.broadcast %580 : f32 to vector<16x16xf32>
    %582 = arith.mulf %575, %581 : vector<16x16xf32>
    %583 = arith.addf %574, %582 : vector<16x16xf32>
    %584 = vector.extract_strided_slice %511 {offsets = [2, 2], sizes = [16, 16], strides = [1, 1]} : vector<18x18xf32> to vector<16x16xf32>
    %c26_85 = arith.constant 26 : index
    %585 = memref.load %arg1[%c26_85] : memref<72xf32, #tpu.memory_space<smem>>
    %586 = vector.broadcast %585 : f32 to vector<16x16xf32>
    %587 = arith.mulf %584, %586 : vector<16x16xf32>
    %588 = arith.addf %579, %587 : vector<16x16xf32>
    %c62_86 = arith.constant 62 : index
    %589 = memref.load %arg1[%c62_86] : memref<72xf32, #tpu.memory_space<smem>>
    %590 = vector.broadcast %589 : f32 to vector<16x16xf32>
    %591 = arith.mulf %584, %590 : vector<16x16xf32>
    %592 = arith.addf %583, %591 : vector<16x16xf32>
    %c1_87 = arith.constant 1 : index
    %c3_88 = arith.constant 3 : index
    %c0_89 = arith.constant 0 : index
    %c0_90 = arith.constant 0 : index
    %593 = vector.load %arg3[%c1_87, %c3_88, %c0_89, %c0_90] : memref<2x4x18x18xf32, #tpu.memory_space<vmem>>, vector<1x1x18x18xf32>
    %594 = vector.shape_cast %593 : vector<1x1x18x18xf32> to vector<18x18xf32>
    %595 = vector.extract_strided_slice %594 {offsets = [0, 0], sizes = [16, 16], strides = [1, 1]} : vector<18x18xf32> to vector<16x16xf32>
    %c27_91 = arith.constant 27 : index
    %596 = memref.load %arg1[%c27_91] : memref<72xf32, #tpu.memory_space<smem>>
    %597 = vector.broadcast %596 : f32 to vector<16x16xf32>
    %598 = arith.mulf %595, %597 : vector<16x16xf32>
    %599 = arith.addf %588, %598 : vector<16x16xf32>
    %c63_92 = arith.constant 63 : index
    %600 = memref.load %arg1[%c63_92] : memref<72xf32, #tpu.memory_space<smem>>
    %601 = vector.broadcast %600 : f32 to vector<16x16xf32>
    %602 = arith.mulf %595, %601 : vector<16x16xf32>
    %603 = arith.addf %592, %602 : vector<16x16xf32>
    %604 = vector.extract_strided_slice %594 {offsets = [0, 1], sizes = [16, 16], strides = [1, 1]} : vector<18x18xf32> to vector<16x16xf32>
    %c28_93 = arith.constant 28 : index
    %605 = memref.load %arg1[%c28_93] : memref<72xf32, #tpu.memory_space<smem>>
    %606 = vector.broadcast %605 : f32 to vector<16x16xf32>
    %607 = arith.mulf %604, %606 : vector<16x16xf32>
    %608 = arith.addf %599, %607 : vector<16x16xf32>
    %c64_94 = arith.constant 64 : index
    %609 = memref.load %arg1[%c64_94] : memref<72xf32, #tpu.memory_space<smem>>
    %610 = vector.broadcast %609 : f32 to vector<16x16xf32>
    %611 = arith.mulf %604, %610 : vector<16x16xf32>
    %612 = arith.addf %603, %611 : vector<16x16xf32>
    %613 = vector.extract_strided_slice %594 {offsets = [0, 2], sizes = [16, 16], strides = [1, 1]} : vector<18x18xf32> to vector<16x16xf32>
    %c29_95 = arith.constant 29 : index
    %614 = memref.load %arg1[%c29_95] : memref<72xf32, #tpu.memory_space<smem>>
    %615 = vector.broadcast %614 : f32 to vector<16x16xf32>
    %616 = arith.mulf %613, %615 : vector<16x16xf32>
    %617 = arith.addf %608, %616 : vector<16x16xf32>
    %c65_96 = arith.constant 65 : index
    %618 = memref.load %arg1[%c65_96] : memref<72xf32, #tpu.memory_space<smem>>
    %619 = vector.broadcast %618 : f32 to vector<16x16xf32>
    %620 = arith.mulf %613, %619 : vector<16x16xf32>
    %621 = arith.addf %612, %620 : vector<16x16xf32>
    %622 = vector.extract_strided_slice %594 {offsets = [1, 0], sizes = [16, 16], strides = [1, 1]} : vector<18x18xf32> to vector<16x16xf32>
    %c30_97 = arith.constant 30 : index
    %623 = memref.load %arg1[%c30_97] : memref<72xf32, #tpu.memory_space<smem>>
    %624 = vector.broadcast %623 : f32 to vector<16x16xf32>
    %625 = arith.mulf %622, %624 : vector<16x16xf32>
    %626 = arith.addf %617, %625 : vector<16x16xf32>
    %c66_98 = arith.constant 66 : index
    %627 = memref.load %arg1[%c66_98] : memref<72xf32, #tpu.memory_space<smem>>
    %628 = vector.broadcast %627 : f32 to vector<16x16xf32>
    %629 = arith.mulf %622, %628 : vector<16x16xf32>
    %630 = arith.addf %621, %629 : vector<16x16xf32>
    %631 = vector.extract_strided_slice %594 {offsets = [1, 1], sizes = [16, 16], strides = [1, 1]} : vector<18x18xf32> to vector<16x16xf32>
    %c31_99 = arith.constant 31 : index
    %632 = memref.load %arg1[%c31_99] : memref<72xf32, #tpu.memory_space<smem>>
    %633 = vector.broadcast %632 : f32 to vector<16x16xf32>
    %634 = arith.mulf %631, %633 : vector<16x16xf32>
    %635 = arith.addf %626, %634 : vector<16x16xf32>
    %c67_100 = arith.constant 67 : index
    %636 = memref.load %arg1[%c67_100] : memref<72xf32, #tpu.memory_space<smem>>
    %637 = vector.broadcast %636 : f32 to vector<16x16xf32>
    %638 = arith.mulf %631, %637 : vector<16x16xf32>
    %639 = arith.addf %630, %638 : vector<16x16xf32>
    %640 = vector.extract_strided_slice %594 {offsets = [1, 2], sizes = [16, 16], strides = [1, 1]} : vector<18x18xf32> to vector<16x16xf32>
    %c32_101 = arith.constant 32 : index
    %641 = memref.load %arg1[%c32_101] : memref<72xf32, #tpu.memory_space<smem>>
    %642 = vector.broadcast %641 : f32 to vector<16x16xf32>
    %643 = arith.mulf %640, %642 : vector<16x16xf32>
    %644 = arith.addf %635, %643 : vector<16x16xf32>
    %c68_102 = arith.constant 68 : index
    %645 = memref.load %arg1[%c68_102] : memref<72xf32, #tpu.memory_space<smem>>
    %646 = vector.broadcast %645 : f32 to vector<16x16xf32>
    %647 = arith.mulf %640, %646 : vector<16x16xf32>
    %648 = arith.addf %639, %647 : vector<16x16xf32>
    %649 = vector.extract_strided_slice %594 {offsets = [2, 0], sizes = [16, 16], strides = [1, 1]} : vector<18x18xf32> to vector<16x16xf32>
    %c33_103 = arith.constant 33 : index
    %650 = memref.load %arg1[%c33_103] : memref<72xf32, #tpu.memory_space<smem>>
    %651 = vector.broadcast %650 : f32 to vector<16x16xf32>
    %652 = arith.mulf %649, %651 : vector<16x16xf32>
    %653 = arith.addf %644, %652 : vector<16x16xf32>
    %c69_104 = arith.constant 69 : index
    %654 = memref.load %arg1[%c69_104] : memref<72xf32, #tpu.memory_space<smem>>
    %655 = vector.broadcast %654 : f32 to vector<16x16xf32>
    %656 = arith.mulf %649, %655 : vector<16x16xf32>
    %657 = arith.addf %648, %656 : vector<16x16xf32>
    %658 = vector.extract_strided_slice %594 {offsets = [2, 1], sizes = [16, 16], strides = [1, 1]} : vector<18x18xf32> to vector<16x16xf32>
    %c34_105 = arith.constant 34 : index
    %659 = memref.load %arg1[%c34_105] : memref<72xf32, #tpu.memory_space<smem>>
    %660 = vector.broadcast %659 : f32 to vector<16x16xf32>
    %661 = arith.mulf %658, %660 : vector<16x16xf32>
    %662 = arith.addf %653, %661 : vector<16x16xf32>
    %c70_106 = arith.constant 70 : index
    %663 = memref.load %arg1[%c70_106] : memref<72xf32, #tpu.memory_space<smem>>
    %664 = vector.broadcast %663 : f32 to vector<16x16xf32>
    %665 = arith.mulf %658, %664 : vector<16x16xf32>
    %666 = arith.addf %657, %665 : vector<16x16xf32>
    %667 = vector.extract_strided_slice %594 {offsets = [2, 2], sizes = [16, 16], strides = [1, 1]} : vector<18x18xf32> to vector<16x16xf32>
    %c35_107 = arith.constant 35 : index
    %668 = memref.load %arg1[%c35_107] : memref<72xf32, #tpu.memory_space<smem>>
    %669 = vector.broadcast %668 : f32 to vector<16x16xf32>
    %670 = arith.mulf %667, %669 : vector<16x16xf32>
    %671 = arith.addf %662, %670 : vector<16x16xf32>
    %c71_108 = arith.constant 71 : index
    %672 = memref.load %arg1[%c71_108] : memref<72xf32, #tpu.memory_space<smem>>
    %673 = vector.broadcast %672 : f32 to vector<16x16xf32>
    %674 = arith.mulf %667, %673 : vector<16x16xf32>
    %675 = arith.addf %666, %674 : vector<16x16xf32>
    %cst_109 = arith.constant 0.000000e+00 : f32
    %676 = vector.broadcast %cst_109 : f32 to vector<16x16xf32>
    %677 = arith.maximumf %671, %676 : vector<16x16xf32>
    %cst_110 = arith.constant 0.000000e+00 : f32
    %678 = vector.broadcast %cst_110 : f32 to vector<16x16xf32>
    %679 = arith.maximumf %675, %678 : vector<16x16xf32>
    %680 = tpu.concatenate %337, %339, %677, %679 in 0 : vector<16x16xf32>, vector<16x16xf32>, vector<16x16xf32>, vector<16x16xf32> -> vector<64x16xf32>
    %681 = tpu.iota {dimensions = array<i32: 0>} : vector<16x8xi32>
    %682 = tpu.iota {dimensions = array<i32: 1>} : vector<16x8xi32>
    %c2_i32 = arith.constant 2 : i32
    %683 = vector.broadcast %c2_i32 : i32 to vector<16x8xi32>
    %684 = arith.muli %683, %682 : vector<16x8xi32>
    %685 = arith.cmpi eq, %681, %684 : vector<16x8xi32>
    %686 = arith.extui %685 : vector<16x8xi1> to vector<16x8xi32>
    %687 = arith.sitofp %686 : vector<16x8xi32> to vector<16x8xf32>
    %c2_i32_111 = arith.constant 2 : i32
    %688 = vector.broadcast %c2_i32_111 : i32 to vector<16x8xi32>
    %689 = arith.muli %688, %682 : vector<16x8xi32>
    %c1_i32 = arith.constant 1 : i32
    %690 = vector.broadcast %c1_i32 : i32 to vector<16x8xi32>
    %691 = arith.addi %689, %690 : vector<16x8xi32>
    %692 = arith.cmpi eq, %681, %691 : vector<16x8xi32>
    %693 = arith.extui %692 : vector<16x8xi1> to vector<16x8xi32>
    %694 = arith.sitofp %693 : vector<16x8xi32> to vector<16x8xf32>
    %cst_112 = arith.constant dense<0.000000e+00> : vector<64x8xf32>
    %695 = tpu.matmul %680, %687, %cst_112 {dimension_numbers = #tpu.dot_dimension_numbers<[1], [0], [0], [1], [0, 0, 1, 1], [], []>} : vector<64x16xf32>, vector<16x8xf32>, vector<64x8xf32> -> vector<64x8xf32>
    %cst_113 = arith.constant dense<0.000000e+00> : vector<64x8xf32>
    %696 = tpu.matmul %680, %694, %cst_113 {dimension_numbers = #tpu.dot_dimension_numbers<[1], [0], [0], [1], [0, 0, 1, 1], [], []>} : vector<64x16xf32>, vector<16x8xf32>, vector<64x8xf32> -> vector<64x8xf32>
    %697 = arith.maximumf %695, %696 : vector<64x8xf32>
    %698 = tpu.iota {dimensions = array<i32: 0>} : vector<32x64xi32>
    %699 = tpu.iota {dimensions = array<i32: 1>} : vector<32x64xi32>
    %c2_i32_114 = arith.constant 2 : i32
    %700 = vector.broadcast %c2_i32_114 : i32 to vector<32x64xi32>
    %701 = arith.muli %700, %698 : vector<32x64xi32>
    %702 = arith.cmpi eq, %699, %701 : vector<32x64xi32>
    %703 = arith.extui %702 : vector<32x64xi1> to vector<32x64xi32>
    %704 = arith.sitofp %703 : vector<32x64xi32> to vector<32x64xf32>
    %c2_i32_115 = arith.constant 2 : i32
    %705 = vector.broadcast %c2_i32_115 : i32 to vector<32x64xi32>
    %706 = arith.muli %705, %698 : vector<32x64xi32>
    %c1_i32_116 = arith.constant 1 : i32
    %707 = vector.broadcast %c1_i32_116 : i32 to vector<32x64xi32>
    %708 = arith.addi %706, %707 : vector<32x64xi32>
    %709 = arith.cmpi eq, %699, %708 : vector<32x64xi32>
    %710 = arith.extui %709 : vector<32x64xi1> to vector<32x64xi32>
    %711 = arith.sitofp %710 : vector<32x64xi32> to vector<32x64xf32>
    %cst_117 = arith.constant dense<0.000000e+00> : vector<32x8xf32>
    %712 = tpu.matmul %704, %697, %cst_117 {dimension_numbers = #tpu.dot_dimension_numbers<[1], [0], [0], [1], [0, 0, 1, 1], [], []>} : vector<32x64xf32>, vector<64x8xf32>, vector<32x8xf32> -> vector<32x8xf32>
    %cst_118 = arith.constant dense<0.000000e+00> : vector<32x8xf32>
    %713 = tpu.matmul %711, %697, %cst_118 {dimension_numbers = #tpu.dot_dimension_numbers<[1], [0], [0], [1], [0, 0, 1, 1], [], []>} : vector<32x64xf32>, vector<64x8xf32>, vector<32x8xf32> -> vector<32x8xf32>
    %714 = arith.maximumf %712, %713 : vector<32x8xf32>
    %c0_119 = arith.constant 0 : index
    %c0_120 = arith.constant 0 : index
    %715 = vector.load %arg4[%c0_119, %c0_120] : memref<8x4xf32, #tpu.memory_space<vmem>>, vector<8x4xf32>
    %cst_121 = arith.constant dense<0.000000e+00> : vector<32x4xf32>
    %716 = tpu.matmul %714, %715, %cst_121 {dimension_numbers = #tpu.dot_dimension_numbers<[1], [0], [0], [1], [0, 0, 1, 1], [], []>} : vector<32x8xf32>, vector<8x4xf32>, vector<32x4xf32> -> vector<32x4xf32>
    %c0_122 = arith.constant 0 : index
    %c0_123 = arith.constant 0 : index
    %717 = vector.load %arg5[%c0_122, %c0_123] : memref<1x4xf32, #tpu.memory_space<vmem>>, vector<1x4xf32>
    %718 = vector.broadcast %717 : vector<1x4xf32> to vector<32x4xf32>
    %719 = arith.addf %716, %718 : vector<32x4xf32>
    %cst_124 = arith.constant 0.000000e+00 : f32
    %720 = vector.broadcast %cst_124 : f32 to vector<32x4xf32>
    %721 = arith.maximumf %719, %720 : vector<32x4xf32>
    %c0_125 = arith.constant 0 : index
    %c0_126 = arith.constant 0 : index
    %722 = vector.load %arg6[%c0_125, %c0_126] : memref<4x4xf32, #tpu.memory_space<vmem>>, vector<4x4xf32>
    %cst_127 = arith.constant dense<0.000000e+00> : vector<32x4xf32>
    %723 = tpu.matmul %721, %722, %cst_127 {dimension_numbers = #tpu.dot_dimension_numbers<[1], [0], [0], [1], [0, 0, 1, 1], [], []>} : vector<32x4xf32>, vector<4x4xf32>, vector<32x4xf32> -> vector<32x4xf32>
    %c0_128 = arith.constant 0 : index
    %c0_129 = arith.constant 0 : index
    %724 = vector.load %arg7[%c0_128, %c0_129] : memref<1x4xf32, #tpu.memory_space<vmem>>, vector<1x4xf32>
    %725 = vector.broadcast %724 : vector<1x4xf32> to vector<32x4xf32>
    %726 = arith.addf %723, %725 : vector<32x4xf32>
    %727 = tpu.iota {dimensions = array<i32: 0>} : vector<4x128xi32>
    %728 = tpu.iota {dimensions = array<i32: 1>} : vector<4x128xi32>
    %c4_i32 = arith.constant 4 : i32
    %c0_i32 = arith.constant 0 : i32
    %729 = arith.cmpi eq, %c4_i32, %c0_i32 : i32
    %c1_i32_130 = arith.constant 1 : i32
    %730 = arith.select %729, %c1_i32_130, %c4_i32 : i32
    %731 = vector.broadcast %730 : i32 to vector<4x128xi32>
    %732 = arith.remsi %728, %731 : vector<4x128xi32>
    %c0_i32_131 = arith.constant 0 : i32
    %733 = vector.broadcast %c0_i32_131 : i32 to vector<4x128xi32>
    %734 = arith.cmpi ne, %732, %733 : vector<4x128xi32>
    %c0_i32_132 = arith.constant 0 : i32
    %735 = vector.broadcast %c0_i32_132 : i32 to vector<4x128xi32>
    %736 = arith.cmpi slt, %732, %735 : vector<4x128xi32>
    %c0_i32_133 = arith.constant 0 : i32
    %737 = arith.cmpi slt, %730, %c0_i32_133 : i32
    %738 = vector.broadcast %737 : i1 to vector<4x128xi1>
    %739 = vector.broadcast %738 : vector<4x128xi1> to vector<4x128xi1>
    %740 = arith.xori %736, %739 : vector<4x128xi1>
    %741 = arith.andi %740, %734 : vector<4x128xi1>
    %742 = vector.broadcast %730 : i32 to vector<4x128xi32>
    %743 = arith.addi %732, %742 : vector<4x128xi32>
    %744 = arith.select %741, %743, %732 : vector<4x128xi1>, vector<4x128xi32>
    %745 = arith.cmpi eq, %744, %727 : vector<4x128xi32>
    %746 = arith.extui %745 : vector<4x128xi1> to vector<4x128xi32>
    %747 = arith.sitofp %746 : vector<4x128xi32> to vector<4x128xf32>
    %cst_134 = arith.constant dense<0.000000e+00> : vector<32x128xf32>
    %748 = tpu.matmul %726, %747, %cst_134 {dimension_numbers = #tpu.dot_dimension_numbers<[1], [0], [0], [1], [0, 0, 1, 1], [], []>} : vector<32x4xf32>, vector<4x128xf32>, vector<32x128xf32> -> vector<32x128xf32>
    %749 = tpu.iota {dimensions = array<i32: 0>} : vector<32x128xi32>
    %750 = tpu.iota {dimensions = array<i32: 1>} : vector<32x128xi32>
    %c4_i32_135 = arith.constant 4 : i32
    %751 = vector.broadcast %c4_i32_135 : i32 to vector<32x128xi32>
    %752 = arith.muli %749, %751 : vector<32x128xi32>
    %753 = arith.cmpi sge, %750, %752 : vector<32x128xi32>
    %c1_i32_136 = arith.constant 1 : i32
    %754 = vector.broadcast %c1_i32_136 : i32 to vector<32x128xi32>
    %755 = arith.addi %749, %754 : vector<32x128xi32>
    %c4_i32_137 = arith.constant 4 : i32
    %756 = vector.broadcast %c4_i32_137 : i32 to vector<32x128xi32>
    %757 = arith.muli %755, %756 : vector<32x128xi32>
    %758 = arith.cmpi slt, %750, %757 : vector<32x128xi32>
    %759 = arith.andi %753, %758 : vector<32x128xi1>
    %760 = arith.extui %759 : vector<32x128xi1> to vector<32x128xi32>
    %761 = arith.sitofp %760 : vector<32x128xi32> to vector<32x128xf32>
    %762 = arith.mulf %748, %761 : vector<32x128xf32>
    %cst_138 = arith.constant dense<0.000000e+00> : vector<128xf32>
    %763 = vector.multi_reduction <add>, %762, %cst_138 [0] : vector<32x128xf32> to vector<128xf32>
    %764 = vector.shape_cast %763 : vector<128xf32> to vector<1x128xf32>
    %c0_139 = arith.constant 0 : index
    %c0_140 = arith.constant 0 : index
    %765 = vector.load %arg8[%c0_139, %c0_140] : memref<1x128xf32, #tpu.memory_space<vmem>>, vector<1x128xf32>
    tpu.vector_store %arg8[%c0_139, %c0_140], %764 {strides = array<i32>} : memref<1x128xf32, #tpu.memory_space<vmem>>, vector<1x128xf32>,
    return
  }
  func.func @transform_0(%arg0: i32) -> i32 {
    %c0_i32 = arith.constant 0 : i32
    %c0_i32_0 = arith.constant 0 : i32
    return %c0_i32 : i32
  }
  func.func @transform_1(%arg0: i32) -> i32 {
    %c0_i32 = arith.constant 0 : i32
    %c0_i32_0 = arith.constant 0 : i32
    return %c0_i32 : i32
  }
  func.func @transform_2(%arg0: i32) -> (i32, i32, i32, i32) {
    %c0_i32 = arith.constant 0 : i32
    %c0_i32_0 = arith.constant 0 : i32
    %c0_i32_1 = arith.constant 0 : i32
    %c0_i32_2 = arith.constant 0 : i32
    %c0_i32_3 = arith.constant 0 : i32
    return %c0_i32, %c0_i32_0, %c0_i32_1, %c0_i32_2 : i32, i32, i32, i32
  }
  func.func @transform_3(%arg0: i32) -> (i32, i32) {
    %c0_i32 = arith.constant 0 : i32
    %c0_i32_0 = arith.constant 0 : i32
    %c0_i32_1 = arith.constant 0 : i32
    return %c0_i32, %c0_i32_0 : i32, i32
  }
  func.func @transform_4(%arg0: i32) -> (i32, i32) {
    %c0_i32 = arith.constant 0 : i32
    %c0_i32_0 = arith.constant 0 : i32
    %c0_i32_1 = arith.constant 0 : i32
    return %c0_i32, %c0_i32_0 : i32, i32
  }
  func.func @transform_5(%arg0: i32) -> (i32, i32) {
    %c0_i32 = arith.constant 0 : i32
    %c0_i32_0 = arith.constant 0 : i32
    %c0_i32_1 = arith.constant 0 : i32
    return %c0_i32, %c0_i32_0 : i32, i32
  }
  func.func @transform_6(%arg0: i32) -> (i32, i32) {
    %c0_i32 = arith.constant 0 : i32
    %c0_i32_0 = arith.constant 0 : i32
    %c0_i32_1 = arith.constant 0 : i32
    return %c0_i32, %c0_i32_0 : i32, i32
  }
  func.func @transform_7(%arg0: i32) -> (i32, i32) {
    %c0_i32 = arith.constant 0 : i32
    %c0_i32_0 = arith.constant 0 : i32
    %c0_i32_1 = arith.constant 0 : i32
    return %c0_i32, %c0_i32_0 : i32, i32
  }
}

</mosaic_0001>

<bundles_post_ra>
// kernel: tpu_custom_call.1
= control target key start
LH: loop header
LB: loop body
LE: loop exit
PB: predicated region body
PF: predicated region fallthrough
CT: control target
= control target key end

     0   :  { %12 = vsyncpa [#allocation4], 0  ;;  %s6338_s0 = inlined_call_operand.vmem [shape: f32[72], index: 0, kind: input, shape index: {}]   ;;  %s6339_s1 = inlined_call_operand.vmem [shape: f32[2], index: 1, kind: input, shape index: {}]   ;;  %s6340_s2 = inlined_call_operand.vmem [shape: f32[2,4,18,18], index: 2, kind: input, shape index: {}]   ;;  %s6341_s3 = inlined_call_operand.vmem [shape: f32[8,4], index: 3, kind: input, shape index: {}]   ;;  %s6342_s4 = inlined_call_operand.vmem [shape: f32[1,4], index: 4, kind: input, shape index: {}]   ;;  %s6343_s5 = inlined_call_operand.vmem [shape: f32[4,4], index: 5, kind: input, shape index: {}]   ;;  %s6344_s6 = inlined_call_operand.vmem [shape: f32[1,4], index: 6, kind: input, shape index: {}]   ;;  %s6345_s7 = inlined_call_operand.hbm [shape: f32[1,128], index: 7, kind: output, shape index: {}]  }
   0x1   :  { %13 = vsyncpa [#allocation6], 0 }
   0x2   :  { %14 = vsyncpa [#allocation3], 0  ;;  %s21_s26 = sshll.u32 %s6338_s0, 4  ;;  %s31_s29 = sshll.u32 %s6339_s1, 4  ;;  %s22_s26 = int_to_ptr.vmem [resolvable:$true] %s21_s26  ;;  %s32_s29 = int_to_ptr.vmem [resolvable:$true] %s31_s29 }
   0x3   :  { %s3622_s30 = scalar_lea.vmem %s22_s26, 16  ;;  %p3627_p1 = scmp.lt.s32.totalorder %s22_s26, %s22_s26 }
   0x4   :  { %p3623_p0 = scmp.ne.s32.totalorder %s22_s26, %s3622_s30  ;;  %p3628_p2 = scmp.lt.s32.totalorder %s3622_s30, %s3622_s30 }
   0x6   :  { %p3629_p3 = por %p3628_p2, %p3627_p1 }
   0x8   :  { %p3630_p4 = pnand %p3629_p3, %p3623_p0 }
   0xa   :  { %3633 = shalt.err (!%p3630_p4)
}
   0xb   :  { %s3672_s8 = smov [#allocation2]   ;;  %s3634_s9 = scalar_lea.vmem %s32_s29, 16 }
   0xc   :  { %24 = dma.vmem_to_smem %s22_s26, 16, %s3672_s8, [#allocation4]  }
   0xd   :  { %p3635_p5 = scmp.ne.s32.totalorder %s32_s29, %s3634_s9  ;;  %p3639_p6 = scmp.lt.s32.totalorder %s32_s29, %s32_s29 }
   0xe   :  { %p3640_p7 = scmp.lt.s32.totalorder %s3634_s9, %s3634_s9 }
  0x10   :  { %p3641_p8 = por %p3640_p7, %p3639_p6 }
  0x12   :  { %p3642_p9 = pnand %p3641_p8, %p3635_p5 }
  0x14   :  { %3645 = shalt.err (!%p3642_p9)
}
  0x15   :  { %s3673_s0 = smov [#allocation5]  }
  0x16   :  { %34 = dma.vmem_to_smem %s32_s29, 16, %s3673_s0, [#allocation6]  }
  0x17   :  { %3666 = dma.done.wait [#allocation4], 16  }
  0x18   :  { %3667 = vsyncadd [#allocation4], 4294967280 }
  0x19   :  { %3668 = dma.done.wait [#allocation6], 16  }
  0x1a   :  { %3669 = vsyncadd [#allocation6], 4294967280 }
  0x1b   :  { %51 = sfence }
  0x1c   :  { %s3281_s1 = sld [smem:[#allocation2 + $0x2]]  ;;  %v3728_v0 = vld [vmem:[%s6340_s2] sm:$0xff]  ;;  %v3735_v2 = vld [vmem:[%s6340_s2 + $0x8] sm:$0xff]  ;;  %s3674_s19 = smov 126   ;;  %v3756_v12 = vld [vmem:[%s6340_s2 + $0x10] sm:$0x3] }
  0x1d   :  { %s3279_s10 = sld [smem:[#allocation2 + $0x1]]  ;;  %s3675_s20 = smov 127   ;;  %vm135_vm0 = vcmask 1046528   ;;  %v3787_v27 = vld [vmem:[%s6340_s2 + $0x60] sm:$0xff]  ;;  %v3799_v33 = vld [vmem:[%s6340_s2 + $0x68] sm:$0xff]  ;;  %vm254_vm1 = vcmask 1045504  }
  0x1e   :  { %s3280_s11 = sld [smem:[#allocation2 + $0x25]]  ;;  %vm2404_vm6 = vcmask 130048   ;;  %vm2681_vm9 = vcmask 523264  }
  0x1f   :  { %s3285_s12 = sld [smem:[#allocation2 + $0x4]] }
  0x20   :  { %s3282_s17 = sld [smem:[#allocation2 + $0x26]] }
  0x21   :  { %s3287_s18 = sld [smem:[#allocation2 + $0x5]] }
  0x22   :  { %v3730_v1 = vstv %s3281_s1  ;;  %s3286_s23 = sld [smem:[#allocation2 + $0x28]] }
  0x23   :  { %v101_v3 = vmul.f32 %v3730_v1, %v3728_v0  ;;  %v72_v4 = vstv %s3279_s10  ;;  %v102_v6 = vmul.f32 %v3730_v1, %v3735_v2  ;;  %s3291_s26 = sld [smem:[#allocation2 + $0x7]]  ;;  %v1329_v45 = vmul.f32 %v3787_v27, %v3730_v1 }
  0x24   :  { %v73_v5 = vmul.f32 %v72_v4, %v3728_v0  ;;  %v74_v8 = vmul.f32 %v72_v4, %v3735_v2  ;;  %v3747_v9 = vstv %s3280_s11  ;;  %s3288_s27 = sld [smem:[#allocation2 + $0x29]]  ;;  %v1305_v32 = vmul.f32 %v3787_v27, %v72_v4 }
  0x25   :  { %105 = vrot.lane.b32.xlu1 %v101_v3, %s3674_s19  ;;  %v3743_v7 = vstv %s3285_s12  ;;  %v88_v13 = vmul.f32 %v3747_v9, %v3735_v2  ;;  %v87_v14 = vmul.f32 %v3747_v9, %v3728_v0  ;;  %v1306_v38 = vmul.f32 %v3799_v33, %v72_v4  ;;  %s3293_s30 = sld [smem:[#allocation2 + $0x8]] }
  0x26   :  { %77 = vrot.lane.b32.xlu0 %v73_v5, %s3675_s20  ;;  %v164_v10 = vmul.f32 %v3743_v7, %v3728_v0  ;;  %v165_v11 = vmul.f32 %v3743_v7, %v3735_v2  ;;  %v166_v17 = vmul.f32 %v3743_v7, %v3756_v12  ;;  %v3766_v18 = vstv %s3282_s17  ;;  %s3292_s8 = sld [smem:[#allocation2 + $0x2b]] }
  0x27   :  { %v3768_v19 = vstv %s3287_s18  ;;  %v115_v21 = vmul.f32 %v3766_v18, %v3728_v0  ;;  %v116_v26 = vmul.f32 %v3766_v18, %v3735_v2  ;;  %v1330_v52 = vmul.f32 %v3799_v33, %v3730_v1  ;;  %s3294_s1 = sld [smem:[#allocation2 + $0x2c]] }
  0x28   :  { %v170_v15 = vrot.slane %v164_v10, 1  ;;  %v171_v16 = vrot.slane %v165_v11, 1  ;;  %v173_v22 = vrot.slane %v166_v17, 1  ;;  %v206_v23 = vmul.f32 %v3768_v19, %v3728_v0  ;;  %v3867_v17 = vld [vmem:[%s6340_s2 + $0x70] sm:$0x3]  ;;  %s3300_s10 = sld [smem:[#allocation2 + $0xa]] }
  0x29   :  { %107 = vrot.lane.b32.xlu1 %v102_v6, %s3674_s19  ;;  %v207_v24 = vmul.f32 %v3768_v19, %v3735_v2  ;;  %v208_v30 = vmul.f32 %v3768_v19, %v3756_v12  ;;  %v3791_v31 = vstv %s3286_s23  ;;  %v3809_v39 = vstv %s3291_s26  ;;  %s3302_s13 = sld [smem:[#allocation2 + $0xb]] }
  0x2a   :  { %79 = vrot.lane.b32.xlu0 %v74_v8, %s3675_s20  ;;  %v172_v20 = vsel %vm135_vm0, %v170_v15, %v171_v16  ;;  %v174_v25 = vsel %vm135_vm0, %v171_v16, %v173_v22  ;;  %v212_v28 = vrot.slane %v206_v23, 1  ;;  %v185_v36 = vmul.f32 %v3791_v31, %v3728_v0  ;;  %s3301_s16 = sld [smem:[#allocation2 + $0x2e]] }
  0x2b   :  { %v213_v29 = vrot.slane %v207_v24, 1  ;;  %v215_v35 = vrot.slane %v208_v30, 1  ;;  %v186_v37 = vmul.f32 %v3791_v31, %v3735_v2  ;;  %v187_v43 = vmul.f32 %v3791_v31, %v3756_v12  ;;  %s3306_s17 = sld [smem:[#allocation2 + $0xd]] }
  0x2c   :  { %v191_v41 = vrot.slane %v185_v36, 1  ;;  %v3814_v44 = vstv %s3288_s27  ;;  %v283_v46 = vmul.f32 %v3809_v39, %v3728_v0  ;;  %v284_v47 = vmul.f32 %v3809_v39, %v3735_v2  ;;  %s3303_s18 = sld [smem:[#allocation2 + $0x2f]] }
  0x2d   :  { %93 = vrot.lane.b32.xlu1 %v88_v13, %s3675_s20  ;;  %v214_v34 = vsel %vm135_vm0, %v212_v28, %v213_v29  ;;  %v216_v40 = vsel %vm135_vm0, %v213_v29, %v215_v35  ;;  %v192_v42 = vrot.slane %v186_v37, 1  ;;  %v194_v49 = vrot.slane %v187_v43, 1  ;;  %s3308_s21 = sld [smem:[#allocation2 + $0xe]] }
  0x2e   :  { %91 = vrot.lane.b32.xlu0 %v87_v14, %s3675_s20  ;;  %v227_v50 = vmul.f32 %v3814_v44, %v3728_v0  ;;  %v228_v51 = vmul.f32 %v3814_v44, %v3735_v2  ;;  %v289_v53 = vrot.slane %v283_v46, 2  ;;  %v290_v54 = vrot.slane %v284_v47, 2  ;;  %s3307_s24 = sld [smem:[#allocation2 + $0x31]] }
  0x2f   :  { %v193_v48 = vsel %vm135_vm0, %v191_v41, %v192_v42  ;;  %v229_v55 = vmul.f32 %v3814_v44, %v3756_v12  ;;  %v195_v56 = vsel %vm135_vm0, %v192_v42, %v194_v49  ;;  %v285_v62 = vmul.f32 %v3809_v39, %v3756_v12  ;;  %s3312_s27 = sld [smem:[#allocation2 + $0x10]] }
  0x30   :  { %v233_v57 = vrot.slane %v227_v50, 1  ;;  %v234_v58 = vrot.slane %v228_v51, 1  ;;  %v291_v59 = vsel %vm254_vm1, %v289_v53, %v290_v54  ;;  %v3842_v63 = vstv %s3293_s30  ;;  %v3915_v51 = vld [vmem:[%s6340_s2 + $0x18] sm:$0xff]  ;;  %s3309_s28 = sld [smem:[#allocation2 + $0x32]] }
  0x31   :  { %175 = vrot.lane.b32.xlu1 %v172_v20, %s3675_s20  ;;  %v236_v60 = vrot.slane %v229_v55, 1  ;;  %v1317_v3 = vmul.f32 %v3787_v27, %v3747_v9  ;;  %v292_v4 = vrot.slane %v285_v62, 2  ;;  %v325_v5 = vmul.f32 %v3842_v63, %v3728_v0  ;;  %s3313_s9 = sld [smem:[#allocation2 + $0x34]] }
  0x32   :  { %119 = vrot.lane.b32.xlu0 %v115_v21, %s3674_s19  ;;  %v235_v61 = vsel %vm135_vm0, %v233_v57, %v234_v58  ;;  %v326_v6 = vmul.f32 %v3842_v63, %v3735_v2  ;;  %v1318_v8 = vmul.f32 %v3799_v33, %v3747_v9  ;;  %v327_v10 = vmul.f32 %v3842_v63, %v3756_v12  ;;  %s3321_s11 = sld [smem:[#allocation2 + $0x13]] }
  0x33   :  { %v237_v1 = vsel %vm135_vm0, %v234_v58, %v236_v60  ;;  %v1383_v11 = vmul.f32 %v3787_v27, %v3743_v7  ;;  %v293_v13 = vsel %vm254_vm1, %v290_v54, %v292_v4  ;;  %v331_v14 = vrot.slane %v325_v5, 2  ;;  %s3323_s14 = sld [smem:[#allocation2 + $0x14]] }
  0x34   :  { %v332_v15 = vrot.slane %v326_v6, 2  ;;  %v1384_v16 = vmul.f32 %v3799_v33, %v3743_v7  ;;  %v1341_v9 = vmul.f32 %v3787_v27, %v3766_v18  ;;  %v334_v20 = vrot.slane %v327_v10, 2  ;;  %v3944_v10 = vld [vmem:[%s6340_s2 + $0x20] sm:$0xff]  ;;  %s3283_s22 = sld [smem:[#allocation2 + $0x3]] }
  0x35   :  { %177 = vrot.lane.b32.xlu1 %v174_v25, %s3675_s20  ;;  %v1385_v21 = vmul.f32 %v3867_v17, %v3743_v7  ;;  %v1389_v23 = vrot.slane %v1383_v11, 1  ;;  %v3876_v25 = vstv %s3292_s8  ;;  %v1421_v29 = vmul.f32 %v3787_v27, %v3768_v19  ;;  %s3314_s8 = sld [smem:[#allocation2 + $0x11]] }
  0x36   :  { %121 = vrot.lane.b32.xlu0 %v116_v26, %s3674_s19  ;;  %v333_v22 = vsel %vm254_vm1, %v331_v14, %v332_v15  ;;  %v1390_v24 = vrot.slane %v1384_v16, 1  ;;  %v335_v26 = vsel %vm254_vm1, %v332_v15, %v334_v20  ;;  %v1422_v7 = vmul.f32 %v3799_v33, %v3768_v19  ;;  %s4293_s23 = sld [smem:[#allocation2 + $0x37]] }
  0x37   :  { %v1392_v28 = vrot.slane %v1385_v21, 1  ;;  %v1342_v35 = vmul.f32 %v3799_v33, %v3766_v18  ;;  %v1427_v37 = vrot.slane %v1421_v29, 1  ;;  %v306_v43 = vmul.f32 %v3876_v25, %v3756_v12  ;;  %s4301_s25 = sld [smem:[#allocation5 + $0x1]] }
  0x38   :  { %v1391_v30 = vsel %vm135_vm0, %v1389_v23, %v1390_v24  ;;  %v1402_v54 = vmul.f32 %v3787_v27, %v3791_v31  ;;  %v1403_v58 = vmul.f32 %v3799_v33, %v3791_v31  ;;  %v1440_v6 = vmul.f32 %v3787_v27, %v3814_v44  ;;  %s4305_s26 = sld [smem:[#allocation2 + $0x27]] }
  0x39   :  { %1309 = vrot.lane.b32.xlu1 %v1305_v32, %s3675_s20  ;;  %v304_v32 = vmul.f32 %v3876_v25, %v3728_v0  ;;  %v1393_v36 = vsel %vm135_vm0, %v1390_v24, %v1392_v28  ;;  %v3951_v16 = vstv %s3302_s13  ;;  %v1490_v20 = vmul.f32 %v3799_v33, %v3809_v39  ;;  %s4394_s29 = sld [smem:[#allocation2 + $0x17]] }
  0x3a   :  { %217 = vrot.lane.b32.xlu0 %v214_v34, %s3674_s19  ;;  %v305_v34 = vmul.f32 %v3876_v25, %v3735_v2  ;;  %v1446_v14 = vrot.slane %v1440_v6, 1  ;;  %v1491_v23 = vmul.f32 %v3867_v17, %v3809_v39  ;;  %v1442_v28 = vmul.f32 %v3867_v17, %v3814_v44  ;;  %s4406_s30 = sld [smem:[#allocation2 + $0x2a]] }
  0x3b   :  { %v310_v41 = vrot.slane %v304_v32, 2  ;;  %v412_v29 = vmul.f32 %v3944_v10, %v3951_v16  ;;  %s4693_s0 = sld [smem:[#allocation2 + $0x1a]] }
  0x3c   :  { %v311_v42 = vrot.slane %v305_v34, 2  ;;  %v1449_v34 = vrot.slane %v1442_v28, 1  ;;  %v4049_v28 = vld [vmem:[%s6340_s2 + $0x78] sm:$0xff]  ;;  %s5150_s12 = sld [smem:[#allocation2 + $0x36]] }
  0x3d   :  { %1311 = vrot.lane.b32.xlu1 %v1306_v38, %s3675_s20  ;;  %v1428_v38 = vrot.slane %v1422_v7, 1  ;;  %v1498_v7 = vrot.slane %v1491_v23, 2  ;;  %s5166_s15 = sld [smem:[#allocation2 + $0x15]] }
  0x3e   :  { %219 = vrot.lane.b32.xlu0 %v216_v40, %s3674_s19  ;;  %v1423_v40 = vmul.f32 %v3867_v17, %v3768_v19  ;;  %v312_v47 = vsel %vm254_vm1, %v310_v41, %v311_v42  ;;  %v3983_v41 = vstv %s3306_s17  ;;  %s4267_s17 = sld [smem:[#allocation2]] }
  0x3f   :  { %v1429_v18 = vsel %vm135_vm0, %v1427_v37, %v1428_v38 }
  0x40   :  { %v1430_v46 = vrot.slane %v1423_v40, 1 }
  0x41   :  { %1333 = vrot.lane.b32.xlu1 %v1329_v45, %s3674_s19  ;;  %v3899_v45 = vstv %s3294_s1  ;;  %s5067_s1 = sld [smem:[#allocation2 + $0x40]] }
  0x42   :  { %196 = vrot.lane.b32.xlu0 %v193_v48, %s3675_s20  ;;  %v313_v48 = vrot.slane %v306_v43, 2  ;;  %v346_v19 = vmul.f32 %v3899_v45, %v3728_v0  ;;  %v347_v49 = vmul.f32 %v3899_v45, %v3735_v2  ;;  %v1431_v50 = vsel %vm135_vm0, %v1428_v38, %v1430_v46 }
  0x43   :  { %v348_v53 = vmul.f32 %v3899_v45, %v3756_v12  ;;  %v1529_v38 = vmul.f32 %v3867_v17, %v3842_v63  ;;  %v473_v46 = vmul.f32 %v3915_v51, %v3983_v41 }
  0x44   :  { %v314_v55 = vsel %vm254_vm1, %v311_v42, %v313_v48  ;;  %v353_v57 = vrot.slane %v347_v49, 2 }
  0x45   :  { %1335 = vrot.lane.b32.xlu1 %v1330_v52, %s3674_s19  ;;  %v3917_v52 = vstv %s3300_s10  ;;  %v355_v60 = vrot.slane %v348_v53, 2  ;;  %v1508_v53 = vmul.f32 %v3787_v27, %v3876_v25  ;;  %s3315_s10 = sld [smem:[#allocation2 + $0x35]] }
  0x46   :  { %198 = vrot.lane.b32.xlu0 %v195_v56, %s3675_s20  ;;  %v352_v56 = vrot.slane %v346_v19, 2  ;;  %v479_v19 = vrot.slane %v473_v46, 1  ;;  %v4080_v46 = vstv %s3312_s27  ;;  %s4330_s27 = sld [smem:[#allocation2 + $0x6]] }
  0x47   :  { %v356_v4 = vsel %vm254_vm1, %v353_v57, %v355_v60 }
  0x48   :  { %v354_v62 = vsel %vm254_vm1, %v352_v56, %v353_v57 }
  0x49   :  { %294 = vrot.lane.b32.xlu1 %v291_v59, %s3675_s20  ;;  %v383_v59 = vmul.f32 %v3915_v51, %v3917_v52 }
  0x4a   :  { %238 = vrot.lane.b32.xlu0 %v235_v61, %s3674_s19  ;;  %v1404_v61 = vmul.f32 %v3867_v17, %v3791_v31 }
  0x4c   :  { %v1411_v5 = vrot.slane %v1404_v61, 1 }
  0x4d   :  { %240 = vrot.lane.b32.xlu1 %v237_v1, %s3674_s19  ;;  %v1408_v1 = vrot.slane %v1402_v54, 1  ;;  %v1509_v54 = vmul.f32 %v3799_v33, %v3876_v25 }
  0x4e   :  { %1321 = vrot.lane.b32.xlu0 %v1317_v3, %s3675_s20  ;;  %v1409_v3 = vrot.slane %v1403_v58, 1  ;;  %v1510_v58 = vmul.f32 %v3867_v17, %v3876_v25  ;;  %v1547_v25 = vmul.f32 %v3799_v33, %v3899_v45 }
  0x4f   :  { %v1515_v60 = vrot.slane %v1509_v54, 2 }
  0x50   :  { %v1410_v31 = vsel %vm135_vm0, %v1408_v1, %v1409_v3  ;;  %v1412_v11 = vsel %vm135_vm0, %v1409_v3, %v1411_v5  ;;  %v1517_v3 = vrot.slane %v1510_v58, 2 }
  0x51   :  { %1323 = vrot.lane.b32.xlu1 %v1318_v8, %s3675_s20  ;;  %v1441_v8 = vmul.f32 %v3799_v33, %v3814_v44  ;;  %v3976_v44 = vstv %s3301_s16  ;;  %s5212_s16 = sld [smem:[#allocation2 + $0x20]] }
  0x52   :  { %296 = vrot.lane.b32.xlu0 %v293_v13, %s3675_s20  ;;  %v384_v13 = vmul.f32 %v3944_v10, %v3917_v52  ;;  %v397_v42 = vmul.f32 %v3915_v51, %v3976_v44  ;;  %v398_v48 = vmul.f32 %v3944_v10, %v3976_v44 }
  0x53   :  { %v1447_v15 = vrot.slane %v1441_v8, 1 }
  0x55   :  { %1345 = vrot.lane.b32.xlu1 %v1341_v9, %s3674_s19  ;;  %v1489_v9 = vmul.f32 %v3787_v27, %v3809_v39  ;;  %v1448_v21 = vsel %vm135_vm0, %v1446_v14, %v1447_v15  ;;  %v1528_v39 = vmul.f32 %v3799_v33, %v3842_v63  ;;  %v1450_v40 = vsel %vm135_vm0, %v1447_v15, %v1449_v34 }
  0x56   :  { %336 = vrot.lane.b32.xlu0 %v333_v22, %s3674_s19  ;;  %v411_v22 = vmul.f32 %v3915_v51, %v3951_v16  ;;  %v1553_v14 = vrot.slane %v1547_v25, 2 }
  0x57   :  { %v1495_v24 = vrot.slane %v1489_v9, 2  ;;  %v1534_v37 = vrot.slane %v1528_v39, 2 }
  0x59   :  { %338 = vrot.lane.b32.xlu1 %v335_v26, %s3674_s19  ;;  %v1496_v26 = vrot.slane %v1490_v20, 2 }
  0x5a   :  { %1394 = vrot.lane.b32.xlu0 %v1391_v30, %s3675_s20  ;;  %v1527_v30 = vmul.f32 %v3787_v27, %v3842_v63  ;;  %v474_v63 = vmul.f32 %v3944_v10, %v3983_v41 }
  0x5b   :  { %v1497_v32 = vsel %vm254_vm1, %v1495_v24, %v1496_v26  ;;  %v1548_v24 = vmul.f32 %v3867_v17, %v3899_v45 }
  0x5c   :  { %v480_v49 = vrot.slane %v474_v63, 1 }
  0x5d   :  { %1396 = vrot.lane.b32.xlu1 %v1393_v36, %s3675_s20  ;;  %v1533_v36 = vrot.slane %v1527_v30, 2  ;;  %v4061_v30 = vld [vmem:[%s6340_s2 + $0x80] sm:$0xff]  ;;  %v1555_v39 = vrot.slane %v1548_v24, 2 }
  0x5e   :  { %1347 = vrot.lane.b32.xlu0 %v1342_v35, %s3674_s19  ;;  %v1499_v35 = vsel %vm254_vm1, %v1496_v26, %v1498_v7  ;;  %v481_v56 = vsel %vm135_vm0, %v479_v19, %v480_v49  ;;  %v592_v19 = vmul.f32 %v3944_v10, %v4080_v46 }
  0x5f   :  { %v1535_v43 = vsel %vm254_vm1, %v1533_v36, %v1534_v37 }
  0x61   :  { %1432 = vrot.lane.b32.xlu1 %v1429_v18, %s3674_s19  ;;  %v1536_v18 = vrot.slane %v1529_v38, 2  ;;  %v1556_v38 = vsel %vm254_vm1, %v1553_v14, %v1555_v39 }
  0x62   :  { %315 = vrot.lane.b32.xlu0 %v312_v47, %s3675_s20 }
  0x63   :  { %v1537_v47 = vsel %vm254_vm1, %v1534_v37, %v1536_v18  ;;  %v1578_v37 = vmul.f32 %v4061_v30, %v3917_v52 }
  0x65   :  { %1434 = vrot.lane.b32.xlu1 %v1431_v50, %s3674_s19  ;;  %v3999_v50 = vstv %s3303_s18  ;;  %s4274_s18 = sld [smem:[#allocation5]] }
  0x66   :  { %317 = vrot.lane.b32.xlu0 %v314_v55, %s3675_s20  ;;  %v4008_v55 = vld [vmem:[%s6340_s2 + $0x28] sm:$0x3]  ;;  %v425_v57 = vmul.f32 %v3915_v51, %v3999_v50  ;;  %v426_v1 = vmul.f32 %v3944_v10, %v3999_v50 }
  0x67   :  { %v475_v61 = vmul.f32 %v4008_v55, %v3983_v41 }
  0x69   :  { %387 = vrot.lane.b32.xlu1 %v383_v59, %s3675_s20  ;;  %v1514_v59 = vrot.slane %v1508_v53, 2  ;;  %v482_v6 = vrot.slane %v475_v61, 1  ;;  %v598_v61 = vrot.slane %v592_v19, 2 }
  0x6a   :  { %357 = vrot.lane.b32.xlu0 %v354_v62, %s3674_s19  ;;  %v4019_v62 = vstv %s3308_s21  ;;  %s3278_s21 = sld [smem:[#allocation2 + $0x24]] }
  0x6b   :  { %v1516_v5 = vsel %vm254_vm1, %v1514_v59, %v1515_v60  ;;  %v515_v8 = vmul.f32 %v3915_v51, %v4019_v62  ;;  %v517_v15 = vmul.f32 %v4008_v55, %v4019_v62  ;;  %v483_v9 = vsel %vm135_vm0, %v480_v49, %v482_v6 }
  0x6c   :  { %v1602_v59 = vmul.f32 %v4061_v30, %v3951_v16 }
  0x6d   :  { %359 = vrot.lane.b32.xlu1 %v356_v4, %s3674_s19  ;;  %v1546_v4 = vmul.f32 %v3787_v27, %v3899_v45  ;;  %v521_v20 = vrot.slane %v515_v8, 1  ;;  %v524_v23 = vrot.slane %v517_v15, 1  ;;  %v1577_v45 = vmul.f32 %v4049_v28, %v3917_v52 }
  0x6e   :  { %1413 = vrot.lane.b32.xlu0 %v1410_v31, %s3675_s20  ;;  %v516_v31 = vmul.f32 %v3944_v10, %v4019_v62  ;;  %v1601_v52 = vmul.f32 %v4049_v28, %v3951_v16  ;;  %v4124_v15 = vstv %s3314_s8  ;;  %s5009_s8 = sld [smem:[#allocation2 + $0x12]] }
  0x6f   :  { %v634_v24 = vmul.f32 %v3944_v10, %v4124_v15  ;;  %v635_v39 = vmul.f32 %v4008_v55, %v4124_v15 }
  0x71   :  { %1415 = vrot.lane.b32.xlu1 %v1412_v11, %s3675_s20  ;;  %v1518_v11 = vsel %vm254_vm1, %v1515_v60, %v1517_v3 }
  0x72   :  { %389 = vrot.lane.b32.xlu0 %v384_v13, %s3675_s20  ;;  %v1552_v13 = vrot.slane %v1546_v4, 2 }
  0x75   :  { %1451 = vrot.lane.b32.xlu1 %v1448_v21, %s3674_s19  ;;  %v522_v21 = vrot.slane %v516_v31, 1  ;;  %v593_v31 = vmul.f32 %v4008_v55, %v4080_v46 }
  0x76   :  { %415 = vrot.lane.b32.xlu0 %v411_v22, %s3674_s19  ;;  %v1554_v22 = vsel %vm254_vm1, %v1552_v13, %v1553_v14 }
  0x77   :  { %v523_v26 = vsel %vm135_vm0, %v521_v20, %v522_v21  ;;  %v525_v7 = vsel %vm135_vm0, %v522_v21, %v524_v23  ;;  %v1589_v20 = vmul.f32 %v4049_v28, %v3976_v44  ;;  %v600_v21 = vrot.slane %v593_v31, 2 }
  0x78   :  { %v633_v23 = vmul.f32 %v3915_v51, %v4124_v15  ;;  %v1614_v31 = vmul.f32 %v4061_v30, %v3999_v50 }
  0x79   :  { %417 = vrot.lane.b32.xlu1 %v412_v29, %s3674_s19  ;;  %v4051_v29 = vstv %s3307_s24  ;;  %s4299_s24 = sld [smem:[#allocation2 + $0x16]] }
  0x7a   :  { %1500 = vrot.lane.b32.xlu0 %v1497_v32, %s3675_s20  ;;  %v494_v34 = vmul.f32 %v3915_v51, %v4051_v29  ;;  %v496_v18 = vmul.f32 %v4008_v55, %v4051_v29 }
  0x7c   :  { %v503_v54 = vrot.slane %v496_v18, 1  ;;  %v1613_v18 = vmul.f32 %v4049_v28, %v3999_v50  ;;  %v4201_v50 = vstv %s3315_s10  ;;  %s5074_s10 = sld [smem:[#allocation2 + $0x1f]] }
  0x7d   :  { %1502 = vrot.lane.b32.xlu1 %v1499_v35, %s3675_s20  ;;  %v495_v35 = vmul.f32 %v3944_v10, %v4051_v29 }
  0x7e   :  { %1453 = vrot.lane.b32.xlu0 %v1450_v40, %s3674_s19 }
  0x81   :  { %1538 = vrot.lane.b32.xlu1 %v1535_v43, %s3674_s19  ;;  %v501_v43 = vrot.slane %v495_v35, 1  ;;  %v639_v35 = vrot.slane %v633_v23, 2 }
  0x82   :  { %401 = vrot.lane.b32.xlu0 %v397_v42, %s3675_s20  ;;  %v500_v42 = vrot.slane %v494_v34, 1 }
  0x83   :  { %v504_v4 = vsel %vm135_vm0, %v501_v43, %v503_v54 }
  0x84   :  { %v502_v53 = vsel %vm135_vm0, %v500_v42, %v501_v43  ;;  %v1656_v42 = vmul.f32 %v4061_v30, %v3983_v41 }
  0x85   :  { %1540 = vrot.lane.b32.xlu1 %v1537_v47, %s3674_s19  ;;  %v4084_v47 = vstv %s3309_s28  ;;  %s4350_s28 = sld [smem:[#allocation2 + $0x38]] }
  0x86   :  { %403 = vrot.lane.b32.xlu0 %v398_v48, %s3675_s20  ;;  %v591_v48 = vmul.f32 %v3915_v51, %v4080_v46 }
  0x88   :  { %v597_v60 = vrot.slane %v591_v48, 2 }
  0x89   :  { %484 = vrot.lane.b32.xlu1 %v481_v56, %s3675_s20  ;;  %v536_v56 = vmul.f32 %v3915_v51, %v4084_v47 }
  0x8a   :  { %429 = vrot.lane.b32.xlu0 %v425_v57, %s3674_s19  ;;  %v537_v57 = vmul.f32 %v3944_v10, %v4084_v47  ;;  %v599_v16 = vsel %vm254_vm1, %v597_v60, %v598_v61  ;;  %v1693_v60 = vmul.f32 %v4049_v28, %v4019_v62 }
  0x8b   :  { %v542_v25 = vrot.slane %v536_v56, 1  ;;  %v1662_v56 = vrot.slane %v1656_v42, 1 }
  0x8d   :  { %431 = vrot.lane.b32.xlu1 %v426_v1, %s3674_s19  ;;  %v538_v1 = vmul.f32 %v4008_v55, %v4084_v47 }
  0x8e   :  { %1519 = vrot.lane.b32.xlu0 %v1516_v5, %s3675_s20  ;;  %v543_v5 = vrot.slane %v537_v57, 1 }
  0x8f   :  { %v545_v8 = vrot.slane %v538_v1, 1  ;;  %v1694_v1 = vmul.f32 %v4061_v30, %v4019_v62 }
  0x90   :  { %v544_v13 = vsel %vm135_vm0, %v542_v25, %v543_v5 }
  0x91   :  { %1521 = vrot.lane.b32.xlu1 %v1518_v11, %s3675_s20 }
  0x92   :  { %486 = vrot.lane.b32.xlu0 %v483_v9, %s3675_s20  ;;  %v546_v9 = vsel %vm135_vm0, %v543_v5, %v545_v8 }
  0x95   :  { %1557 = vrot.lane.b32.xlu1 %v1554_v22, %s3674_s19 }
  0x96   :  { %526 = vrot.lane.b32.xlu0 %v523_v26, %s3674_s19 }
  0x97   :  { %v4063_v32 = vpop.permute.xlu1 %105 }
  0x98   :  { %v4069_v36 = vpop.permute.xlu0 %77 }
  0x99   :  { %528 = vrot.lane.b32.xlu1 %v525_v7, %s3674_s19  ;;  %v1590_v7 = vmul.f32 %v4061_v30, %v3976_v44  ;;  %v4155_v44 = vld [vmem:[%s6340_s2 + $0x88] sm:$0x3] }
  0x9a   :  { %1581 = vrot.lane.b32.xlu0 %v1577_v45, %s3675_s20  ;;  %v601_v45 = vsel %vm254_vm1, %v598_v61, %v600_v21  ;;  %v1657_v48 = vmul.f32 %v4155_v44, %v3983_v41  ;;  %v1695_v21 = vmul.f32 %v4155_v44, %v4019_v62 }
  0x9b   :  { %v4076_v40 = vpop.permute.xlu1 %107 }
  0x9c   :  { %v4082_v63 = vpop.permute.xlu0 %79  ;;  %v1664_v61 = vrot.slane %v1657_v48, 1 }
  0x9d   :  { %1583 = vrot.lane.b32.xlu1 %v1578_v37, %s3675_s20  ;;  %v640_v37 = vrot.slane %v634_v24, 2 }
  0x9e   :  { %1559 = vrot.lane.b32.xlu0 %v1556_v38, %s3674_s19  ;;  %v1655_v38 = vmul.f32 %v4049_v28, %v3983_v41 }
  0x9f   :  { %v4094_v49 = vpop.permute.xlu1 %93 }
  0xa0   :  { %v4101_v58 = vpop.permute.xlu0 %91  ;;  %v1661_v54 = vrot.slane %v1655_v38, 1 }
  0xa1   :  { %1605 = vrot.lane.b32.xlu1 %v1601_v52, %s3674_s19  ;;  %v642_v52 = vrot.slane %v635_v39, 2 }
  0xa2   :  { %505 = vrot.lane.b32.xlu0 %v502_v53, %s3675_s20  ;;  %v641_v53 = vsel %vm254_vm1, %v639_v35, %v640_v37  ;;  %v1663_v25 = vsel %vm135_vm0, %v1661_v54, %v1662_v56 }
  0xa3   :  { %v4109_v3 = vpop.permute.xlu1 %175  ;;  %v643_v41 = vsel %vm254_vm1, %v640_v37, %v642_v52  ;;  %v1702_v37 = vrot.slane %v1695_v21, 1  ;;  %v655_v52 = vmul.f32 %v3944_v10, %v4201_v50 }
  0xa4   :  { %6367 = vst [vmem:[#allocation11_spill] sm:$0xff] %v4109_v3  ;;  %v4112_v6 = vpop.permute.xlu0 %119 }
  0xa5   :  { %1607 = vrot.lane.b32.xlu1 %v1602_v59, %s3674_s19  ;;  %v4170_v59 = vstv %s3313_s9  ;;  %s4675_s9 = sld [smem:[#allocation2 + $0x30]] }
  0xa6   :  { %507 = vrot.lane.b32.xlu0 %v504_v4, %s3675_s20  ;;  %v612_v5 = vmul.f32 %v3915_v51, %v4170_v59  ;;  %v614_v23 = vmul.f32 %v4008_v55, %v4170_v59 }
  0xa7   :  { %v4119_v11 = vpop.permute.xlu1 %177 }
  0xa8   :  { %6368 = vst [vmem:[#allocation12_spill] sm:$0xff] %v4119_v11  ;;  %v4122_v14 = vpop.permute.xlu0 %121  ;;  %v621_v62 = vrot.slane %v614_v23, 2 }
  0xa9   :  { %6369 = vst [vmem:[#allocation13_spill] sm:$0xff] %v4122_v14  ;;  %602 = vrot.lane.b32.xlu1 %v599_v16, %s3675_s20  ;;  %v613_v16 = vmul.f32 %v3944_v10, %v4170_v59 }
  0xaa   :  { %547 = vrot.lane.b32.xlu0 %v544_v13, %s3674_s19  ;;  %v1699_v13 = vrot.slane %v1693_v60, 1  ;;  %v4224_v60 = vstv %s3321_s11  ;;  %s4732_s11 = sld [smem:[#allocation2 + $0xf]] }
  0xab   :  { %v4131_v22 = vpop.permute.xlu1 %1309 }
  0xac   :  { %6370 = vst [vmem:[#allocation14_spill] sm:$0xff] %v4131_v22  ;;  %v4137_v26 = vpop.permute.xlu0 %217 }
  0xad   :  { %6371 = vst [vmem:[#allocation15_spill] sm:$0xff] %v4137_v26  ;;  %549 = vrot.lane.b32.xlu1 %v546_v9, %s3674_s19  ;;  %v1665_v9 = vsel %vm135_vm0, %v1662_v56, %v1664_v61  ;;  %v4222_v56 = vld [vmem:[%s6340_s2 + $0x30] sm:$0xff] }
  0xae   :  { %1593 = vrot.lane.b32.xlu0 %v1589_v20, %s3675_s20  ;;  %v1700_v20 = vrot.slane %v1694_v1, 1 }
  0xaf   :  { %v4146_v34 = vpop.permute.xlu1 %1311 }
  0xb0   :  { %6372 = vst [vmem:[#allocation16_spill] sm:$0xff] %v4146_v34  ;;  %v4157_v43 = vpop.permute.xlu0 %219  ;;  %v1701_v35 = vsel %vm135_vm0, %v1699_v13, %v1700_v20  ;;  %v691_v13 = vmul.f32 %v4222_v56, %v4224_v60 }
  0xb1   :  { %6373 = vst [vmem:[#allocation17_spill] sm:$0xff] %v4157_v43  ;;  %1595 = vrot.lane.b32.xlu1 %v1590_v7, %s3675_s20  ;;  %v618_v7 = vrot.slane %v612_v5, 2  ;;  %v1674_v5 = vmul.f32 %v4049_v28, %v4051_v29 }
  0xb2   :  { %604 = vrot.lane.b32.xlu0 %v601_v45, %s3675_s20  ;;  %v619_v45 = vrot.slane %v613_v16, 2  ;;  %v1675_v16 = vmul.f32 %v4061_v30, %v4051_v29 }
  0xb3   :  { %v4165_v19 = vpop.permute.xlu1 %1333 }
  0xb4   :  { %6374 = vst [vmem:[#allocation18_spill] sm:$0xff] %v4165_v19  ;;  %v4168_v57 = vpop.permute.xlu0 %196  ;;  %v620_v42 = vsel %vm254_vm1, %v618_v7, %v619_v45  ;;  %v622_v54 = vsel %vm254_vm1, %v619_v45, %v621_v62  ;;  %v1680_v7 = vrot.slane %v1674_v5, 1  ;;  %v1681_v45 = vrot.slane %v1675_v16, 1 }
  0xb5   :  { %6375 = vst [vmem:[#allocation19_spill] sm:$0xff] %v4168_v57  ;;  %1617 = vrot.lane.b32.xlu1 %v1613_v18, %s3674_s19  ;;  %v654_v18 = vmul.f32 %v3915_v51, %v4201_v50 }
  0xb6   :  { %644 = vrot.lane.b32.xlu0 %v641_v53, %s3674_s19  ;;  %v1703_v53 = vsel %vm135_vm0, %v1700_v20, %v1702_v37  ;;  %v1676_v20 = vmul.f32 %v4155_v44, %v4051_v29  ;;  %v4254_v29 = vmul.f32 %v4061_v30, %v4084_v47 }
  0xb7   :  { %v4179_v4 = vpop.permute.xlu1 %1335  ;;  %v660_v1 = vrot.slane %v654_v18, 2 }
  0xb8   :  { %6376 = vst [vmem:[#allocation20_spill] sm:$0xff] %v4179_v4  ;;  %v4186_v8 = vpop.permute.xlu0 %198  ;;  %v1683_v62 = vrot.slane %v1676_v20, 1  ;;  %v1719_v5 = vrot.slane %v4254_v29, 1  ;;  %v1762_v20 = vmul.f32 %v4061_v30, %v4080_v46 }
  0xb9   :  { %6377 = vst [vmem:[#allocation21_spill] sm:$0xff] %v4186_v8  ;;  %646 = vrot.lane.b32.xlu1 %v643_v41, %s3674_s19  ;;  %v656_v41 = vmul.f32 %v4008_v55, %v4201_v50 }
  0xba   :  { %1666 = vrot.lane.b32.xlu0 %v1663_v25, %s3675_s20  ;;  %v661_v25 = vrot.slane %v655_v52, 2  ;;  %v1682_v52 = vsel %vm135_vm0, %v1680_v7, %v1681_v45  ;;  %v1763_v7 = vmul.f32 %v4155_v44, %v4080_v46  ;;  %v1768_v29 = vrot.slane %v1762_v20, 2 }
  0xbb   :  { %v4197_v24 = vpop.permute.xlu1 %294 }
  0xbc   :  { %6378 = vst [vmem:[#allocation22_spill] sm:$0xff] %v4197_v24  ;;  %v4199_v39 = vpop.permute.xlu0 %238  ;;  %v662_v23 = vsel %vm254_vm1, %v660_v1, %v661_v25 }
  0xbd   :  { %6379 = vst [vmem:[#allocation23_spill] sm:$0xff] %v4199_v39  ;;  %1668 = vrot.lane.b32.xlu1 %v1665_v9, %s3675_s20  ;;  %v663_v9 = vrot.slane %v656_v41, 2  ;;  %v1684_v41 = vsel %vm135_vm0, %v1681_v45, %v1683_v62 }
  0xbe   :  { %1619 = vrot.lane.b32.xlu0 %v1614_v31, %s3674_s19 }
  0xbf   :  { %v4206_v38 = vpop.permute.xlu1 %240  ;;  %v664_v37 = vsel %vm254_vm1, %v661_v25, %v663_v9  ;;  %v1761_v9 = vmul.f32 %v4049_v28, %v4080_v46 }
  0xc0   :  { %6380 = vst [vmem:[#allocation24_spill] sm:$0xff] %v4206_v38  ;;  %v4213_v48 = vpop.permute.xlu0 %1321 }
  0xc1   :  { %6381 = vst [vmem:[#allocation25_spill] sm:$0xff] %v4213_v48  ;;  %1704 = vrot.lane.b32.xlu1 %v1701_v35, %s3674_s19 }
  0xc2   :  { %623 = vrot.lane.b32.xlu0 %v620_v42, %s3675_s20  ;;  %v1712_v42 = vmul.f32 %v4049_v28, %v4084_v47 }
  0xc3   :  { %v4228_v61 = vpop.permute.xlu1 %1323 }
  0xc4   :  { %6382 = vst [vmem:[#allocation26_spill] sm:$0xff] %v4228_v61  ;;  %v4234_v31 = vpop.permute.xlu0 %296  ;;  %v1718_v25 = vrot.slane %v1712_v42, 1  ;;  %v1767_v42 = vrot.slane %v1761_v9, 2  ;;  %v1800_v9 = vmul.f32 %v4061_v30, %v4124_v15 }
  0xc5   :  { %6383 = vst [vmem:[#allocation27_spill] sm:$0xff] %v4234_v31  ;;  %1706 = vrot.lane.b32.xlu1 %v1703_v53, %s3674_s19  ;;  %v4262_v53 = vld [vmem:[%s6340_s2 + $0x38] sm:$0xff] }
  0xc6   :  { %625 = vrot.lane.b32.xlu0 %v622_v54, %s3675_s20  ;;  %v692_v1 = vmul.f32 %v4262_v53, %v4224_v60  ;;  %v1720_v45 = vsel %vm135_vm0, %v1718_v25, %v1719_v5  ;;  %v60_v25 = vstv %s4267_s17  ;;  %s4831_s17 = sld [smem:[#allocation2 + $0x3e]] }
  0xc7   :  { %v4242_v21 = vpop.permute.xlu1 %1345  ;;  %v1297_v4 = vmul.f32 %v3787_v27, %v60_v25 }
  0xc8   :  { %6384 = vst [vmem:[#allocation28_spill] sm:$0xff] %v4242_v21  ;;  %v4245_v35 = vpop.permute.xlu0 %336 }
  0xc9   :  { %6385 = vst [vmem:[#allocation29_spill] sm:$0xff] %v4245_v35  ;;  %695 = vrot.lane.b32.xlu1 %v691_v13, %s3675_s20  ;;  %v4278_v13 = vstv %s3323_s14  ;;  %s4499_s14 = sld [smem:[#allocation2 + $0x9]] }
  0xca   :  { %665 = vrot.lane.b32.xlu0 %v662_v23, %s3674_s19 }
  0xcb   :  { %v4256_v18 = vpop.permute.xlu1 %338 }
  0xcc   :  { %6386 = vst [vmem:[#allocation30_spill] sm:$0xff] %v4256_v18  ;;  %v4264_v54 = vpop.permute.xlu0 %1394  ;;  %v1801_v18 = vmul.f32 %v4155_v44, %v4124_v15 }
  0xcd   :  { %6387 = vst [vmem:[#allocation31_spill] sm:$0xff] %v4264_v54  ;;  %667 = vrot.lane.b32.xlu1 %v664_v37, %s3674_s19  ;;  %v719_v37 = vmul.f32 %v4222_v56, %v4278_v13  ;;  %v4328_v54 = vstv %s3283_s22  ;;  %s4550_s22 = sld [smem:[#allocation2 + $0xc]] }
  0xce   :  { %1685 = vrot.lane.b32.xlu0 %v1682_v52, %s3675_s20  ;;  %v1714_v52 = vmul.f32 %v4155_v44, %v4084_v47  ;;  %v1799_v47 = vmul.f32 %v4049_v28, %v4124_v15  ;;  %v130_v15 = vmul.f32 %v4328_v54, %v3735_v2  ;;  %v1808_v61 = vrot.slane %v1801_v18, 2 }
  0xcf   :  { %v4276_v16 = vpop.permute.xlu1 %1396 }
  0xd0   :  { %6388 = vst [vmem:[#allocation32_spill] sm:$0xff] %v4276_v16  ;;  %v4284_v23 = vpop.permute.xlu0 %1347  ;;  %v1769_v16 = vsel %vm254_vm1, %v1767_v42, %v1768_v29  ;;  %v137_v24 = vrot.slane %v130_v15, 1 }
  0xd1   :  { %6389 = vst [vmem:[#allocation33_spill] sm:$0xff] %v4284_v23  ;;  %1687 = vrot.lane.b32.xlu1 %v1684_v41, %s3675_s20  ;;  %v720_v41 = vmul.f32 %v4262_v53, %v4278_v13  ;;  %v4322_v23 = vstv %s3278_s21  ;;  %s4529_s21 = sld [smem:[#allocation2 + $0x3a]] }
  0xd2   :  { %697 = vrot.lane.b32.xlu0 %v692_v1, %s3675_s20  ;;  %v1770_v1 = vrot.slane %v1763_v7, 2  ;;  %v68_v35 = vmul.f32 %v4322_v23, %v3735_v2  ;;  %v67_v31 = vmul.f32 %v4322_v23, %v3728_v0  ;;  %v1301_v19 = vmul.f32 %v3787_v27, %v4322_v23 }
  0xd3   :  { %v4295_v62 = vpop.permute.xlu1 %1432 }
  0xd4   :  { %6390 = vst [vmem:[#allocation34_spill] sm:$0xff] %v4295_v62  ;;  %v4303_v46 = vpop.permute.xlu0 %315  ;;  %v1721_v62 = vrot.slane %v1714_v52, 1  ;;  %v1771_v42 = vsel %vm254_vm1, %v1768_v29, %v1770_v1  ;;  %v1805_v52 = vrot.slane %v1799_v47, 2  ;;  %v129_v1 = vmul.f32 %v4328_v54, %v3728_v0 }
  0xd5   :  { %6391 = vst [vmem:[#allocation35_spill] sm:$0xff] %v4303_v46  ;;  %1723 = vrot.lane.b32.xlu1 %v1720_v45, %s3674_s19  ;;  %v4320_v45 = vstv %s4274_s18  ;;  %v62_v46 = vmul.f32 %v60_v25, %v3735_v2  ;;  %v131_v47 = vmul.f32 %v4328_v54, %v3756_v12  ;;  %s4862_s18 = sld [smem:[#allocation2 + $0x1c]] }
  0xd6   :  { %723 = vrot.lane.b32.xlu0 %v719_v37, %s3674_s19  ;;  %v61_v37 = vmul.f32 %v60_v25, %v3728_v0  ;;  %v1722_v29 = vsel %vm135_vm0, %v1719_v5, %v1721_v62  ;;  %v4450_v34 = vadd.f32 %v1297_v4, %v4320_v45 }
  0xd7   :  { %v4316_v20 = vpop.permute.xlu1 %1434  ;;  %v139_v8 = vrot.slane %v131_v47, 1 }
  0xd8   :  { %6392 = vst [vmem:[#allocation36_spill] sm:$0xff] %v4316_v20  ;;  %v4324_v7 = vpop.permute.xlu0 %317  ;;  %v1806_v20 = vrot.slane %v1800_v9, 2  ;;  %6400 = vst [vmem:[#allocation44_spill] sm:$0xff] %v4450_v34 }
  0xd9   :  { %6393 = vst [vmem:[#allocation37_spill] sm:$0xff] %v4324_v7  ;;  %725 = vrot.lane.b32.xlu1 %v720_v41, %s3674_s19  ;;  %v4336_v7 = vstv %s4293_s23  ;;  %v4348_v41 = vstv %s4299_s24  ;;  %s4567_s23 = sld [smem:[#allocation2 + $0x2d]] }
  0xda   :  { %1772 = vrot.lane.b32.xlu0 %v1769_v16, %s3675_s20  ;;  %v4353_v16 = vstv %s4301_s25  ;;  %v705_v5 = vmul.f32 %v4222_v56, %v4336_v7  ;;  %v1807_v62 = vsel %vm254_vm1, %v1805_v52, %v1806_v20  ;;  %v781_v48 = vmul.f32 %v4222_v56, %v4348_v41  ;;  %s4573_s24 = sld [smem:[#allocation2 + $0x19]] }
  0xdb   :  { %v4344_v21 = vpop.permute.xlu1 %387  ;;  %v4375_v38 = vmul.f32 %v4262_v53, %v4348_v41  ;;  %v4384_v39 = vadd.f32 %v68_v35, %v4353_v16  ;;  %v4387_v52 = vadd.f32 %v67_v31, %v4353_v16  ;;  %v706_v15 = vmul.f32 %v4262_v53, %v4336_v7  ;;  %s5364_s25 = sld [smem:[#allocation2 + $0x39]] }
  0xdc   :  { %6394 = vst [vmem:[#allocation38_spill] sm:$0xff] %v4344_v21  ;;  %v4361_v9 = vpop.permute.xlu0 %357  ;;  %v4364_v21 = vstv %s4305_s26  ;;  %s5371_s26 = sld [smem:[#allocation2 + $0x43]] }
  0xdd   :  { %6395 = vst [vmem:[#allocation39_spill] sm:$0xff] %v4361_v9  ;;  %1774 = vrot.lane.b32.xlu1 %v1771_v42, %s3675_s20  ;;  %v4378_v9 = vadd.f32 %v61_v37, %v4320_v45  ;;  %v4381_v42 = vadd.f32 %v62_v46, %v4320_v45  ;;  %v147_v46 = vmul.f32 %v4364_v21, %v3728_v0  ;;  %v4403_v37 = vstv %s4330_s27  ;;  %s4588_s27 = sld [smem:[#allocation2 + $0x3b]] }
  0xde   :  { %1725 = vrot.lane.b32.xlu0 %v1722_v29, %s3674_s19  ;;  %v136_v29 = vrot.slane %v129_v1, 1  ;;  %v148_v35 = vmul.f32 %v4364_v21, %v3735_v2  ;;  %v149_v31 = vmul.f32 %v4364_v21, %v3756_v12  ;;  %v1809_v1 = vsel %vm254_vm1, %v1806_v20, %v1808_v61 }
  0xdf   :  { %v4389_v18 = vpop.permute.xlu1 %359  ;;  %v787_v0 = vrot.slane %v781_v48, 1  ;;  %v1298_v2 = vmul.f32 %v3799_v33, %v60_v25  ;;  %v4417_v12 = vstv %s4350_s28  ;;  %v4427_v20 = vsel %vm135_vm0, %v137_v24, %v139_v8  ;;  %v3599_v33 = vld [vmem:[%s6340_s2] sm:$0xff]  ;;  %v3600_v25 = vld [vmem:[%s6340_s2 + $0x8] sm:$0xff] }
  0xe0   :  { %6396 = vst [vmem:[#allocation40_spill] sm:$0xff] %v4389_v18  ;;  %v4392_v57 = vpop.permute.xlu0 %1413  ;;  %v4424_v61 = vsel %vm135_vm0, %v136_v29, %v137_v24  ;;  %v248_v48 = vmul.f32 %v3599_v33, %v4403_v37  ;;  %v4437_v47 = vmul.f32 %v3600_v25, %v4403_v37  ;;  %v4444_v8 = vld [vmem:[%s6340_s2 + $0x40] sm:$0x3]  ;;  %v153_v24 = vrot.slane %v147_v46, 1 }
  0xe1   :  { %6397 = vst [vmem:[#allocation41_spill] sm:$0xff] %v4392_v57  ;;  %1810 = vrot.lane.b32.xlu1 %v1807_v62, %s3674_s19  ;;  %v1780_v62 = vmul.f32 %v4049_v28, %v4170_v59  ;;  %v154_v29 = vrot.slane %v148_v35, 1  ;;  %v156_v18 = vrot.slane %v149_v31, 1  ;;  %v733_v46 = vmul.f32 %v4222_v56, %v4417_v12 }
  0xe2   :  { %709 = vrot.lane.b32.xlu0 %v705_v5, %s3675_s20  ;;  %v1781_v5 = vmul.f32 %v4061_v30, %v4170_v59  ;;  %v1782_v35 = vmul.f32 %v4155_v44, %v4170_v59  ;;  %v4461_v27 = vadd.f32 %v1298_v2, %v4320_v45  ;;  %v255_v26 = vrot.slane %v248_v48, 2 }
  0xe3   :  { %v4414_v57 = vpop.permute.xlu1 %1415  ;;  %v1786_v4 = vrot.slane %v1780_v62, 2  ;;  %v4475_v45 = vstv %s4394_s29  ;;  %v4478_v2 = vsel %vm135_vm0, %v153_v24, %v154_v29  ;;  %v4481_v62 = vsel %vm135_vm0, %v154_v29, %v156_v18 }
  0xe4   :  { %6398 = vst [vmem:[#allocation42_spill] sm:$0xff] %v4414_v57  ;;  %v4439_v57 = vpop.permute.xlu0 %389  ;;  %6402 = vst [vmem:[#allocation45_spill] sm:$0xff] %v4461_v27  ;;  %v4490_v48 = vstv %s4406_s30  ;;  %v1818_v24 = vmul.f32 %v4049_v28, %v4201_v50  ;;  %v4497_v18 = vmul.f32 %v4061_v30, %v4201_v50  ;;  %s4980_s30 = sld [smem:[#allocation2 + $0x1d]] }
  0xe5   :  { %6399 = vst [vmem:[#allocation43_spill] sm:$0xff] %v4439_v57  ;;  %1812 = vrot.lane.b32.xlu1 %v1809_v1, %s3674_s19  ;;  %v6401_v57 = vrot.slane %v4375_v38, 1  ;;  %v1787_v1 = vrot.slane %v1781_v5, 2  ;;  %6405 = vst [vmem:[#allocation48_spill] sm:$0xff] %v4478_v2  ;;  %v4484_v5 = vadd.f32 %v1301_v19, %v4353_v16  ;;  %v825_v2 = vmul.f32 %v4444_v8, %v4475_v45 }
  0xe6   :  { %711 = vrot.lane.b32.xlu0 %v706_v15, %s3675_s20  ;;  %v783_v15 = vmul.f32 %v4444_v8, %v4348_v41  ;;  %6406 = vst [vmem:[#allocation49_spill] sm:$0xff] %v4481_v62  ;;  %v1824_v11 = vrot.slane %v1818_v24, 2 }
  0xe7   :  { %v789_v43 = vsel %vm135_vm0, %v787_v0, %v6401_v57  ;;  %v4463_v31 = vpop.permute.xlu1 %1451  ;;  %v256_v57 = vrot.slane %v4437_v47, 2  ;;  %v3601_v0 = vld [vmem:[%s6340_s2 + $0x10] sm:$0x3]  ;;  %6407 = vst [vmem:[#allocation50_spill] sm:$0xff] %v4484_v5  ;;  %v734_v47 = vmul.f32 %v4262_v53, %v4417_v12  ;;  %v4516_v5 = vld [vmem:[%s6340_s2 + $0x68] sm:$0xff] }
  0xe8   :  { %6403 = vst [vmem:[#allocation46_spill] sm:$0xff] %v4463_v31  ;;  %v250_v59 = vmul.f32 %v3601_v0, %v4403_v37  ;;  %v4472_v22 = vpop.permute.xlu0 %415  ;;  %v790_v29 = vrot.slane %v783_v15, 1  ;;  %v823_v31 = vmul.f32 %v4222_v56, %v4475_v45  ;;  %v4523_v15 = vld [vmem:[%s6340_s2 + $0x60] sm:$0xff]  ;;  %v268_v14 = vmul.f32 %v3601_v0, %v4490_v48 }
  0xe9   :  { %6404 = vst [vmem:[#allocation47_spill] sm:$0xff] %v4472_v22  ;;  %792 = vrot.lane.b32.xlu1 %v789_v43, %s3675_s20  ;;  %v1789_v22 = vrot.slane %v1782_v35, 2  ;;  %v1788_v43 = vsel %vm254_vm1, %v1786_v4, %v1787_v1  ;;  %v4511_v35 = vsel %vm254_vm1, %v255_v26, %v256_v57  ;;  %v1353_v27 = vmul.f32 %v4523_v15, %v4328_v54 }
  0xea   :  { %737 = vrot.lane.b32.xlu0 %v733_v46, %s3674_s19  ;;  %v4508_v46 = vmul.f32 %v4262_v53, %v4475_v45  ;;  %6409 = vst [vmem:[#allocation52_spill] sm:$0xff] %v4511_v35  ;;  %v258_v4 = vrot.slane %v250_v59, 2  ;;  %v1354_v26 = vmul.f32 %v4516_v5, %v4328_v54  ;;  %v1355_v35 = vmul.f32 %v3867_v17, %v4328_v54 }
  0xeb   :  { %v4501_v19 = vpop.permute.xlu1 %417  ;;  %v267_v59 = vmul.f32 %v3600_v25, %v4490_v48  ;;  %v1790_v62 = vsel %vm254_vm1, %v1787_v1, %v1789_v22  ;;  %v6412_v54 = vrot.slane %v4375_v38, 1  ;;  %v829_v25 = vrot.slane %v823_v31, 1 }
  0xec   :  { %6408 = vst [vmem:[#allocation51_spill] sm:$0xff] %v4501_v19  ;;  %v1302_v19 = vmul.f32 %v4516_v5, %v4322_v23  ;;  %v4527_v34 = vpop.permute.xlu0 %1500  ;;  %v266_v23 = vmul.f32 %v3599_v33, %v4490_v48  ;;  %v1368_v1 = vmul.f32 %v4523_v15, %v4364_v21  ;;  %v1369_v0 = vmul.f32 %v4516_v5, %v4364_v21 }
  0xed   :  { %6410 = vst [vmem:[#allocation53_spill] sm:$0xff] %v4527_v34  ;;  %739 = vrot.lane.b32.xlu1 %v734_v47, %s3674_s19  ;;  %v6346_v34 = vrot.slane %v4497_v18, 2  ;;  %v791_v33 = vsel %vm135_vm0, %v6412_v54, %v790_v29  ;;  %v830_v47 = vrot.slane %v4508_v46, 1  ;;  %v1370_v38 = vmul.f32 %v3867_v17, %v4364_v21 }
  0xee   :  { %1791 = vrot.lane.b32.xlu0 %v1788_v43, %s3675_s20  ;;  %v4553_v22 = vadd.f32 %v1302_v19, %v4353_v16  ;;  %v4564_v31 = vsel %vm254_vm1, %v256_v57, %v258_v4  ;;  %v1359_v43 = vrot.slane %v1353_v27, 1  ;;  %v1360_v29 = vrot.slane %v1354_v26, 1  ;;  %v4584_v4 = vld [vmem:[%s6340_s2 + $0x90] sm:$0xff] }
  0xef   :  { %v4544_v3 = vpop.permute.xlu1 %1502  ;;  %v1362_v46 = vrot.slane %v1355_v35, 1  ;;  %v272_v16 = vrot.slane %v266_v23, 2  ;;  %v273_v19 = vrot.slane %v267_v59, 2  ;;  %v1826_v17 = vsel %vm254_vm1, %v1824_v11, %v6346_v34 }
  0xf0   :  { %6411 = vst [vmem:[#allocation54_spill] sm:$0xff] %v4544_v3  ;;  %6413 = vst [vmem:[#allocation55_spill] sm:$0xff] %v4553_v22  ;;  %v4561_v24 = vpop.permute.xlu0 %1453  ;;  %v832_v21 = vrot.slane %v825_v2, 1  ;;  %v275_v57 = vrot.slane %v268_v14, 2  ;;  %v4576_v27 = vstv %s4499_s14  ;;  %v1820_v26 = vmul.f32 %v4155_v44, %v4201_v50  ;;  %s4790_s14 = sld [smem:[#allocation2 + $0x3d]] }
  0xf1   :  { %6414 = vst [vmem:[#allocation56_spill] sm:$0xff] %v4561_v24  ;;  %1793 = vrot.lane.b32.xlu1 %v1790_v62, %s3675_s20  ;;  %v831_v62 = vsel %vm135_vm0, %v829_v25, %v830_v47  ;;  %v1374_v11 = vrot.slane %v1368_v1, 1  ;;  %v1375_v2 = vrot.slane %v1369_v0, 1  ;;  %v1377_v14 = vrot.slane %v1370_v38, 1 }
  0xf2   :  { %794 = vrot.lane.b32.xlu0 %v791_v33, %s3675_s20  ;;  %v4593_v59 = vstv %s4529_s21  ;;  %v4596_v54 = vsel %vm135_vm0, %v1359_v43, %v1360_v29  ;;  %v4599_v33 = vsel %vm135_vm0, %v1360_v29, %v1362_v46  ;;  %v1459_v25 = vmul.f32 %v4523_v15, %v4403_v37  ;;  %v4622_v29 = vld [vmem:[%s6340_s2 + $0x98] sm:$0xff] }
  0xf3   :  { %v4578_v35 = vpop.permute.xlu1 %1538  ;;  %v4605_v50 = vmul.f32 %v4516_v5, %v4403_v37  ;;  %v4609_v1 = vsel %vm254_vm1, %v272_v16, %v273_v19  ;;  %v4613_v0 = vmul.f32 %v3915_v51, %v4576_v27  ;;  %v833_v38 = vsel %vm135_vm0, %v830_v47, %v832_v21 }
  0xf4   :  { %6415 = vst [vmem:[#allocation57_spill] sm:$0xff] %v4578_v35  ;;  %v4590_v23 = vpop.permute.xlu0 %401  ;;  %v1849_v43 = vmul.f32 %v4584_v4, %v4224_v60  ;;  %v4627_v16 = vstv %s4550_s22  ;;  %v802_v34 = vmul.f32 %v4222_v56, %v4593_v59  ;;  %v803_v47 = vmul.f32 %v4262_v53, %v4593_v59  ;;  %s5864_s22 = sld [smem:[#allocation2 + $0x3c]] }
  0xf5   :  { %6416 = vst [vmem:[#allocation58_spill] sm:$0xff] %v4590_v23  ;;  %1829 = vrot.lane.b32.xlu1 %v1826_v17, %s3674_s19  ;;  %6417 = vst [vmem:[#allocation59_spill] sm:$0xff] %v4613_v0  ;;  %v1827_v17 = vrot.slane %v1820_v26, 2  ;;  %v4634_v21 = vsel %vm254_vm1, %v273_v19, %v275_v57  ;;  %v4640_v24 = vsel %vm135_vm0, %v1375_v2, %v1377_v14  ;;  %v1465_v3 = vrot.slane %v1459_v25, 2  ;;  %v3604_v19 = vld [vmem:[%s6340_s2 + $0x70] sm:$0x3] }
  0xf6   :  { %834 = vrot.lane.b32.xlu0 %v831_v62, %s3674_s19  ;;  %6419 = vst [vmem:[#allocation61_spill] sm:$0xff] %v4634_v21  ;;  %v4637_v62 = vsel %vm135_vm0, %v1374_v11, %v1375_v2  ;;  %6421 = vst [vmem:[#allocation63_spill] sm:$0xff] %v4640_v24  ;;  %v1466_v35 = vrot.slane %v4605_v50, 2  ;;  %v1461_v57 = vmul.f32 %v3604_v19, %v4403_v37  ;;  %v4657_v2 = vstv %s4567_s23  ;;  %s4923_s23 = sld [smem:[#allocation2 + $0x33]] }
  0xf7   :  { %v4624_v46 = vpop.permute.xlu1 %1540  ;;  %6420 = vst [vmem:[#allocation62_spill] sm:$0xff] %v4637_v62  ;;  %v1850_v11 = vmul.f32 %v4622_v29, %v4224_v60  ;;  %v439_v14 = vmul.f32 %v3915_v51, %v4627_v16  ;;  %v804_v25 = vmul.f32 %v4444_v8, %v4593_v59  ;;  %v4665_v50 = vstv %s4573_s24 }
  0xf8   :  { %6418 = vst [vmem:[#allocation60_spill] sm:$0xff] %v4624_v46  ;;  %v4644_v46 = vmul.f32 %v3944_v10, %v4576_v27  ;;  %v4646_v26 = vpop.permute.xlu0 %403  ;;  %v6425_v37 = vrot.slane %v4497_v18, 2  ;;  %v808_v23 = vrot.slane %v802_v34, 1  ;;  %v809_v60 = vrot.slane %v803_v47, 1 }
  0xf9   :  { %6423 = vst [vmem:[#allocation65_spill] sm:$0xff] %v4646_v26  ;;  %836 = vrot.lane.b32.xlu1 %v833_v38, %s3674_s19  ;;  %v4673_v24 = vstv %s4588_s27  ;;  %v440_v51 = vmul.f32 %v3944_v10, %v4627_v16  ;;  %v1476_v18 = vmul.f32 %v3604_v19, %v4490_v48  ;;  %v1873_v34 = vmul.f32 %v4584_v4, %v4278_v13  ;;  %s3352_s27 = sld [smem:[#allocation2 + $0x21]] }
  0xfa   :  { %6422 = vst [vmem:[#allocation64_spill] sm:$0xff] %v4644_v46  ;;  %1853 = vrot.lane.b32.xlu0 %v1849_v43, %s3675_s20  ;;  %v1828_v38 = vsel %vm254_vm1, %v6425_v37, %v1827_v17  ;;  %v1474_v46 = vmul.f32 %v4523_v15, %v4490_v48  ;;  %v1468_v17 = vrot.slane %v1461_v57, 2  ;;  %v441_v47 = vmul.f32 %v4008_v55, %v4627_v16  ;;  %v4708_v57 = vld [vmem:[%s6340_s2 + $0x18] sm:$0xff] }
  0xfb   :  { %v4667_v26 = vpop.permute.xlu1 %484  ;;  %v899_v10 = vmul.f32 %v4222_v56, %v4665_v50  ;;  %v4696_v15 = vsel %vm254_vm1, %v1465_v3, %v1466_v35  ;;  %v844_v19 = vmul.f32 %v4222_v56, %v4673_v24  ;;  %v445_v3 = vrot.slane %v439_v14, 1 }
  0xfc   :  { %6424 = vst [vmem:[#allocation66_spill] sm:$0xff] %v4667_v26  ;;  %v4679_v43 = vpop.permute.xlu0 %429  ;;  %v1475_v26 = vmul.f32 %v4516_v5, %v4490_v48  ;;  %6427 = vst [vmem:[#allocation68_spill] sm:$0xff] %v4696_v15  ;;  %v811_v5 = vrot.slane %v804_v25, 1  ;;  %v4701_v48 = vmul.f32 %v4262_v53, %v4665_v50  ;;  %v810_v25 = vsel %vm135_vm0, %v808_v23, %v809_v60 }
  0xfd   :  { %6426 = vst [vmem:[#allocation67_spill] sm:$0xff] %v4679_v43  ;;  %1855 = vrot.lane.b32.xlu1 %v1850_v11, %s3675_s20  ;;  %v4712_v11 = vmul.f32 %v4708_v57, %v4657_v2  ;;  %v446_v43 = vrot.slane %v440_v51, 1  ;;  %v1480_v15 = vrot.slane %v1474_v46, 2  ;;  %v1483_v22 = vrot.slane %v1476_v18, 2 }
  0xfe   :  { %1831 = vrot.lane.b32.xlu0 %v1828_v38, %s3674_s19  ;;  %v845_v38 = vmul.f32 %v4262_v53, %v4673_v24  ;;  %v1481_v0 = vrot.slane %v1475_v26, 2  ;;  %v4722_v21 = vsel %vm254_vm1, %v1466_v35, %v1468_v17  ;;  %v448_v14 = vrot.slane %v441_v47, 1 }
  0xff   :  { %v4714_v37 = vpop.permute.xlu1 %431  ;;  %6430 = vst [vmem:[#allocation71_spill] sm:$0xff] %v4722_v21  ;;  %v905_v23 = vrot.slane %v899_v10, 2  ;;  %v812_v51 = vsel %vm135_vm0, %v809_v60, %v811_v5  ;;  %v906_v46 = vrot.slane %v4701_v48, 2  ;;  %v850_v26 = vrot.slane %v844_v19, 1  ;;  %v4746_v60 = vld [vmem:[%s6340_s2 + $0x20] sm:$0xff]  ;;  %v6466_v21 = vld [vmem:[#allocation17_spill] sm:$0xff] }
 0x100   :  { %6428 = vst [vmem:[#allocation69_spill] sm:$0xff] %v4714_v37  ;;  %v4719_v62 = vpop.permute.xlu0 %1519  ;;  %v1874_v37 = vmul.f32 %v4622_v29, %v4278_v13  ;;  %v846_v18 = vmul.f32 %v4444_v8, %v4673_v24  ;;  %v83_v35 = vadd.f32 %v4069_v36, %v4378_v9  ;;  %v851_v13 = vrot.slane %v845_v38, 1 }
 0x101   :  { %6429 = vst [vmem:[#allocation70_spill] sm:$0xff] %v4719_v62  ;;  %1877 = vrot.lane.b32.xlu1 %v1873_v34, %s3674_s19  ;;  %v901_v34 = vmul.f32 %v4444_v8, %v4665_v50  ;;  %v4741_v47 = vstv %s4675_s9  ;;  %v4750_v10 = vmul.f32 %v4746_v60, %v4657_v2  ;;  %v4753_v5 = vsel %vm135_vm0, %v445_v3, %v446_v43  ;;  %s5520_s9 = sld [smem:[#allocation2 + $0x44]] }
 0x102   :  { %813 = vrot.lane.b32.xlu0 %v810_v25, %s3675_s20  ;;  %6432 = vst [vmem:[#allocation73_spill] sm:$0xff] %v4753_v5  ;;  %v4756_v36 = vsel %vm254_vm1, %v1480_v15, %v1481_v0  ;;  %v4759_v9 = vsel %vm254_vm1, %v1481_v0, %v1483_v22  ;;  %v4764_v19 = vsel %vm135_vm0, %v446_v43, %v448_v14  ;;  %v4774_v38 = vstv %s4693_s0  ;;  %s5572_s0 = sld [smem:[#allocation2 + $0x18]] }
 0x103   :  { %v4736_v17 = vpop.permute.xlu1 %1521  ;;  %6433 = vst [vmem:[#allocation74_spill] sm:$0xff] %v4756_v36  ;;  %6434 = vst [vmem:[#allocation75_spill] sm:$0xff] %v4759_v9  ;;  %v4769_v25 = vmul.f32 %v4049_v28, %v4576_v27  ;;  %v1861_v3 = vmul.f32 %v4584_v4, %v4336_v7  ;;  %v907_v22 = vsel %vm254_vm1, %v905_v23, %v906_v46  ;;  %v853_v0 = vrot.slane %v846_v18, 1 }
 0x104   :  { %6431 = vst [vmem:[#allocation72_spill] sm:$0xff] %v4736_v17  ;;  %v4761_v48 = vpop.permute.xlu0 %486  ;;  %6436 = vst [vmem:[#allocation77_spill] sm:$0xff] %v4764_v19  ;;  %v456_v43 = vmul.f32 %v4708_v57, %v4741_v47  ;;  %v457_v15 = vmul.f32 %v4746_v60, %v4741_v47  ;;  %v852_v17 = vsel %vm135_vm0, %v850_v26, %v851_v13 }
 0x105   :  { %6435 = vst [vmem:[#allocation76_spill] sm:$0xff] %v4761_v48  ;;  %1879 = vrot.lane.b32.xlu1 %v1874_v37, %s3674_s19  ;;  %6437 = vst [vmem:[#allocation78_spill] sm:$0xff] %v4769_v25  ;;  %v111_v37 = vadd.f32 %v4063_v32, %v83_v35  ;;  %v4788_v9 = vmul.f32 %v4061_v30, %v4576_v27  ;;  %v84_v23 = vadd.f32 %v4082_v63, %v4381_v42  ;;  %v4805_v27 = vld [vmem:[%s6340_s2 + $0xa0] sm:$0x3] }
 0x106   :  { %815 = vrot.lane.b32.xlu0 %v812_v51, %s3675_s20  ;;  %v908_v51 = vrot.slane %v901_v34, 2  ;;  %v941_v32 = vmul.f32 %v4222_v56, %v4774_v38  ;;  %v942_v35 = vmul.f32 %v4262_v53, %v4774_v38  ;;  %v458_v26 = vmul.f32 %v4008_v55, %v4741_v47 }
 0x107   :  { %v4783_v14 = vpop.permute.xlu1 %1557  ;;  %6439 = vst [vmem:[#allocation80_spill] sm:$0xff] %v4788_v9  ;;  %v1862_v63 = vmul.f32 %v4622_v29, %v4336_v7  ;;  %v4812_v42 = vmul.f32 %v4584_v4, %v4417_v12  ;;  %v943_v34 = vmul.f32 %v4444_v8, %v4774_v38  ;;  %v1927_v55 = vmul.f32 %v4584_v4, %v4348_v41 }
 0x108   :  { %6438 = vst [vmem:[#allocation79_spill] sm:$0xff] %v4783_v14  ;;  %v4794_v18 = vpop.permute.xlu0 %526  ;;  %v854_v9 = vsel %vm135_vm0, %v851_v13, %v853_v0  ;;  %v462_v25 = vrot.slane %v456_v43, 1  ;;  %v143_v7 = vadd.f32 %v4424_v61, %v111_v37  ;;  %v909_v14 = vsel %vm254_vm1, %v906_v46, %v908_v51 }
 0x109   :  { %6440 = vst [vmem:[#allocation81_spill] sm:$0xff] %v4794_v18  ;;  %910 = vrot.lane.b32.xlu1 %v907_v22, %s3675_s20  ;;  %v463_v18 = vrot.slane %v457_v15, 1  ;;  %v4821_v22 = vstv %s4732_s11  ;;  %v1928_v19 = vmul.f32 %v4622_v29, %v4348_v41  ;;  %v1929_v62 = vmul.f32 %v4805_v27, %v4348_v41  ;;  %s5132_s11 = sld [smem:[#allocation2 + $0x41]] }
 0x10a   :  { %855 = vrot.lane.b32.xlu0 %v852_v17, %s3674_s19  ;;  %v112_v17 = vadd.f32 %v4076_v40, %v84_v23  ;;  %v947_v0 = vrot.slane %v941_v32, 2  ;;  %v948_v43 = vrot.slane %v942_v35, 2  ;;  %v465_v61 = vrot.slane %v458_v26, 1 }
 0x10b   :  { %v4824_v48 = vpop.permute.xlu1 %528  ;;  %v98_v15 = vadd.f32 %v4094_v49, %v4384_v39  ;;  %v950_v46 = vrot.slane %v943_v34, 2  ;;  %v557_v37 = vmul.f32 %v4708_v57, %v4821_v22  ;;  %v4843_v41 = vmul.f32 %v4746_v60, %v4821_v22 }
 0x10c   :  { %6441 = vst [vmem:[#allocation82_spill] sm:$0xff] %v4824_v48  ;;  %v4834_v13 = vpop.permute.xlu0 %1581  ;;  %v4847_v40 = vsel %vm135_vm0, %v462_v25, %v463_v18  ;;  %v1933_v51 = vrot.slane %v1927_v55, 1  ;;  %v1965_v23 = vmul.f32 %v4584_v4, %v4475_v45  ;;  %v4853_v49 = vmul.f32 %v4622_v29, %v4475_v45 }
 0x10d   :  { %6442 = vst [vmem:[#allocation83_spill] sm:$0xff] %v4834_v13  ;;  %857 = vrot.lane.b32.xlu1 %v854_v9, %s3674_s19  ;;  %6443 = vst [vmem:[#allocation84_spill] sm:$0xff] %v4847_v40  ;;  %v97_v39 = vadd.f32 %v4101_v58, %v4387_v52  ;;  %v1934_v32 = vrot.slane %v1928_v19, 1  ;;  %v1936_v35 = vrot.slane %v1929_v62, 1  ;;  %v4860_v26 = vstv %s4790_s14  ;;  %v6469_v40 = vld [vmem:[#allocation52_spill] sm:$0xff] }
 0x10e   :  { %1865 = vrot.lane.b32.xlu0 %v1861_v3, %s3675_s20  ;;  %v144_v25 = vadd.f32 %v4427_v20, %v112_v17  ;;  %v949_v34 = vsel %vm254_vm1, %v947_v0, %v948_v43  ;;  %v4869_v55 = vsel %vm135_vm0, %v463_v18, %v465_v61  ;;  %v4873_v58 = vmul.f32 %v4622_v29, %v4417_v12  ;;  %v6455_v0 = vld [vmem:[#allocation12_spill] sm:$0xff] }
 0x10f   :  { %v4857_v9 = vpop.permute.xlu1 %1583  ;;  %6446 = vst [vmem:[#allocation87_spill] sm:$0xff] %v4869_v55  ;;  %v125_v52 = vadd.f32 %v4112_v6, %v97_v39  ;;  %v951_v62 = vsel %vm254_vm1, %v948_v43, %v950_v46  ;;  %v563_v19 = vrot.slane %v557_v37, 2  ;;  %v564_v20 = vrot.slane %v4843_v41, 2  ;;  %v6448_v6 = vld [vmem:[#allocation11_spill] sm:$0xff]  ;;  %v6452_v39 = vld [vmem:[#allocation13_spill] sm:$0xff]  ;;  %v6460_v55 = vld [vmem:[#allocation44_spill] sm:$0xff] }
 0x110   :  { %6444 = vst [vmem:[#allocation85_spill] sm:$0xff] %v4857_v9  ;;  %v4865_v3 = vpop.permute.xlu0 %1559  ;;  %v4882_v18 = vmul.f32 %v4049_v28, %v4657_v2  ;;  %v1971_v17 = vrot.slane %v1965_v23, 1  ;;  %v920_v12 = vmul.f32 %v4222_v56, %v4860_v26  ;;  %v181_v61 = vadd.f32 %v6448_v6, %v143_v7  ;;  %v4906_v7 = vld [vmem:[%s6340_s2 + $0x28] sm:$0x3] }
 0x111   :  { %6445 = vst [vmem:[#allocation86_spill] sm:$0xff] %v4865_v3  ;;  %1867 = vrot.lane.b32.xlu1 %v1862_v63, %s3675_s20  ;;  %v1935_v43 = vsel %vm135_vm0, %v1933_v51, %v1934_v32  ;;  %v1937_v46 = vsel %vm135_vm0, %v1934_v32, %v1936_v35  ;;  %v4893_v37 = vstv %s4831_s17  ;;  %v921_v28 = vmul.f32 %v4262_v53, %v4860_v26  ;;  %v6453_v35 = vld [vmem:[#allocation48_spill] sm:$0xff] }
 0x112   :  { %912 = vrot.lane.b32.xlu0 %v909_v14, %s3675_s20  ;;  %6447 = vst [vmem:[#allocation88_spill] sm:$0xff] %v4882_v18  ;;  %v4901_v41 = vmul.f32 %v4061_v30, %v4657_v2  ;;  %v559_v51 = vmul.f32 %v4906_v7, %v4821_v22  ;;  %v1967_v23 = vmul.f32 %v4805_v27, %v4475_v45  ;;  %v6456_v45 = vrot.slane %v4853_v49, 1 }
 0x113   :  { %v4888_v63 = vpop.permute.xlu1 %1605  ;;  %v126_v32 = vadd.f32 %v6452_v39, %v98_v15  ;;  %v4914_v6 = vadd.f32 %v6453_v35, %v125_v52  ;;  %v4919_v30 = vsel %vm254_vm1, %v563_v19, %v564_v20  ;;  %v922_v2 = vmul.f32 %v4444_v8, %v4860_v26  ;;  %v4937_v19 = vld [vmem:[%s6340_s2 + $0x48] sm:$0xff] }
 0x114   :  { %6449 = vst [vmem:[#allocation11_spill] sm:$0xff] %v4888_v63  ;;  %v4895_v14 = vpop.permute.xlu0 %505  ;;  %6451 = vst [vmem:[#allocation90_spill] sm:$0xff] %v4901_v41  ;;  %v182_v41 = vadd.f32 %v6455_v0, %v144_v25  ;;  %v1973_v15 = vsel %vm135_vm0, %v1971_v17, %v6456_v45  ;;  %v926_v52 = vrot.slane %v920_v12, 2  ;;  %v4940_v35 = vstv %s4862_s18  ;;  %v4954_v0 = vld [vmem:[%s6340_s2 + $0x80] sm:$0xff] }
 0x115   :  { %6450 = vst [vmem:[#allocation89_spill] sm:$0xff] %v4895_v14  ;;  %1889 = vrot.lane.b32.xlu1 %v4812_v42, %s3674_s19  ;;  %6454 = vst [vmem:[#allocation13_spill] sm:$0xff] %v4919_v30  ;;  %v962_v42 = vmul.f32 %v4222_v56, %v4893_v37  ;;  %v963_v25 = vmul.f32 %v4262_v53, %v4893_v37  ;;  %v4958_v12 = vmul.f32 %v4954_v0, %v4627_v16  ;;  %v6459_v30 = vld [vmem:[#allocation49_spill] sm:$0xff] }
 0x116   :  { %952 = vrot.lane.b32.xlu0 %v949_v34, %s3674_s19  ;;  %v4947_v34 = vld [vmem:[%s6340_s2 + $0x78] sm:$0xff]  ;;  %v566_v3 = vrot.slane %v559_v51, 2  ;;  %v1974_v9 = vrot.slane %v1967_v23, 1  ;;  %v964_v63 = vmul.f32 %v4444_v8, %v4893_v37  ;;  %v4965_v13 = vadd.f32 %v6459_v30, %v126_v32  ;;  %v6462_v51 = vld [vmem:[#allocation15_spill] sm:$0xff] }
 0x117   :  { %v4932_v39 = vpop.permute.xlu1 %1607  ;;  %v1625_v17 = vmul.f32 %v4947_v34, %v4627_v16  ;;  %v929_v18 = vrot.slane %v922_v2, 2  ;;  %v1946_v48 = vmul.f32 %v4584_v4, %v4593_v59  ;;  %v1947_v5 = vmul.f32 %v4622_v29, %v4593_v59 }
 0x118   :  { %6457 = vst [vmem:[#allocation48_spill] sm:$0xff] %v4932_v39  ;;  %v4960_v45 = vpop.permute.xlu0 %507  ;;  %v927_v39 = vrot.slane %v921_v28, 2  ;;  %v223_v23 = vadd.f32 %v6462_v51, %v181_v61  ;;  %v4978_v32 = vmul.f32 %v4937_v19, %v4940_v35  ;;  %v968_v30 = vrot.slane %v962_v42, 2 }
 0x119   :  { %6458 = vst [vmem:[#allocation12_spill] sm:$0xff] %v4960_v45  ;;  %954 = vrot.lane.b32.xlu1 %v951_v62, %s3674_s19  ;;  %v6461_v45 = vld [vmem:[#allocation14_spill] sm:$0xff]  ;;  %v969_v2 = vrot.slane %v963_v25, 2  ;;  %v1631_v36 = vrot.slane %v1625_v17, 1  ;;  %v1632_v14 = vrot.slane %v4958_v12, 1  ;;  %v971_v42 = vrot.slane %v964_v63, 2 }
 0x11a   :  { %v1315_v28 = vadd.f32 %v6461_v45, %v6460_v55  ;;  %1938 = vrot.lane.b32.xlu0 %v1935_v43, %s3675_s20  ;;  %v1627_v55 = vmul.f32 %v4155_v44, %v4627_v16  ;;  %v928_v43 = vsel %vm254_vm1, %v926_v52, %v927_v39  ;;  %v4991_v45 = vsel %vm254_vm1, %v564_v20, %v566_v3  ;;  %v6467_v44 = vld [vmem:[#allocation45_spill] sm:$0xff]  ;;  %v6468_v16 = vld [vmem:[#allocation16_spill] sm:$0xff] }
 0x11b   :  { %v4982_v62 = vpop.permute.xlu1 %602  ;;  %6465 = vst [vmem:[#allocation14_spill] sm:$0xff] %v4991_v45  ;;  %v1948_v51 = vmul.f32 %v4805_v27, %v4593_v59  ;;  %v1952_v25 = vrot.slane %v1946_v48, 1  ;;  %v1953_v17 = vrot.slane %v1947_v5, 1  ;;  %v4998_v12 = vstv %s4923_s23  ;;  %v6471_v48 = vld [vmem:[#allocation18_spill] sm:$0xff] }
 0x11c   :  { %6463 = vst [vmem:[#allocation49_spill] sm:$0xff] %v4982_v62  ;;  %v4987_v61 = vpop.permute.xlu0 %547  ;;  %v224_v62 = vadd.f32 %v6466_v21, %v182_v41  ;;  %v262_v52 = vadd.f32 %v6469_v40, %v223_v23  ;;  %v6470_v3 = vrot.slane %v4853_v49, 1  ;;  %v930_v21 = vsel %vm254_vm1, %v927_v39, %v929_v18  ;;  %v5021_v49 = vld [vmem:[%s6340_s2 + $0x50] sm:$0xff] }
 0x11d   :  { %6464 = vst [vmem:[#allocation44_spill] sm:$0xff] %v4987_v61  ;;  %1940 = vrot.lane.b32.xlu1 %v1937_v46, %s3675_s20  ;;  %v1316_v61 = vadd.f32 %v6468_v16, %v6467_v44  ;;  %v1339_v5 = vadd.f32 %v6471_v48, %v1315_v28  ;;  %v970_v63 = vsel %vm254_vm1, %v968_v30, %v969_v2  ;;  %v1634_v40 = vrot.slane %v1627_v55, 1 }
 0x11e   :  { %1891 = vrot.lane.b32.xlu0 %v4873_v58, %s3674_s19  ;;  %v1975_v59 = vsel %vm135_vm0, %v6470_v3, %v1974_v9  ;;  %v5016_v46 = vsel %vm135_vm0, %v1631_v36, %v1632_v14  ;;  %v1955_v58 = vrot.slane %v1948_v51, 1  ;;  %v574_v18 = vmul.f32 %v4708_v57, %v4998_v12  ;;  %v6474_v57 = vld [vmem:[#allocation19_spill] sm:$0xff] }
 0x11f   :  { %v5012_v20 = vpop.permute.xlu1 %549  ;;  %6472 = vst [vmem:[#allocation15_spill] sm:$0xff] %v5016_v46  ;;  %v575_v41 = vmul.f32 %v4746_v60, %v4998_v12  ;;  %v1984_v36 = vmul.f32 %v4584_v4, %v4673_v24  ;;  %v5032_v39 = vadd.f32 %v4564_v31, %v224_v62  ;;  %v972_v28 = vsel %vm254_vm1, %v969_v2, %v971_v42 }
 0x120   :  { %v5023_v9 = vpop.permute.xlu0 %1593  ;;  %v5037_v23 = vsel %vm135_vm0, %v1952_v25, %v1953_v17  ;;  %v5041_v30 = vmul.f32 %v4622_v29, %v4673_v24  ;;  %v202_v60 = vadd.f32 %v6474_v57, %v4914_v6  ;;  %v5048_v31 = vmul.f32 %v5021_v49, %v4940_v35 }
 0x121   :  { %6473 = vst [vmem:[#allocation17_spill] sm:$0xff] %v5023_v9  ;;  %1976 = vrot.lane.b32.xlu1 %v1973_v15, %s3674_s19  ;;  %v5051_v62 = vstv %s4980_s30  ;;  %v576_v15 = vmul.f32 %v4906_v7, %v4998_v12  ;;  %v5056_v2 = vadd.f32 %v4596_v54, %v1339_v5  ;;  %v5061_v42 = vsel %vm135_vm0, %v1632_v14, %v1634_v40  ;;  %v6478_v14 = vld [vmem:[#allocation20_spill] sm:$0xff] }
 0x122   :  { %931 = vrot.lane.b32.xlu0 %v928_v43, %s3675_s20  ;;  %6476 = vst [vmem:[#allocation16_spill] sm:$0xff] %v5061_v42  ;;  %v2033_v6 = vmul.f32 %v4584_v4, %v4665_v50  ;;  %v2034_v43 = vmul.f32 %v4622_v29, %v4665_v50  ;;  %v5072_v7 = vsel %vm135_vm0, %v1953_v17, %v1955_v58  ;;  %v580_v54 = vrot.slane %v574_v18, 2 }
 0x123   :  { %v5058_v55 = vpop.permute.xlu1 %1595  ;;  %v581_v25 = vrot.slane %v575_v41, 2  ;;  %v1990_v44 = vrot.slane %v1984_v36, 1  ;;  %v1340_v16 = vadd.f32 %v6478_v14, %v1316_v61  ;;  %v1991_v3 = vrot.slane %v5041_v30, 1 }
 0x124   :  { %6475 = vst [vmem:[#allocation45_spill] sm:$0xff] %v5058_v55  ;;  %v5069_v51 = vpop.permute.xlu0 %604  ;;  %v5081_v48 = vmul.f32 %v4937_v19, %v5051_v62  ;;  %v5085_v5 = vmul.f32 %v5021_v49, %v5051_v62  ;;  %v583_v17 = vrot.slane %v576_v15, 2  ;;  %v5089_v40 = vstv %s5009_s8  ;;  %s5473_s8 = sld [smem:[#allocation2 + $0x22]] }
 0x125   :  { %6477 = vst [vmem:[#allocation52_spill] sm:$0xff] %v5069_v51  ;;  %1978 = vrot.lane.b32.xlu1 %v1975_v59, %s3674_s19  ;;  %v2035_v61 = vmul.f32 %v4805_v27, %v4665_v50  ;;  %v1986_v59 = vmul.f32 %v4805_v27, %v4673_v24  ;;  %v2039_v18 = vrot.slane %v2033_v6, 2  ;;  %v2040_v41 = vrot.slane %v2034_v43, 2  ;;  %v6482_v43 = vld [vmem:[#allocation22_spill] sm:$0xff]  ;;  %v6503_v51 = vld [vmem:[#allocation29_spill] sm:$0xff] }
 0x126   :  { %933 = vrot.lane.b32.xlu0 %v930_v21, %s3675_s20  ;;  %v1640_v36 = vmul.f32 %v4947_v34, %v4741_v47  ;;  %v5101_v30 = vmul.f32 %v4954_v0, %v4741_v47  ;;  %v6480_v21 = vld [vmem:[#allocation21_spill] sm:$0xff]  ;;  %v5108_v50 = vsel %vm254_vm1, %v580_v54, %v581_v25  ;;  %v2071_v24 = vmul.f32 %v4584_v4, %v4774_v38 }
 0x127   :  { %v5095_v58 = vpop.permute.xlu1 %1617  ;;  %v203_v57 = vadd.f32 %v6480_v21, %v4965_v13  ;;  %v5114_v6 = vmul.f32 %v4622_v29, %v4774_v38  ;;  %v300_v14 = vadd.f32 %v6482_v43, %v262_v52  ;;  %v5118_v55 = vadd.f32 %v4599_v33, %v1340_v16  ;;  %v6484_v21 = vld [vmem:[#allocation23_spill] sm:$0xff] }
 0x128   :  { %6479 = vst [vmem:[#allocation18_spill] sm:$0xff] %v5095_v58  ;;  %v5105_v15 = vpop.permute.xlu0 %644  ;;  %v1992_v13 = vsel %vm135_vm0, %v1990_v44, %v1991_v3  ;;  %v5125_v54 = vmul.f32 %v4222_v56, %v5089_v40  ;;  %v244_v42 = vadd.f32 %v6484_v21, %v202_v60  ;;  %v5130_v52 = vsel %vm254_vm1, %v581_v25, %v583_v17  ;;  %v6491_v21 = vld [vmem:[#allocation25_spill] sm:$0xff] }
 0x129   :  { %6481 = vst [vmem:[#allocation19_spill] sm:$0xff] %v5105_v15  ;;  %1003 = vrot.lane.b32.xlu1 %v4978_v32, %s3675_s20  ;;  %v2042_v33 = vrot.slane %v2035_v61, 2  ;;  %v1993_v16 = vrot.slane %v1986_v59, 1  ;;  %v6485_v32 = vld [vmem:[#allocation24_spill] sm:$0xff]  ;;  %v5138_v46 = vsel %vm254_vm1, %v2039_v18, %v2040_v41  ;;  %v1646_v56 = vrot.slane %v1640_v36, 1 }
 0x12a   :  { %6483 = vst [vmem:[#allocation20_spill] sm:$0xff] %v5125_v54  ;;  %973 = vrot.lane.b32.xlu0 %v970_v63, %s3674_s19  ;;  %v245_v43 = vadd.f32 %v6485_v32, %v203_v57  ;;  %v1647_v54 = vrot.slane %v5101_v30, 1  ;;  %v2077_v63 = vrot.slane %v2071_v24, 2  ;;  %v2078_v25 = vrot.slane %v5114_v6, 2  ;;  %v5156_v59 = vld [vmem:[%s6340_s2 + $0x88] sm:$0x3] }
 0x12b   :  { %v5135_v44 = vpop.permute.xlu1 %646  ;;  %v5145_v17 = vstv %s5067_s1  ;;  %v5148_v61 = vstv %s5074_s10  ;;  %v1642_v18 = vmul.f32 %v5156_v59, %v4741_v47  ;;  %v2073_v36 = vmul.f32 %v4805_v27, %v4774_v38  ;;  %v6490_v6 = vld [vmem:[#allocation50_spill] sm:$0xff]  ;;  %s5651_s1 = sld [smem:[#allocation2 + $0x23]] }
 0x12c   :  { %6486 = vst [vmem:[#allocation21_spill] sm:$0xff] %v5135_v44  ;;  %v5141_v60 = vpop.permute.xlu0 %1666  ;;  %6488 = vst [vmem:[#allocation23_spill] sm:$0xff] %v5145_v17  ;;  %v1731_v30 = vmul.f32 %v4947_v34, %v4821_v22  ;;  %v1732_v57 = vmul.f32 %v4954_v0, %v4821_v22  ;;  %v5174_v24 = vsel %vm254_vm1, %v2040_v41, %v2042_v33  ;;  %v6502_v44 = vld [vmem:[#allocation27_spill] sm:$0xff]  ;;  %v5241_v9 = vstv %s5150_s12  ;;  %s5745_s12 = sld [smem:[#allocation2 + $0x46]] }
 0x12d   :  { %6487 = vst [vmem:[#allocation22_spill] sm:$0xff] %v5141_v60  ;;  %6489 = vst [vmem:[#allocation24_spill] sm:$0xff] %v5148_v61  ;;  %975 = vrot.lane.b32.xlu1 %v972_v28, %s3674_s19  ;;  %v5169_v28 = vadd.f32 %v4609_v1, %v244_v42  ;;  %v5177_v47 = vsel %vm135_vm0, %v1991_v3, %v1993_v16  ;;  %v1733_v38 = vmul.f32 %v5156_v59, %v4821_v22  ;;  %v6494_v3 = vld [vmem:[#allocation61_spill] sm:$0xff] }
 0x12e   :  { %1957 = vrot.lane.b32.xlu0 %v5037_v23, %s3675_s20  ;;  %v1327_v32 = vadd.f32 %v6491_v21, %v6490_v6  ;;  %v5186_v1 = vsel %vm135_vm0, %v1646_v56, %v1647_v54  ;;  %v1089_v23 = vmul.f32 %v4937_v19, %v5148_v61  ;;  %v5192_v42 = vmul.f32 %v5021_v49, %v5148_v61 }
 0x12f   :  { %v5183_v60 = vpop.permute.xlu1 %1668  ;;  %6493 = vst [vmem:[#allocation25_spill] sm:$0xff] %v5186_v1  ;;  %v5195_v41 = vadd.f32 %v6494_v3, %v245_v43  ;;  %v5200_v33 = vsel %vm254_vm1, %v2077_v63, %v2078_v25  ;;  %v5204_v16 = vmul.f32 %v4937_v19, %v5145_v17  ;;  %v5208_v56 = vmul.f32 %v4262_v53, %v5089_v40 }
 0x130   :  { %6492 = vst [vmem:[#allocation50_spill] sm:$0xff] %v5183_v60  ;;  %v5197_v22 = vpop.permute.xlu0 %1619  ;;  %v1649_v6 = vrot.slane %v1642_v18, 1  ;;  %v2080_v21 = vrot.slane %v2073_v36, 2  ;;  %v1737_v43 = vrot.slane %v1731_v30, 2  ;;  %v1738_v3 = vrot.slane %v1732_v57, 2  ;;  %v6498_v18 = vld [vmem:[#allocation55_spill] sm:$0xff] }
 0x131   :  { %6495 = vst [vmem:[#allocation61_spill] sm:$0xff] %v5197_v22  ;;  %6496 = vst [vmem:[#allocation91_spill] sm:$0xff] %v5208_v56  ;;  %1959 = vrot.lane.b32.xlu1 %v5072_v7, %s3675_s20  ;;  %v5217_v63 = vstv %s5132_s11  ;;  %v2052_v22 = vmul.f32 %v4584_v4, %v4860_v26  ;;  %v5223_v53 = vmul.f32 %v4622_v29, %v4860_v26  ;;  %v1740_v7 = vrot.slane %v1733_v38, 2  ;;  %v6499_v36 = vld [vmem:[#allocation26_spill] sm:$0xff]  ;;  %v6500_v57 = vld [vmem:[#allocation28_spill] sm:$0xff] }
 0x132   :  { %1005 = vrot.lane.b32.xlu0 %v5048_v31, %s3675_s20  ;;  %6497 = vst [vmem:[#allocation92_spill] sm:$0xff] %v5217_v63  ;;  %v1328_v30 = vadd.f32 %v6499_v36, %v6498_v18  ;;  %v1351_v60 = vadd.f32 %v6500_v57, %v1327_v32  ;;  %v1095_v1 = vrot.slane %v1089_v23, 1  ;;  %v6347_v31 = vrot.slane %v5192_v42, 1  ;;  %6504 = vst [vmem:[#allocation26_spill] sm:$0xff] %v5241_v9  ;;  %v6510_v18 = vld [vmem:[#allocation62_spill] sm:$0xff] }
 0x133   :  { %v5228_v56 = vpop.permute.xlu1 %1704  ;;  %v301_v15 = vadd.f32 %v6502_v44, %v5032_v39  ;;  %v342_v58 = vadd.f32 %v6503_v51, %v300_v14  ;;  %v5238_v38 = vmul.f32 %v5021_v49, %v5145_v17  ;;  %v5245_v32 = vsel %vm135_vm0, %v1647_v54, %v1649_v6  ;;  %v6509_v6 = vld [vmem:[#allocation30_spill] sm:$0xff] }
 0x134   :  { %6501 = vst [vmem:[#allocation55_spill] sm:$0xff] %v5228_v56  ;;  %v5234_v45 = vpop.permute.xlu0 %623  ;;  %6505 = vst [vmem:[#allocation28_spill] sm:$0xff] %v5245_v32  ;;  %v5248_v23 = vsel %vm254_vm1, %v2078_v25, %v2080_v21  ;;  %v5252_v39 = vmul.f32 %v4937_v19, %v5217_v63  ;;  %v5255_v51 = vstv %s5166_s15  ;;  %v5260_v14 = vsel %vm254_vm1, %v1737_v43, %v1738_v3  ;;  %v5269_v25 = vld [vmem:[%s6340_s2 + $0x58] sm:$0x3]  ;;  %v5285_v43 = vld [vmem:[%s6340_s2 + $0x30] sm:$0xff]  ;;  %s5807_s15 = sld [smem:[#allocation2 + $0x47]] }
 0x135   :  { %1995 = vrot.lane.b32.xlu1 %v1992_v13, %s3674_s19  ;;  %6506 = vst [vmem:[#allocation27_spill] sm:$0xff] %v5255_v51  ;;  %6507 = vst [vmem:[#allocation29_spill] sm:$0xff] %v5260_v14  ;;  %v2058_v44 = vrot.slane %v2052_v22, 2  ;;  %v5264_v54 = vsel %vm254_vm1, %v1738_v3, %v1740_v7  ;;  %v343_v21 = vadd.f32 %v6509_v6, %v301_v15  ;;  %v6513_v15 = vld [vmem:[#allocation59_spill] sm:$0xff]  ;;  %v6521_v14 = vld [vmem:[#allocation64_spill] sm:$0xff] }
 0x136   :  { %1031 = vrot.lane.b32.xlu0 %v5081_v48, %s3674_s19  ;;  %6508 = vst [vmem:[#allocation93_spill] sm:$0xff] %v5264_v54  ;;  %v5273_v36 = vadd.f32 %v6510_v18, %v1351_v60  ;;  %v5280_v22 = vsel %vm135_vm0, %v1095_v1, %v6347_v31  ;;  %v5289_v3 = vmul.f32 %v5285_v43, %v5241_v9  ;;  %v5303_v1 = vld [vmem:[%s6340_s2 + $0x38] sm:$0xff]  ;;  %v5318_v31 = vstv %s5212_s16  ;;  %v6520_v32 = vld [vmem:[#allocation35_spill] sm:$0xff] }
 0x137   :  { %v5275_v48 = vpop.permute.xlu1 %1706  ;;  %v5292_v7 = vadd.f32 %v6513_v15, %v342_v58  ;;  %v5298_v57 = vmul.f32 %v5021_v49, %v5217_v63  ;;  %6515 = vst [vmem:[#allocation94_spill] sm:$0xff] %v5303_v1  ;;  %v5307_v6 = vmul.f32 %v5303_v1, %v5241_v9  ;;  %v747_v18 = vmul.f32 %v5285_v43, %v5255_v51  ;;  %v6518_v9 = vld [vmem:[#allocation31_spill] sm:$0xff] }
 0x138   :  { %6511 = vst [vmem:[#allocation30_spill] sm:$0xff] %v5275_v48  ;;  %6512 = vst [vmem:[#allocation62_spill] sm:$0xff] %v5289_v3  ;;  %v5294_v60 = vpop.permute.xlu0 %625  ;;  %v2054_v58 = vmul.f32 %v4805_v27, %v4860_v26  ;;  %v1091_v15 = vmul.f32 %v5269_v25, %v5148_v61  ;;  %v5322_v13 = vmul.f32 %v5303_v1, %v5255_v51 }
 0x139   :  { %6514 = vst [vmem:[#allocation59_spill] sm:$0xff] %v5294_v60  ;;  %6516 = vst [vmem:[#allocation95_spill] sm:$0xff] %v5307_v6  ;;  %1033 = vrot.lane.b32.xlu1 %v5085_v5, %s3674_s19  ;;  %v1400_v63 = vadd.f32 %v6518_v9, %v5056_v2  ;;  %v6519_v5 = vrot.slane %v5223_v53, 2  ;;  %v1746_v26 = vmul.f32 %v4947_v34, %v4998_v12  ;;  %v6526_v6 = vld [vmem:[#allocation37_spill] sm:$0xff] }
 0x13a   :  { %6517 = vst [vmem:[#allocation96_spill] sm:$0xff] %v5318_v31  ;;  %2044 = vrot.lane.b32.xlu0 %v5138_v46, %s3675_s20  ;;  %v1747_v61 = vmul.f32 %v4954_v0, %v4998_v12  ;;  %v321_v17 = vadd.f32 %v6520_v32, %v5169_v28  ;;  %v5340_v48 = vadd.f32 %v6521_v14, %v343_v21  ;;  %v753_v32 = vrot.slane %v747_v18, 1  ;;  %v6524_v14 = vld [vmem:[#allocation39_spill] sm:$0xff] }
 0x13b   :  { %v5331_v54 = vsel %vm254_vm1, %v2058_v44, %v6519_v5  ;;  %v5342_v9 = vpop.permute.xlu1 %695  ;;  %v2090_v46 = vmul.f32 %v4584_v4, %v4893_v37  ;;  %v1748_v2 = vmul.f32 %v5156_v59, %v4998_v12  ;;  %v5352_v34 = vmul.f32 %v4622_v29, %v4893_v37 }
 0x13c   :  { %6522 = vst [vmem:[#allocation31_spill] sm:$0xff] %v5342_v9  ;;  %v5348_v44 = vpop.permute.xlu0 %665  ;;  %v1131_v0 = vmul.f32 %v4937_v19, %v5318_v31  ;;  %v5358_v28 = vmul.f32 %v5021_v49, %v5318_v31  ;;  %v363_v21 = vadd.f32 %v6524_v14, %v321_v17  ;;  %v2061_v12 = vrot.slane %v2054_v58, 2  ;;  %v6525_v9 = vld [vmem:[#allocation33_spill] sm:$0xff]  ;;  %v6527_v17 = vld [vmem:[#allocation34_spill] sm:$0xff] }
 0x13d   :  { %6523 = vst [vmem:[#allocation35_spill] sm:$0xff] %v5348_v44  ;;  %2046 = vrot.lane.b32.xlu1 %v5174_v24, %s3675_s20  ;;  %v1098_v59 = vrot.slane %v1091_v15, 1  ;;  %v754_v5 = vrot.slane %v5322_v13, 1  ;;  %v1352_v56 = vadd.f32 %v6525_v9, %v1328_v30  ;;  %v322_v3 = vadd.f32 %v6526_v6, %v5195_v41  ;;  %v6528_v30 = vld [vmem:[#allocation40_spill] sm:$0xff] }
 0x13e   :  { %1997 = vrot.lane.b32.xlu0 %v5177_v47, %s3674_s19  ;;  %v1752_v18 = vrot.slane %v1746_v26, 2  ;;  %v1753_v60 = vrot.slane %v1747_v61, 2  ;;  %v1438_v24 = vadd.f32 %v6527_v17, %v1400_v63  ;;  %v2096_v15 = vrot.slane %v2090_v46, 2  ;;  %v6529_v6 = vld [vmem:[#allocation32_spill] sm:$0xff]  ;;  %v6530_v46 = vld [vmem:[#allocation63_spill] sm:$0xff] }
 0x13f   :  { %v5374_v58 = vpop.permute.xlu1 %667  ;;  %v1755_v13 = vrot.slane %v1748_v2, 2  ;;  %v749_v14 = vmul.f32 %v4444_v8, %v5255_v51  ;;  %v364_v9 = vadd.f32 %v6528_v30, %v322_v3  ;;  %v2097_v41 = vrot.slane %v5352_v34, 2 }
 0x140   :  { %v5379_v44 = vpop.permute.xlu0 %1685  ;;  %v1137_v47 = vrot.slane %v1131_v0, 1  ;;  %v1138_v61 = vrot.slane %v5358_v28, 1  ;;  %v1401_v26 = vadd.f32 %v6529_v6, %v5118_v55  ;;  %v379_v63 = vadd.f32 %v4712_v11, %v363_v21  ;;  %v6533_v28 = vld [vmem:[#allocation58_spill] sm:$0xff]  ;;  %v6539_v6 = vld [vmem:[#allocation65_spill] sm:$0xff] }
 0x141   :  { %2082 = vrot.lane.b32.xlu1 %v5200_v33, %s3674_s19  ;;  %v1133_v8 = vmul.f32 %v5269_v25, %v5318_v31  ;;  %v5391_v3 = vsel %vm135_vm0, %v753_v32, %v754_v5  ;;  %v5394_v2 = vadd.f32 %v6530_v46, %v1352_v56  ;;  %v6531_v34 = vrot.slane %v5223_v53, 2 }
 0x142   :  { %1017 = vrot.lane.b32.xlu0 %v5204_v16, %s3675_s20  ;;  %v6532_v11 = vrot.slane %v5192_v42, 1  ;;  %v5409_v0 = vsel %vm254_vm1, %v1752_v18, %v1753_v60  ;;  %v407_v56 = vadd.f32 %v6533_v28, %v379_v63  ;;  %v2092_v16 = vmul.f32 %v4805_v27, %v4893_v37  ;;  %v5432_v27 = vld [vmem:[%s6340_s2 + $0xa8] sm:$0xff] }
 0x143   :  { %v5401_v55 = vsel %vm254_vm1, %v6531_v34, %v2061_v12  ;;  %v5412_v32 = vpop.permute.xlu1 %1687  ;;  %v5417_v53 = vsel %vm254_vm1, %v1753_v60, %v1755_v13  ;;  %v756_v21 = vrot.slane %v749_v14, 1  ;;  %v6535_v12 = vld [vmem:[#allocation68_spill] sm:$0xff]  ;;  %v5424_v18 = vsel %vm254_vm1, %v2096_v15, %v2097_v41  ;;  %v6536_v37 = vld [vmem:[#allocation67_spill] sm:$0xff] }
 0x144   :  { %v5406_v33 = vsel %vm135_vm0, %v6532_v11, %v1098_v59  ;;  %6534 = vst [vmem:[#allocation64_spill] sm:$0xff] %v5417_v53  ;;  %v1472_v42 = vadd.f32 %v6535_v12, %v1438_v24  ;;  %v380_v59 = vadd.f32 %v4750_v10, %v364_v9  ;;  %v5421_v17 = vpop.permute.xlu0 %697  ;;  %v5427_v30 = vsel %vm135_vm0, %v1137_v47, %v1138_v61  ;;  %v6537_v13 = vld [vmem:[#allocation36_spill] sm:$0xff]  ;;  %v6538_v9 = vld [vmem:[#allocation41_spill] sm:$0xff]  ;;  %v6597_v53 = vld [vmem:[#allocation22_spill] sm:$0xff] }
 0x145   :  { %v435_v60 = vadd.f32 %v6536_v37, %v407_v56  ;;  %2084 = vrot.lane.b32.xlu1 %v5248_v23, %s3674_s19  ;;  %v1140_v24 = vrot.slane %v1133_v8, 1  ;;  %v5439_v10 = vmul.f32 %v4584_v4, %v5089_v40  ;;  %v5442_v15 = vstv %s5364_s25  ;;  %v6541_v23 = vld [vmem:[#allocation38_spill] sm:$0xff]  ;;  %v6543_v56 = vld [vmem:[#allocation69_spill] sm:$0xff]  ;;  %v6547_v37 = vld [vmem:[#allocation47_spill] sm:$0xff] }
 0x146   :  { %v1439_v14 = vadd.f32 %v6537_v13, %v1401_v26  ;;  %v1419_v47 = vadd.f32 %v6538_v9, %v5273_v36  ;;  %v408_v63 = vadd.f32 %v6539_v6, %v380_v59  ;;  %1019 = vrot.lane.b32.xlu0 %v5238_v38, %s3675_s20  ;;  %v5451_v46 = vstv %s5371_s26  ;;  %v6542_v36 = vld [vmem:[#allocation46_spill] sm:$0xff]  ;;  %v6548_v9 = vld [vmem:[#allocation84_spill] sm:$0xff] }
 0x147   :  { %6540 = vst [vmem:[#allocation39_spill] sm:$0xff] %v5451_v46  ;;  %v393_v8 = vadd.f32 %v6541_v23, %v5292_v7  ;;  %v5455_v34 = vpop.permute.xlu1 %1723  ;;  %v5459_v4 = vmul.f32 %v5432_v27, %v4940_v35  ;;  %v2099_v26 = vrot.slane %v2092_v16, 2  ;;  %v5462_v11 = vsel %vm135_vm0, %v754_v5, %v756_v21  ;;  %v5471_v7 = vld [vmem:[%s6340_s2 + $0xb0] sm:$0xff]  ;;  %v6546_v16 = vld [vmem:[#allocation43_spill] sm:$0xff] }
 0x148   :  { %v1457_v28 = vadd.f32 %v6542_v36, %v1419_v47  ;;  %v436_v12 = vadd.f32 %v6543_v56, %v408_v63  ;;  %v5466_v38 = vpop.permute.xlu0 %723  ;;  %v5477_v59 = vmul.f32 %v5285_v43, %v5442_v15  ;;  %v5481_v5 = vmul.f32 %v5303_v1, %v5442_v15  ;;  %v6549_v63 = vld [vmem:[#allocation71_spill] sm:$0xff]  ;;  %v6552_v56 = vld [vmem:[#allocation89_spill] sm:$0xff] }
 0x149   :  { %v394_v21 = vadd.f32 %v6546_v16, %v5340_v48  ;;  %v421_v13 = vadd.f32 %v6547_v37, %v393_v8  ;;  %v469_v47 = vadd.f32 %v6548_v9, %v435_v60  ;;  %1100 = vrot.lane.b32.xlu1 %v5280_v22, %s3675_s20  ;;  %v1110_v6 = vmul.f32 %v4937_v19, %v5451_v46  ;;  %v6551_v22 = vld [vmem:[#allocation51_spill] sm:$0xff] }
 0x14a   :  { %6544 = vst [vmem:[#allocation33_spill] sm:$0xff] %v5477_v59  ;;  %6545 = vst [vmem:[#allocation37_spill] sm:$0xff] %v5481_v5  ;;  %v1473_v23 = vadd.f32 %v6549_v63, %v1439_v14  ;;  %1045 = vrot.lane.b32.xlu0 %v5252_v39, %s3674_s19  ;;  %v5495_v36 = vsel %vm135_vm0, %v1138_v61, %v1140_v24  ;;  %v5499_v48 = vmul.f32 %v5021_v49, %v5451_v46  ;;  %v6553_v24 = vld [vmem:[#allocation74_spill] sm:$0xff]  ;;  %v6554_v9 = vld [vmem:[#allocation87_spill] sm:$0xff] }
 0x14b   :  { %v5503_v60 = vmul.f32 %v4622_v29, %v5089_v40  ;;  %v422_v8 = vadd.f32 %v6551_v22, %v394_v21  ;;  %v511_v16 = vadd.f32 %v6552_v56, %v469_v47  ;;  %v5507_v37 = vpop.permute.xlu1 %725  ;;  %v5511_v39 = vmul.f32 %v5471_v7, %v4940_v35  ;;  %v6555_v21 = vld [vmem:[#allocation53_spill] sm:$0xff]  ;;  %v6557_v56 = vld [vmem:[#allocation44_spill] sm:$0xff]  ;;  %v6596_v5 = vld [vmem:[#allocation90_spill] sm:$0xff] }
 0x14c   :  { %v5514_v61 = vsel %vm254_vm1, %v2097_v41, %v2099_v26  ;;  %v1487_v14 = vadd.f32 %v6553_v24, %v1457_v28  ;;  %v470_v63 = vadd.f32 %v6554_v9, %v436_v12  ;;  %v5518_v51 = vpop.permute.xlu0 %1772  ;;  %v1506_v47 = vadd.f32 %v6555_v21, %v1472_v42  ;;  %v6556_v22 = vld [vmem:[#allocation73_spill] sm:$0xff]  ;;  %v6558_v26 = vld [vmem:[#allocation70_spill] sm:$0xff]  ;;  %v6559_v12 = vld [vmem:[#allocation12_spill] sm:$0xff] }
 0x14d   :  { %6550 = vst [vmem:[#allocation34_spill] sm:$0xff] %v5503_v60  ;;  %v452_v35 = vadd.f32 %v6556_v22, %v421_v13  ;;  %v553_v31 = vadd.f32 %v6557_v56, %v511_v16  ;;  %1047 = vrot.lane.b32.xlu1 %v5298_v57, %s3674_s19  ;;  %v1116_v41 = vrot.slane %v1110_v6, 1  ;;  %v5536_v42 = vmul.f32 %v5269_v25, %v5451_v46  ;;  %v6560_v13 = vld [vmem:[#allocation42_spill] sm:$0xff]  ;;  %v6561_v21 = vld [vmem:[#allocation57_spill] sm:$0xff]  ;;  %v6566_v59 = vld [vmem:[#allocation56_spill] sm:$0xff] }
 0x14e   :  { %v1525_v28 = vadd.f32 %v6558_v26, %v1487_v14  ;;  %v512_v24 = vadd.f32 %v6559_v12, %v470_v63  ;;  %2063 = vrot.lane.b32.xlu0 %v5331_v54, %s3675_s20  ;;  %v1420_v16 = vadd.f32 %v6560_v13, %v5394_v2  ;;  %v1544_v57 = vadd.f32 %v6561_v21, %v1506_v47  ;;  %v6562_v22 = vld [vmem:[#allocation66_spill] sm:$0xff]  ;;  %v6563_v56 = vld [vmem:[#allocation77_spill] sm:$0xff]  ;;  %v6565_v54 = vld [vmem:[#allocation79_spill] sm:$0xff] }
 0x14f   :  { %v490_v6 = vadd.f32 %v6562_v22, %v452_v35  ;;  %v453_v14 = vadd.f32 %v6563_v56, %v422_v8  ;;  %v5543_v26 = vpop.permute.xlu1 %1774  ;;  %v6564_v63 = vld [vmem:[#allocation54_spill] sm:$0xff]  ;;  %v5551_v46 = vstv %s5473_s8  ;;  %v6567_v13 = vld [vmem:[#allocation76_spill] sm:$0xff]  ;;  %v6568_v21 = vld [vmem:[#allocation81_spill] sm:$0xff]  ;;  %v587_v8 = vadd.f32 %v5108_v50, %v553_v31 }
 0x150   :  { %v1507_v12 = vadd.f32 %v6564_v63, %v1473_v23  ;;  %v1563_v29 = vadd.f32 %v6565_v54, %v1525_v28  ;;  %v554_v40 = vadd.f32 %v5012_v20, %v512_v24  ;;  %v5548_v9 = vpop.permute.xlu0 %1725  ;;  %v1458_v2 = vadd.f32 %v6566_v59, %v1420_v16  ;;  %v6569_v23 = vld [vmem:[#allocation60_spill] sm:$0xff]  ;;  %v6571_v31 = vld [vmem:[#allocation82_spill] sm:$0xff] }
 0x151   :  { %v491_v47 = vadd.f32 %v6567_v13, %v453_v14  ;;  %v532_v35 = vadd.f32 %v6568_v21, %v490_v6  ;;  %2065 = vrot.lane.b32.xlu1 %v5401_v55, %s3675_s20  ;;  %v5564_v20 = vmul.f32 %v5432_v27, %v5051_v62  ;;  %v6570_v59 = vrot.slane %v5499_v48, 1  ;;  %v6572_v16 = vld [vmem:[#allocation78_spill] sm:$0xff]  ;;  %v6573_v14 = vld [vmem:[#allocation88_spill] sm:$0xff] }
 0x152   :  { %v1545_v28 = vadd.f32 %v6569_v23, %v1507_v12  ;;  %1102 = vrot.lane.b32.xlu0 %v5406_v33, %s3675_s20  ;;  %v1571_v22 = vadd.f32 %v6572_v16, %v1544_v57  ;;  %v629_v6 = vadd.f32 %v5234_v45, %v587_v8  ;;  %v5581_v56 = vmul.f32 %v5471_v7, %v5051_v62  ;;  %v6574_v57 = vld [vmem:[#allocation75_spill] sm:$0xff]  ;;  %v6576_v8 = vld [vmem:[#allocation13_spill] sm:$0xff] }
 0x153   :  { %v5569_v24 = vsel %vm135_vm0, %v1116_v41, %v6570_v59  ;;  %v533_v55 = vadd.f32 %v6571_v31, %v491_v47  ;;  %v5577_v33 = vpop.permute.xlu1 %1810  ;;  %v1575_v63 = vadd.f32 %v6573_v14, %v1563_v29  ;;  %v588_v41 = vadd.f32 %v5130_v52, %v554_v40  ;;  %v6575_v45 = vld [vmem:[#allocation83_spill] sm:$0xff]  ;;  %v6578_v29 = vld [vmem:[#allocation80_spill] sm:$0xff]  ;;  %v6579_v40 = vld [vmem:[#allocation17_spill] sm:$0xff] }
 0x154   :  { %v710_v12 = vpop.permute.xlu0 %709  ;;  %v5587_v54 = vmul.f32 %v4937_v19, %v5551_v46  ;;  %v5590_v13 = vstv %s5520_s9  ;;  %v1488_v47 = vadd.f32 %v6574_v57, %v1458_v2  ;;  %v1587_v21 = vadd.f32 %v6575_v45, %v1571_v22  ;;  %v6577_v59 = vld [vmem:[#allocation35_spill] sm:$0xff]  ;;  %v6581_v22 = vld [vmem:[#allocation72_spill] sm:$0xff]  ;;  %v6583_v45 = vld [vmem:[#allocation49_spill] sm:$0xff]  ;;  %s3341_s9 = sld [smem:[#allocation2 + $0x3f]] }
 0x155   :  { %v570_v23 = vadd.f32 %v6576_v8, %v532_v35  ;;  %v671_v62 = vadd.f32 %v6577_v59, %v629_v6  ;;  %2101 = vrot.lane.b32.xlu1 %v5424_v18, %s3674_s19  ;;  %v1572_v52 = vadd.f32 %v6578_v29, %v1545_v28  ;;  %v1599_v31 = vadd.f32 %v6579_v40, %v1575_v63  ;;  %v6580_v16 = vld [vmem:[#allocation59_spill] sm:$0xff]  ;;  %v6584_v18 = vld [vmem:[#allocation14_spill] sm:$0xff]  ;;  %v6585_v63 = vld [vmem:[#allocation85_spill] sm:$0xff] }
 0x156   :  { %v630_v14 = vadd.f32 %v6580_v16, %v588_v41  ;;  %1142 = vrot.lane.b32.xlu0 %v5427_v30, %s3674_s19  ;;  %v5605_v2 = vmul.f32 %v5021_v49, %v5551_v46  ;;  %v1526_v35 = vadd.f32 %v6581_v22, %v1488_v47  ;;  %v6582_v57 = vld [vmem:[#allocation11_spill] sm:$0xff]  ;;  %v571_v59 = vadd.f32 %v6584_v18, %v533_v55  ;;  %v6586_v29 = vld [vmem:[#allocation18_spill] sm:$0xff] }
 0x157   :  { %v1611_v6 = vadd.f32 %v6582_v57, %v1587_v21  ;;  %v608_v8 = vadd.f32 %v6583_v45, %v570_v23  ;;  %v5611_v28 = vpop.permute.xlu1 %1812  ;;  %v1588_v41 = vadd.f32 %v6585_v63, %v1572_v52  ;;  %v1623_v40 = vadd.f32 %v6586_v29, %v1599_v31  ;;  %v6587_v47 = vld [vmem:[#allocation86_spill] sm:$0xff]  ;;  %v6588_v21 = vld [vmem:[#allocation52_spill] sm:$0xff]  ;;  %v6589_v23 = vld [vmem:[#allocation19_spill] sm:$0xff] }
 0x158   :  { %v672_v30 = vadd.f32 %v5374_v58, %v630_v14  ;;  %v712_v16 = vpop.permute.xlu0 %711  ;;  %v1152_v50 = vmul.f32 %v4937_v19, %v5590_v13  ;;  %v1564_v22 = vadd.f32 %v6587_v47, %v1526_v35  ;;  %v609_v57 = vadd.f32 %v6588_v21, %v571_v59  ;;  %v6590_v55 = vld [vmem:[#allocation62_spill] sm:$0xff]  ;;  %v6591_v52 = vld [vmem:[#allocation48_spill] sm:$0xff]  ;;  %v6592_v35 = vld [vmem:[#allocation21_spill] sm:$0xff] }
 0x159   :  { %v650_v45 = vadd.f32 %v6589_v23, %v608_v8  ;;  %v687_v18 = vadd.f32 %v6590_v55, %v671_v62  ;;  %1144 = vrot.lane.b32.xlu1 %v5495_v36, %s3674_s19  ;;  %v1612_v63 = vadd.f32 %v6591_v52, %v1588_v41  ;;  %v1213_v58 = vrot.slane %v5587_v54, 2  ;;  %v6593_v8 = vld [vmem:[#allocation15_spill] sm:$0xff]  ;;  %v6594_v21 = vld [vmem:[#allocation25_spill] sm:$0xff] }
 0x15a   :  { %2125 = vrot.lane.b32.xlu0 %v5459_v4, %s3675_s20  ;;  %v1153_v31 = vmul.f32 %v5021_v49, %v5590_v13  ;;  %v5631_v14 = vstv %s5572_s0  ;;  %v651_v59 = vadd.f32 %v6592_v35, %v609_v57  ;;  %v1638_v29 = vadd.f32 %v6593_v8, %v1611_v6  ;;  %v6595_v23 = vld [vmem:[#allocation95_spill] sm:$0xff]  ;;  %v6598_v57 = vld [vmem:[#allocation20_spill] sm:$0xff]  ;;  %s3347_s0 = sld [smem:[#allocation2 + $0x42]] }
 0x15b   :  { %v715_v62 = vadd.f32 %v710_v12, %v687_v18  ;;  %v793_v47 = vpop.permute.xlu1 %792  ;;  %v1214_v36 = vrot.slane %v5605_v2, 2  ;;  %v1653_v41 = vadd.f32 %v6594_v21, %v1623_v40  ;;  %v688_v55 = vadd.f32 %v6595_v23, %v672_v30  ;;  %v6599_v12 = vld [vmem:[#allocation16_spill] sm:$0xff]  ;;  %v6602_v8 = vld [vmem:[#allocation31_spill] sm:$0xff]  ;;  %v6604_v23 = vld [vmem:[#allocation50_spill] sm:$0xff] }
 0x15c   :  { %v738_v4 = vpop.permute.xlu0 %737  ;;  %v1158_v52 = vrot.slane %v1152_v50, 1  ;;  %v1154_v54 = vmul.f32 %v5269_v25, %v5590_v13  ;;  %v1576_v60 = vadd.f32 %v6596_v5, %v1564_v22  ;;  %v1672_v1 = vadd.f32 %v6597_v53, %v1638_v29  ;;  %v6600_v5 = vld [vmem:[#allocation45_spill] sm:$0xff]  ;;  %v6601_v22 = vld [vmem:[#allocation55_spill] sm:$0xff] }
 0x15d   :  { %v681_v35 = vadd.f32 %v6598_v57, %v650_v45  ;;  %v5643_v6 = vadd.f32 %v738_v4, %v715_v62  ;;  %2127 = vrot.lane.b32.xlu1 %v5511_v39, %s3675_s20  ;;  %v1639_v40 = vadd.f32 %v6599_v12, %v1612_v63  ;;  %v1691_v30 = vadd.f32 %v5379_v44, %v1653_v41  ;;  %v6603_v62 = vld [vmem:[#allocation91_spill] sm:$0xff] }
 0x15e   :  { %v716_v18 = vadd.f32 %v712_v16, %v688_v55  ;;  %2103 = vrot.lane.b32.xlu0 %v5514_v61, %s3674_s19  ;;  %v1159_v50 = vrot.slane %v1153_v31, 1  ;;  %v1600_v53 = vadd.f32 %v6600_v5, %v1576_v60  ;;  %v1710_v45 = vadd.f32 %v6601_v22, %v1672_v1  ;;  %v6605_v31 = vld [vmem:[#allocation61_spill] sm:$0xff]  ;;  %v6610_v22 = vld [vmem:[#allocation23_spill] sm:$0xff] }
 0x15f   :  { %v701_v29 = vadd.f32 %v6602_v8, %v681_v35  ;;  %v682_v21 = vadd.f32 %v6603_v62, %v651_v59  ;;  %v740_v39 = vpop.permute.xlu1 %739  ;;  %v1673_v63 = vadd.f32 %v6604_v23, %v1639_v40  ;;  %v1729_v44 = vadd.f32 %v5455_v34, %v1691_v30  ;;  %v6606_v59 = vld [vmem:[#allocation30_spill] sm:$0xff] }
 0x160   :  { %v5659_v16 = vadd.f32 %v740_v39, %v716_v18  ;;  %v1792_v41 = vpop.permute.xlu0 %1791  ;;  %v1161_v61 = vrot.slane %v1154_v54, 1  ;;  %v1624_v55 = vadd.f32 %v6605_v31, %v1600_v53  ;;  %v1209_v1 = vmul.f32 %v5269_v25, %v5551_v46 }
 0x161   :  { %v702_v4 = vadd.f32 %v5421_v17, %v682_v21  ;;  %v729_v60 = vadd.f32 %v5466_v38, %v701_v29  ;;  %2149 = vrot.lane.b32.xlu1 %v5564_v20, %s3674_s19  ;;  %v1711_v57 = vadd.f32 %v6606_v59, %v1673_v63  ;;  %v6607_v34 = vrot.slane %v5536_v42, 1  ;;  %v5679_v17 = vld [vmem:[%s6340_s2 + $0x40] sm:$0x3]  ;;  %v6609_v42 = vld [vmem:[#allocation29_spill] sm:$0xff] }
 0x162   :  { %1121 = vrot.lane.b32.xlu0 %v5569_v24, %s3675_s20  ;;  %v6608_v54 = vrot.slane %v5499_v48, 1  ;;  %v5683_v38 = vmul.f32 %v5679_v17, %v5442_v15  ;;  %v5687_v20 = vmul.f32 %v5285_v43, %v5631_v14  ;;  %v1744_v12 = vadd.f32 %v6609_v42, %v1710_v45 }
 0x163   :  { %v730_v24 = vadd.f32 %v5507_v37, %v702_v4  ;;  %v1794_v48 = vpop.permute.xlu1 %1793  ;;  %v1215_v40 = vsel %vm254_vm1, %v1213_v58, %v1214_v36  ;;  %v1160_v30 = vsel %vm135_vm0, %v1158_v52, %v1159_v50  ;;  %v1759_v18 = vadd.f32 %v5409_v0, %v1729_v44  ;;  %v6611_v37 = vld [vmem:[#allocation28_spill] sm:$0xff]  ;;  %v6612_v52 = vld [vmem:[#allocation93_spill] sm:$0xff] }
 0x164   :  { %v1120_v35 = vsel %vm135_vm0, %v6608_v54, %v6607_v34  ;;  %v795_v5 = vpop.permute.xlu0 %794  ;;  %v1162_v53 = vsel %vm135_vm0, %v1159_v50, %v1161_v61  ;;  %v2133_v8 = vmul.f32 %v5432_v27, %v6610_v22  ;;  %v2385_v29 = vlaneseq }
 0x165   :  { %v1654_v62 = vadd.f32 %v6611_v37, %v1624_v55  ;;  %v1778_v45 = vadd.f32 %v5518_v51, %v1744_v12  ;;  %v760_v21 = vadd.f32 %v5391_v3, %v729_v60  ;;  %2151 = vrot.lane.b32.xlu1 %v5581_v56, %s3674_s19  ;;  %v1216_v58 = vrot.slane %v1209_v1, 2 }
 0x166   :  { %v1745_v39 = vadd.f32 %v6612_v52, %v1711_v57  ;;  %v1797_v0 = vadd.f32 %v1792_v41, %v1759_v18  ;;  %1123 = vrot.lane.b32.xlu0 %v1120_v35, %s3675_s20  ;;  %v5707_v50 = vstv %s5651_s1  ;;  %v5709_v23 = vand.u32 127, %v2385_v29  ;;  %v6613_v35 = vld [vmem:[#allocation94_spill] sm:$0xff]  ;;  %v6617_v52 = vld [vmem:[#allocation37_spill] sm:$0xff]  ;;  %s3353_s1 = sld [smem:[#allocation2 + $0x45]] }
 0x167   :  { %v1692_v63 = vadd.f32 %v5412_v32, %v1654_v62  ;;  %v1816_v44 = vadd.f32 %v5577_v33, %v1778_v45  ;;  %v798_v51 = vadd.f32 %v793_v47, %v760_v21  ;;  %v761_v3 = vadd.f32 %v5462_v11, %v730_v24  ;;  %v1830_v61 = vpop.permute.xlu1 %1829  ;;  %v6615_v18 = vld [vmem:[#allocation34_spill] sm:$0xff]  ;;  %v6616_v62 = vld [vmem:[#allocation24_spill] sm:$0xff] }
 0x168   :  { %v1779_v56 = vadd.f32 %v5543_v26, %v1745_v39  ;;  %v5715_v31 = vadd.f32 %v1830_v61, %v1797_v0  ;;  %v835_v55 = vpop.permute.xlu0 %834  ;;  %v5717_v41 = vshrl.u32 %v2385_v29, 7  ;;  %v2390_v4 = vmul.u32 2, %v5709_v23  ;;  %v5763_v29 = vld [vmem:[%s6340_s2 + $0xb8] sm:$0x3] }
 0x169   :  { %v1730_v60 = vadd.f32 %v5548_v9, %v1692_v63  ;;  %v5721_v1 = vadd.f32 %v835_v55, %v798_v51  ;;  %1218 = vrot.lane.b32.xlu1 %v1215_v40, %s3675_s20  ;;  %v1249_v32 = vmul.f32 %v4937_v19, %v5707_v50  ;;  %v5728_v11 = vmul.f32 %v5021_v49, %v5707_v50  ;;  %v6619_v0 = vld [vmem:[#allocation33_spill] sm:$0xff] }
 0x16a   :  { %v1817_v26 = vadd.f32 %v5611_v28, %v1779_v56  ;;  %v799_v33 = vadd.f32 %v795_v5, %v761_v3  ;;  %1163 = vrot.lane.b32.xlu0 %v1160_v30, %s3674_s19  ;;  %v5733_v47 = vadd.s32 8, %v5717_v41  ;;  %v2397_v9 = vadd.s32 1, %v2390_v4  ;;  %v6621_v3 = vld [vmem:[#allocation92_spill] sm:$0xff] }
 0x16b   :  { %v837_v59 = vpop.permute.xlu1 %836  ;;  %v1843_v57 = vadd.f32 %v5439_v10, %v1816_v44  ;;  %v2134_v34 = vmul.f32 %v5471_v7, %v6610_v22  ;;  %v1217_v54 = vsel %vm254_vm1, %v1214_v36, %v1216_v58  ;;  %v5743_v28 = vmul.f32 %v6613_v35, %v5631_v14  ;;  %v6614_v10 = vld [vmem:[#allocation64_spill] sm:$0xff] }
 0x16c   :  { %v5747_v24 = vadd.f32 %v837_v59, %v799_v33  ;;  %v1854_v42 = vpop.permute.xlu0 %1853  ;;  %v1251_v12 = vmul.f32 %v5269_v25, %v5707_v50  ;;  %vm2392_vm2 = vcmp.eq.s32.totalorder %v5733_v47, %v2390_v4  ;;  %v1760_v40 = vadd.f32 %v6614_v10, %v1730_v60 }
 0x16d   :  { %v1859_v30 = vadd.f32 %v1854_v42, %v1843_v57  ;;  %1165 = vrot.lane.b32.xlu1 %v1162_v53, %s3674_s19  ;;  %v1255_v2 = vrot.slane %v1249_v32, 2  ;;  %v3676_v36 = vmov 1.0   ;;  %vm2399_vm3 = vcmp.eq.s32.totalorder %v5733_v47, %v2397_v9 }
 0x16e   :  { %3490 = vmatprep.subr.msk.mxu0 %vm2392_vm2, %v3676_v36  ;;  %2137 = vrot.lane.b32.xlu0 %v2133_v8, %s3675_s20  ;;  %v1844_v5 = vadd.f32 %v6615_v18, %v1817_v26  ;;  %v1256_v22 = vrot.slane %v5728_v11, 2  ;;  %vm2391_vm4 = vcmp.eq.s32.totalorder %v5717_v41, %v2390_v4  ;;  %vm2398_vm5 = vcmp.eq.s32.totalorder %v5717_v41, %v2397_v9 }
 0x16f   :  { %3506 = vmatprep.subr.msk.mxu1 %vm2399_vm3, %v3676_v36  ;;  %v1798_v53 = vadd.f32 %v1794_v48, %v1760_v40  ;;  %v1856_v37 = vpop.permute.xlu1 %1855  ;;  %v2199_v45 = vmul.f32 %v5432_v27, %v6616_v62  ;;  %v2200_v8 = vmul.f32 %v5471_v7, %v6616_v62  ;;  %3491 = vmatpush3.msk.msra.mxu0 %vm2392_vm2, %v3676_v36  ;;  %v6618_v39 = vrot.slane %v6617_v52, 1 }
 0x170   :  { %3507 = vmatpush3.msk.msra.mxu1 %vm2399_vm3, %v3676_v36  ;;  %v1860_v21 = vadd.f32 %v1856_v37, %v1844_v5  ;;  %v1832_v58 = vpop.permute.xlu0 %1831  ;;  %v6620_v63 = vrot.slane %v6619_v0, 1  ;;  %v773_v48 = vrot.slane %v5683_v38, 1  ;;  %3492 = vmatprep.subr.msk.mxu0 %vm2391_vm4, %v3676_v36  ;;  %v2157_v61 = vmul.f32 %v5432_v27, %v6621_v3 }
 0x171   :  { %3508 = vmatprep.subr.msk.mxu1 %vm2398_vm5, %v3676_v36  ;;  %v5783_v51 = vadd.f32 %v1832_v58, %v1798_v53  ;;  %2139 = vrot.lane.b32.xlu1 %v2134_v34, %s3675_s20  ;;  %v2201_v56 = vmul.f32 %v5763_v29, %v6616_v62  ;;  %v1257_v38 = vsel %vm254_vm1, %v1255_v2, %v1256_v22  ;;  %v1258_v55 = vrot.slane %v1251_v12, 2  ;;  %v6623_v12 = vld [vmem:[#allocation96_spill] sm:$0xff] }
 0x172   :  { %v772_v44 = vsel %vm135_vm0, %v6620_v63, %v6618_v39  ;;  %3493 = vmatpush3.msk.msra.mxu0 %vm2391_vm4, %v3676_v36  ;;  %1220 = vrot.lane.b32.xlu0 %v1217_v54, %s3675_s20  ;;  %v871_v60 = vrot.slane %v5687_v20, 2  ;;  %v872_v32 = vrot.slane %v5743_v28, 2  ;;  %v2205_v33 = vrot.slane %v2199_v45, 1  ;;  %v5899_v28 = vld [vmem:[%s6340_s2 + $0xa0] sm:$0x3] }
 0x173   :  { %3509 = vmatpush3.msk.msra.mxu1 %vm2398_vm5, %v3676_v36  ;;  %v1878_v11 = vpop.permute.xlu1 %1877  ;;  %v777_v26 = vadd.f32 %v772_v44, %v5643_v6  ;;  %v2206_v59 = vrot.slane %v2200_v8, 1  ;;  %v5800_v57 = vstv %s5745_s12  ;;  %v6622_v54 = vmov %v6618_v39  ;;  %v5843_v44 = vld [vmem:[%s6340_s2 + $0x90] sm:$0xff] }
 0x174   :  { %v5802_v4 = vadd.f32 %v1878_v11, %v1859_v30  ;;  %v814_v34 = vpop.permute.xlu0 %813  ;;  %v774_v42 = vsel %vm135_vm0, %v6622_v54, %v773_v48  ;;  %v2208_v9 = vrot.slane %v2201_v56, 1  ;;  %v2237_v6 = vmul.f32 %v5432_v27, %v6623_v12  ;;  %v6624_v48 = vld [vmem:[#allocation26_spill] sm:$0xff]  ;;  %v6625_v54 = vld [vmem:[#allocation39_spill] sm:$0xff] }
 0x175   :  { %v819_v20 = vadd.f32 %v814_v34, %v777_v26  ;;  %2161 = vrot.lane.b32.xlu1 %v2157_v61, %s3674_s19  ;;  %v1259_v10 = vsel %vm254_vm1, %v1256_v22, %v1258_v55  ;;  %v2238_v40 = vmul.f32 %v5471_v7, %v6623_v12  ;;  %v1228_v30 = vmul.f32 %v4937_v19, %v5800_v57  ;;  %v5860_v11 = vld [vmem:[%s6340_s2 + $0x98] sm:$0xff] }
 0x176   :  { %1260 = vrot.lane.b32.xlu0 %v1257_v38, %s3674_s19  ;;  %v5820_v2 = vmul.f32 %v5021_v49, %v5800_v57  ;;  %v778_v18 = vadd.f32 %v774_v42, %v5659_v16  ;;  %v2207_v5 = vsel %vm135_vm0, %v2205_v33, %v2206_v59  ;;  %v873_v53 = vsel %vm254_vm1, %v871_v60, %v872_v32 }
 0x177   :  { %v1880_v36 = vpop.permute.xlu1 %1879  ;;  %v2158_v62 = vmul.f32 %v5471_v7, %v6621_v3  ;;  %v867_v19 = vmul.f32 %v5679_v17, %v5631_v14  ;;  %v2209_v16 = vsel %vm135_vm0, %v2206_v59, %v2208_v9  ;;  %v2243_v8 = vrot.slane %v2237_v6, 1 }
 0x178   :  { %v5827_v22 = vadd.f32 %v1880_v36, %v1860_v21  ;;  %v816_v37 = vpop.permute.xlu0 %815  ;;  %v2239_v58 = vmul.f32 %v5763_v29, %v6623_v12  ;;  %v878_v21 = vadd.f32 %v873_v53, %v5721_v1  ;;  %v2244_v52 = vrot.slane %v2238_v40, 1 }
 0x179   :  { %v820_v45 = vadd.f32 %v816_v37, %v778_v18  ;;  %1262 = vrot.lane.b32.xlu1 %v1259_v10, %s3674_s19  ;;  %v1234_v39 = vrot.slane %v1228_v30, 2  ;;  %v1235_v0 = vrot.slane %v5820_v2, 2  ;;  %v1845_v3 = vmul.f32 %v5843_v44, %v6624_v48  ;;  %v5877_v10 = vld [vmem:[%s6340_s2 + $0x48] sm:$0xff] }
 0x17a   :  { %2210 = vrot.lane.b32.xlu0 %v2207_v5, %s3675_s20  ;;  %v1230_v61 = vmul.f32 %v5269_v25, %v5800_v57  ;;  %v874_v1 = vrot.slane %v867_v19, 2  ;;  %v5852_v55 = vstv %s5807_s15  ;;  %v1846_v26 = vmul.f32 %v5860_v11, %v6624_v48 }
 0x17b   :  { %v911_v63 = vpop.permute.xlu1 %910  ;;  %v2246_v33 = vrot.slane %v2239_v58, 1  ;;  %v2245_v59 = vsel %vm135_vm0, %v2243_v8, %v2244_v52  ;;  %v1236_v34 = vsel %vm254_vm1, %v1234_v39, %v1235_v0  ;;  %v2218_v42 = vmul.f32 %v5432_v27, %v6625_v54 }
 0x17c   :  { %v5849_v56 = vadd.f32 %v911_v63, %v878_v21  ;;  %v856_v38 = vpop.permute.xlu0 %855  ;;  %v1847_v12 = vadd.f32 %v1845_v3, %v5715_v31  ;;  %v1237_v6 = vrot.slane %v1230_v61, 2  ;;  %v1270_v40 = vmul.f32 %v5877_v10, %v5852_v55  ;;  %v6626_v31 = vld [vmem:[#allocation27_spill] sm:$0xff] }
 0x17d   :  { %v5854_v60 = vadd.f32 %v856_v38, %v819_v20  ;;  %2212 = vrot.lane.b32.xlu1 %v2209_v16, %s3675_s20  ;;  %v2219_v20 = vmul.f32 %v5471_v7, %v6625_v54  ;;  %v1271_v30 = vmul.f32 %v5021_v49, %v5852_v55  ;;  %v875_v18 = vsel %vm254_vm1, %v872_v32, %v874_v1 }
 0x17e   :  { %2163 = vrot.lane.b32.xlu0 %v2158_v62, %s3674_s19  ;;  %v1897_v5 = vmul.f32 %v5843_v44, %v6626_v31  ;;  %v1898_v53 = vmul.f32 %v5860_v11, %v6626_v31  ;;  %v2247_v62 = vsel %vm135_vm0, %v2244_v52, %v2246_v33  ;;  %v2220_v49 = vmul.f32 %v5763_v29, %v6625_v54 }
 0x17f   :  { %v858_v9 = vpop.permute.xlu1 %857  ;;  %v1899_v32 = vmul.f32 %v5899_v28, %v6626_v31  ;;  %v1848_v19 = vadd.f32 %v1846_v26, %v5783_v51  ;;  %v2225_v16 = vrot.slane %v2219_v20, 1  ;;  %v1272_v8 = vmul.f32 %v5269_v25, %v5852_v55 }
 0x180   :  { %v5883_v2 = vadd.f32 %v858_v9, %v820_v45  ;;  %v1866_v36 = vpop.permute.xlu0 %1865  ;;  %v2224_v45 = vrot.slane %v2218_v42, 1  ;;  %v879_v21 = vadd.f32 %v875_v18, %v5747_v24  ;;  %v1238_v52 = vsel %vm254_vm1, %v1235_v0, %v1237_v6 }
 0x181   :  { %v1871_v37 = vadd.f32 %v1866_v36, %v1847_v12  ;;  %2248 = vrot.lane.b32.xlu1 %v2245_v59, %s3674_s19  ;;  %v1276_v39 = vrot.slane %v1270_v40, 2  ;;  %v1277_v63 = vrot.slane %v1271_v30, 2  ;;  %v1903_v61 = vrot.slane %v1897_v5, 1 }
 0x182   :  { %1239 = vrot.lane.b32.xlu0 %v1236_v34, %s3675_s20  ;;  %v1904_v38 = vrot.slane %v1898_v53, 1  ;;  %v2227_v51 = vrot.slane %v2220_v49, 1  ;;  %v1906_v26 = vrot.slane %v1899_v32, 1  ;;  %v5911_v33 = vstv %s5864_s22 }
 0x183   :  { %v1868_v58 = vpop.permute.xlu1 %1867  ;;  %v2226_v25 = vsel %vm135_vm0, %v2224_v45, %v2225_v16  ;;  %v1279_v24 = vrot.slane %v1272_v8, 2  ;;  %v2305_v0 = vmul.f32 %v5432_v27, %v5551_v46  ;;  %v2306_v59 = vmul.f32 %v5471_v7, %v5551_v46 }
 0x184   :  { %v1872_v48 = vadd.f32 %v1868_v58, %v1848_v19  ;;  %v913_v3 = vpop.permute.xlu0 %912  ;;  %v1278_v54 = vsel %vm254_vm1, %v1276_v39, %v1277_v63  ;;  %v2256_v42 = vmul.f32 %v5432_v27, %v5590_v13  ;;  %v2257_v20 = vmul.f32 %v5471_v7, %v5590_v13 }
 0x185   :  { %v917_v1 = vadd.f32 %v913_v3, %v879_v21  ;;  %2250 = vrot.lane.b32.xlu1 %v2247_v62, %s3674_s19  ;;  %v1905_v6 = vsel %vm135_vm0, %v1903_v61, %v1904_v38  ;;  %v882_v40 = vmul.f32 %v5285_v43, %v5911_v33  ;;  %v883_v30 = vmul.f32 %v6613_v35, %v5911_v33 }
 0x186   :  { %1241 = vrot.lane.b32.xlu0 %v1238_v52, %s3675_s20  ;;  %v2228_v18 = vsel %vm135_vm0, %v2225_v16, %v2227_v51  ;;  %v1907_v31 = vsel %vm135_vm0, %v1904_v38, %v1906_v26  ;;  %v1280_v5 = vsel %vm254_vm1, %v1277_v63, %v1279_v24  ;;  %v2311_v53 = vrot.slane %v2305_v0, 2 }
 0x187   :  { %v1890_v34 = vpop.permute.xlu1 %1889  ;;  %v2307_v43 = vmul.f32 %v5763_v29, %v5551_v46  ;;  %v1910_v35 = vadd.f32 %v1905_v6, %v5802_v4  ;;  %v2263_v49 = vrot.slane %v2257_v20, 1  ;;  %v2258_v32 = vmul.f32 %v5763_v29, %v5590_v13 }
 0x188   :  { %v5924_v9 = vadd.f32 %v1890_v34, %v1871_v37  ;;  %v953_v12 = vpop.permute.xlu0 %952  ;;  %v2312_v37 = vrot.slane %v2306_v59, 2  ;;  %v888_v16 = vrot.slane %v882_v40, 2  ;;  %v889_v8 = vrot.slane %v883_v30, 2 }
 0x189   :  { %v5932_v36 = vadd.f32 %v953_v12, %v5849_v56  ;;  %2229 = vrot.lane.b32.xlu1 %v2226_v25, %s3675_s20  ;;  %v2262_v56 = vrot.slane %v2256_v42, 1  ;;  %v884_v58 = vmul.f32 %v5679_v17, %v5911_v33  ;;  %v2344_v46 = vmul.f32 %v5471_v7, %v5707_v50 }
 0x18a   :  { %1281 = vrot.lane.b32.xlu0 %v1278_v54, %s3674_s19  ;;  %v2345_v4 = vmul.f32 %v5763_v29, %v5707_v50  ;;  %v1911_v13 = vadd.f32 %v1907_v31, %v5827_v22  ;;  %v2313_v52 = vsel %vm254_vm1, %v2311_v53, %v2312_v37  ;;  %v2314_v39 = vrot.slane %v2307_v43, 2 }
 0x18b   :  { %v955_v62 = vpop.permute.xlu1 %954  ;;  %v2264_v3 = vsel %vm135_vm0, %v2262_v56, %v2263_v49  ;;  %v2265_v17 = vrot.slane %v2258_v32, 1  ;;  %v2343_v61 = vmul.f32 %v5432_v27, %v5707_v50  ;;  %v890_v51 = vsel %vm254_vm1, %v888_v16, %v889_v8 }
 0x18c   :  { %v5944_v19 = vadd.f32 %v955_v62, %v917_v1  ;;  %v1939_v45 = vpop.permute.xlu0 %1938  ;;  %v891_v26 = vrot.slane %v884_v58, 2  ;;  %v2350_v22 = vrot.slane %v2344_v46, 2  ;;  %v2352_v24 = vrot.slane %v2345_v4, 2 }
 0x18d   :  { %v1944_v21 = vadd.f32 %v1939_v45, %v1910_v35  ;;  %2231 = vrot.lane.b32.xlu1 %v2228_v18, %s3675_s20  ;;  %v2315_v0 = vsel %vm254_vm1, %v2312_v37, %v2314_v39  ;;  %v2325_v59 = vmul.f32 %v5471_v7, %v5800_v57  ;;  %v2326_v50 = vmul.f32 %v5763_v29, %v5800_v57 }
 0x18e   :  { %1283 = vrot.lane.b32.xlu0 %v1280_v5, %s3674_s19  ;;  %v895_v54 = vadd.f32 %v890_v51, %v5854_v60  ;;  %v2349_v42 = vrot.slane %v2343_v61, 2  ;;  %v2324_v20 = vmul.f32 %v5432_v27, %v5800_v57  ;;  %v892_v40 = vsel %vm254_vm1, %v889_v8, %v891_v26 }
 0x18f   :  { %v1941_v63 = vpop.permute.xlu1 %1940  ;;  %v1912_v30 = vmul.f32 %v5843_v44, %v5442_v15  ;;  %v1913_v18 = vmul.f32 %v5860_v11, %v5442_v15  ;;  %v2353_v60 = vsel %vm254_vm1, %v2350_v22, %v2352_v24  ;;  %v1914_v5 = vmul.f32 %v5899_v28, %v5442_v15 }
 0x190   :  { %v1945_v38 = vadd.f32 %v1941_v63, %v1911_v13  ;;  %v1892_v1 = vpop.permute.xlu0 %1891  ;;  %v2331_v57 = vrot.slane %v2325_v59, 2  ;;  %v2333_v53 = vrot.slane %v2326_v50, 2  ;;  %v2363_v37 = vmul.f32 %v5471_v7, %v5852_v55 }
 0x191   :  { %v5960_v25 = vadd.f32 %v1892_v1, %v1872_v48  ;;  %2316 = vrot.lane.b32.xlu1 %v2313_v52, %s3675_s20  ;;  %v2266_v48 = vsel %vm135_vm0, %v2263_v49, %v2265_v17  ;;  %v2364_v43 = vmul.f32 %v5763_v29, %v5852_v55  ;;  %v896_v35 = vadd.f32 %v892_v40, %v5883_v2 }
 0x192   :  { %2267 = vrot.lane.b32.xlu0 %v2264_v3, %s3674_s19  ;;  %v2351_v56 = vsel %vm254_vm1, %v2349_v42, %v2350_v22  ;;  %v2330_v49 = vrot.slane %v2324_v20, 2  ;;  %v2362_v32 = vmul.f32 %v5432_v27, %v5852_v55  ;;  %v1918_v16 = vrot.slane %v1912_v30, 1 }
 0x193   :  { %v1977_v34 = vpop.permute.xlu1 %1976  ;;  %v1919_v8 = vrot.slane %v1913_v18, 1  ;;  %v2334_v7 = vsel %vm254_vm1, %v2331_v57, %v2333_v53  ;;  %v2371_v46 = vrot.slane %v2364_v43, 2  ;;  %v1921_v52 = vrot.slane %v1914_v5, 1 }
 0x194   :  { %v5973_v12 = vadd.f32 %v1977_v34, %v1944_v21  ;;  %v932_v6 = vpop.permute.xlu0 %931  ;;  %v2369_v21 = vrot.slane %v2363_v37, 2  ;;  %v2332_v4 = vsel %vm254_vm1, %v2330_v49, %v2331_v57  ;;  %v2368_v13 = vrot.slane %v2362_v32, 2 }
 0x195   :  { %v937_v31 = vadd.f32 %v932_v6, %v895_v54  ;;  %2318 = vrot.lane.b32.xlu1 %v2315_v0, %s3675_s20  ;;  %v1920_v55 = vsel %vm135_vm0, %v1918_v16, %v1919_v8  ;;  %v2003_v26 = vmul.f32 %v5843_v44, %v5631_v14  ;;  %v2004_v22 = vmul.f32 %v5860_v11, %v5631_v14 }
 0x196   :  { %2269 = vrot.lane.b32.xlu0 %v2266_v48, %s3674_s19  ;;  %v2372_v63 = vsel %vm254_vm1, %v2369_v21, %v2371_v46  ;;  %v1925_v17 = vadd.f32 %v1920_v55, %v5924_v9  ;;  %v2370_v61 = vsel %vm254_vm1, %v2368_v13, %v2369_v21  ;;  %v2005_v59 = vmul.f32 %v5899_v28, %v5631_v14 }
 0x197   :  { %v1979_v62 = vpop.permute.xlu1 %1978  ;;  %v2009_v54 = vrot.slane %v2003_v26, 2  ;;  %v2010_v48 = vrot.slane %v2004_v22, 2  ;;  %v2018_v49 = vmul.f32 %v5843_v44, %v5911_v33  ;;  %vm2998_vm2 = vcmask 31744  }
 0x198   :  { %v1983_v15 = vadd.f32 %v1979_v62, %v1945_v38  ;;  %v934_v45 = vpop.permute.xlu0 %933  ;;  %v1922_v38 = vsel %vm135_vm0, %v1919_v8, %v1921_v52  ;;  %v2012_v20 = vrot.slane %v2005_v59, 2 }
 0x199   :  { %v938_v58 = vadd.f32 %v934_v45, %v896_v35  ;;  %2356 = vrot.lane.b32.xlu1 %v2353_v60, %s3674_s19  ;;  %v1926_v9 = vadd.f32 %v1922_v38, %v5960_v25  ;;  %v2011_v30 = vsel %vm254_vm1, %v2009_v54, %v2010_v48  ;;  %v2024_v16 = vrot.slane %v2018_v49, 2 }
 0x19a   :  { %2354 = vrot.lane.b32.xlu0 %v2351_v56, %s3674_s19  ;;  %v2013_v25 = vsel %vm254_vm1, %v2010_v48, %v2012_v20  ;;  %v6087_v48 = vld [vmem:[%s6340_s2 + $0x58] sm:$0x3] }
 0x19b   :  { %v5996_v2 = vpop.permute.xlu1 %1003  ;;  %v2017_v14 = vadd.f32 %v2013_v25, %v1983_v15  ;;  %v6094_v25 = vstv %s3352_s27 }
 0x19c   :  { %v974_v27 = vpop.permute.xlu0 %973 }
 0x19d   :  { %v6000_v39 = vadd.f32 %v974_v27, %v937_v31  ;;  %2337 = vrot.lane.b32.xlu1 %v2334_v7, %s3675_s20  ;;  %v2016_v31 = vadd.f32 %v2011_v30, %v5973_v12  ;;  %v6036_v12 = vmul.f32 %v5860_v11, %v5911_v33 }
 0x19e   :  { %2335 = vrot.lane.b32.xlu0 %v2332_v4, %s3675_s20  ;;  %s3346_s20 = sld [smem:[#allocation2 + $0x1e]] }
 0x19f   :  { %v976_v3 = vpop.permute.xlu1 %975  ;;  %v2025_v8 = vrot.slane %v6036_v12, 2 }
 0x1a0   :  { %v6008_v1 = vadd.f32 %v976_v3, %v938_v58  ;;  %v1958_v51 = vpop.permute.xlu0 %1957 }
 0x1a1   :  { %v1963_v24 = vadd.f32 %v1958_v51, %v1925_v17  ;;  %2375 = vrot.lane.b32.xlu1 %v2372_v63, %s3674_s19  ;;  %v2026_v21 = vsel %vm254_vm1, %v2024_v16, %v2025_v8 }
 0x1a2   :  { %2373 = vrot.lane.b32.xlu0 %v2370_v61, %s3674_s19  ;;  %s3340_s19 = sld [smem:[#allocation2 + $0x1b]] }
 0x1a3   :  { %v1960_v0 = vpop.permute.xlu1 %1959 }
 0x1a4   :  { %v1964_v50 = vadd.f32 %v1960_v0, %v1926_v9  ;;  %v6019_v34 = vpop.permute.xlu0 %1005  ;;  %v6060_v61 = vstv %s3346_s20 }
 0x1a5   :  { %v1055_v22 = vmul.f32 %v5877_v10, %v6060_v61 }
 0x1a7   :  { %v1996_v42 = vpop.permute.xlu1 %1995  ;;  %v1061_v20 = vrot.slane %v1055_v22, 1 }
 0x1a8   :  { %v2001_v6 = vadd.f32 %v1996_v42, %v1963_v24  ;;  %v1032_v40 = vpop.permute.xlu0 %1031  ;;  %v6058_v17 = vstv %s3340_s19  ;;  %v6073_v24 = vld [vmem:[%s6340_s2 + $0x50] sm:$0xff]  ;;  %v1057_v42 = vmul.f32 %v6087_v48, %v6060_v61 }
 0x1a9   :  { %v987_v26 = vmul.f32 %v5877_v10, %v6058_v17  ;;  %v1056_v9 = vmul.f32 %v6073_v24, %v6060_v61  ;;  %v988_v59 = vmul.f32 %v6073_v24, %v6058_v17 }
 0x1aa   :  { %v2031_v46 = vadd.f32 %v2026_v21, %v2001_v6 }
 0x1ab   :  { %v6022_v18 = vpop.permute.xlu1 %1033  ;;  %v989_v54 = vadd.f32 %v987_v26, %v5932_v36  ;;  %v1062_v6 = vrot.slane %v1056_v9, 1 }
 0x1ac   :  { %v2045_v60 = vpop.permute.xlu0 %2044 }
 0x1ad   :  { %v2050_v5 = vadd.f32 %v2045_v60, %v2016_v31  ;;  %v1009_v30 = vadd.f32 %v5996_v2, %v989_v54  ;;  %v990_v60 = vadd.f32 %v988_v59, %v5944_v19  ;;  %v1174_v2 = vmul.f32 %v6073_v24, %v6094_v25 }
 0x1ae   :  { %v6115_v54 = vstv %s3341_s9 }
 0x1af   :  { %v2047_v57 = vpop.permute.xlu1 %2046  ;;  %v1037_v36 = vadd.f32 %v1032_v40, %v1009_v30  ;;  %v1180_v21 = vrot.slane %v1174_v2, 2 }
 0x1b0   :  { %v2051_v53 = vadd.f32 %v2047_v57, %v2017_v14  ;;  %v1998_v37 = vpop.permute.xlu0 %1997  ;;  %v1064_v14 = vrot.slane %v1057_v42, 1  ;;  %v1010_v57 = vadd.f32 %v6019_v34, %v990_v60  ;;  %v1175_v34 = vmul.f32 %v6087_v48, %v6094_v25 }
 0x1b1   :  { %v6026_v43 = vadd.f32 %v1998_v37, %v1964_v50  ;;  %v1173_v37 = vmul.f32 %v5877_v10, %v6094_v25 }
 0x1b2   :  { %v1038_v49 = vadd.f32 %v6022_v18, %v1010_v57  ;;  %v1065_v40 = vsel %vm135_vm0, %v1062_v6, %v1064_v14  ;;  %v1182_v59 = vrot.slane %v1175_v34, 2 }
 0x1b3   :  { %v2083_v62 = vpop.permute.xlu1 %2082  ;;  %v1179_v16 = vrot.slane %v1173_v37, 2 }
 0x1b4   :  { %v6028_v35 = vadd.f32 %v2083_v62, %v2050_v5  ;;  %v6030_v56 = vpop.permute.xlu0 %1017  ;;  %v1069_v26 = vadd.f32 %v1065_v40, %v1038_v49  ;;  %v1183_v14 = vsel %vm254_vm1, %v1180_v21, %v1182_v59  ;;  %v994_v49 = vmul.f32 %v6073_v24, %v6115_v54 }
 0x1b5   :  { %v1181_v42 = vsel %vm254_vm1, %v1179_v16, %v1180_v21 }
 0x1b7   :  { %v2085_v32 = vpop.permute.xlu1 %2084 }
 0x1b8   :  { %v6038_v45 = vadd.f32 %v2085_v32, %v2051_v53  ;;  %v6040_v15 = vpop.permute.xlu0 %1019  ;;  %v1063_v53 = vsel %vm135_vm0, %v1061_v20, %v1062_v6  ;;  %v6118_v20 = vstv %s3347_s0 }
 0x1b9   :  { %v1068_v32 = vadd.f32 %v1063_v53, %v1037_v36 }
 0x1bb   :  { %v1101_v58 = vpop.permute.xlu1 %1100 }
 0x1bc   :  { %v6043_v7 = vpop.permute.xlu0 %1045 }
 0x1bf   :  { %v6048_v44 = vpop.permute.xlu1 %1047 }
 0x1c0   :  { %v2064_v11 = vpop.permute.xlu0 %2063 }
 0x1c1   :  { %v6050_v4 = vadd.f32 %v2064_v11, %v2031_v46  ;;  %v1106_v46 = vadd.f32 %v1101_v58, %v1068_v32  ;;  %v993_v58 = vmul.f32 %v5877_v10, %v6115_v54  ;;  %v1074_v32 = vmul.f32 %v6087_v48, %v6118_v20 }
 0x1c3   :  { %v6052_v13 = vpop.permute.xlu1 %2065 }
 0x1c4   :  { %v1103_v52 = vpop.permute.xlu0 %1102 }
 0x1c5   :  { %v1107_v18 = vadd.f32 %v1103_v52, %v1069_v26  ;;  %v1073_v52 = vmul.f32 %v6073_v24, %v6118_v20 }
 0x1c7   :  { %v6054_v27 = vpop.permute.xlu1 %2101  ;;  %v1079_v16 = vrot.slane %v1073_v52, 1 }
 0x1c8   :  { %v1143_v55 = vpop.permute.xlu0 %1142 }
 0x1c9   :  { %v1148_v9 = vadd.f32 %v1143_v55, %v1106_v46  ;;  %v1072_v55 = vmul.f32 %v5877_v10, %v6118_v20 }
 0x1cb   :  { %v1145_v63 = vpop.permute.xlu1 %1144  ;;  %v1186_v36 = vadd.f32 %v1181_v42, %v1148_v9  ;;  %v1078_v34 = vrot.slane %v1072_v55, 1  ;;  %v6137_v9 = vstv %s3353_s1  ;;  %v996_v42 = vadd.f32 %v994_v49, %v6008_v1 }
 0x1cc   :  { %v6056_v3 = vpop.permute.xlu0 %2125  ;;  %v1149_v30 = vadd.f32 %v1145_v63, %v1107_v18  ;;  %v995_v63 = vadd.f32 %v993_v58, %v6000_v39  ;;  %v2020_v39 = vmul.f32 %v5899_v28, %v5911_v33  ;;  %v1081_v58 = vrot.slane %v1074_v32, 1 }
 0x1cd   :  { %v1191_v28 = vmul.f32 %v6073_v24, %v6137_v9  ;;  %v1024_v33 = vadd.f32 %v6040_v15, %v996_v42  ;;  %v1192_v15 = vmul.f32 %v6087_v48, %v6137_v9 }
 0x1ce   :  { %v1187_v37 = vadd.f32 %v1183_v14, %v1149_v30  ;;  %v1023_v46 = vadd.f32 %v6030_v56, %v995_v63  ;;  %v1080_v56 = vsel %vm135_vm0, %v1078_v34, %v1079_v16  ;;  %v2027_v1 = vrot.slane %v2020_v39, 2 }
 0x1cf   :  { %v6062_v38 = vpop.permute.xlu1 %2127  ;;  %v1052_v55 = vadd.f32 %v6048_v44, %v1024_v33  ;;  %v6174_v44 = vld [vmem:[%s6340_s2 + $0xb0] sm:$0xff] }
 0x1d0   :  { %v6064_v51 = vpop.permute.xlu0 %2103  ;;  %v1051_v30 = vadd.f32 %v6043_v7, %v1023_v46  ;;  %v2028_v49 = vsel %vm254_vm1, %v2025_v8, %v2027_v1  ;;  %v2114_v32 = vmul.f32 %v6174_v44, %v6058_v17 }
 0x1d1   :  { %v2032_v42 = vadd.f32 %v2028_v49, %v6026_v43 }
 0x1d2   :  { %v1085_v52 = vadd.f32 %v1080_v56, %v1051_v30 }
 0x1d3   :  { %v6077_v0 = vpop.permute.xlu1 %2149 }
 0x1d4   :  { %v6081_v50 = vpop.permute.xlu0 %1121 }
 0x1d7   :  { %v6092_v31 = vpop.permute.xlu1 %2151 }
 0x1d8   :  { %v6097_v5 = vpop.permute.xlu0 %1123 }
 0x1db   :  { %v1219_v62 = vpop.permute.xlu1 %1218 }
 0x1dc   :  { %v6106_v19 = vpop.permute.xlu0 %1163  ;;  %v1224_v57 = vadd.f32 %v1219_v62, %v1186_v36  ;;  %v1190_v36 = vmul.f32 %v5877_v10, %v6137_v9  ;;  %v2171_v10 = vmul.f32 %v5763_v29, %v6060_v61 }
 0x1de   :  { %v1196_v24 = vrot.slane %v1190_v36, 2 }
 0x1df   :  { %v6111_v11 = vpop.permute.xlu1 %1165 }
 0x1e0   :  { %v6113_v22 = vpop.permute.xlu0 %2137 }
 0x1e3   :  { %v6120_v6 = vpop.permute.xlu1 %2139 }
 0x1e4   :  { %v1221_v60 = vpop.permute.xlu0 %1220 }
 0x1e5   :  { %v1225_v21 = vadd.f32 %v1221_v60, %v1187_v37  ;;  %v1197_v37 = vrot.slane %v1191_v28, 2 }
 0x1e7   :  { %v6129_v53 = vpop.permute.xlu1 %2161  ;;  %v1198_v46 = vsel %vm254_vm1, %v1196_v24, %v1197_v37 }
 0x1e8   :  { %v1261_v2 = vpop.permute.xlu0 %1260 }
 0x1e9   :  { %v1266_v40 = vadd.f32 %v1261_v2, %v1224_v57  ;;  %v1082_v57 = vsel %vm135_vm0, %v1079_v16, %v1081_v58  ;;  %v1127_v2 = vadd.f32 %v6081_v50, %v1085_v52  ;;  %v6183_v50 = vld [vmem:[%s6340_s2 + $0xa8] sm:$0xff] }
 0x1ea   :  { %v2113_v12 = vmul.f32 %v6183_v50, %v6058_v17  ;;  %v1086_v8 = vadd.f32 %v1082_v57, %v1052_v55  ;;  %v2169_v16 = vmul.f32 %v6183_v50, %v6060_v61  ;;  %v2117_v39 = vmul.f32 %v6183_v50, %v6115_v54 }
 0x1eb   :  { %v1289_v62 = vmax.f32 %v1266_v40, 0.0  ;;  %v1263_v26 = vpop.permute.xlu1 %1262  ;;  %v2170_v40 = vmul.f32 %v6174_v44, %v6060_v61  ;;  %v1169_v34 = vadd.f32 %v6106_v19, %v1127_v2  ;;  %v2116_v17 = vadd.f32 %v2114_v32, %v6038_v45 }
 0x1ec   :  { %v1267_v59 = vadd.f32 %v1263_v26, %v1225_v21  ;;  %v6141_v18 = vpop.permute.xlu0 %2210  ;;  %v2178_v21 = vrot.slane %v2171_v10, 1  ;;  %v1128_v26 = vadd.f32 %v6097_v5, %v1086_v8  ;;  %v2118_v19 = vmul.f32 %v6174_v44, %v6115_v54 }
 0x1ed   :  { %3494 = vmatprep.mubr.msk.f32.mxu0 %vm2404_vm6, %v1289_v62  ;;  %3510 = vmatprep.mubr.msk.f32.mxu1 %vm2404_vm6, %v1289_v62  ;;  %v1199_v62 = vrot.slane %v1192_v15, 2  ;;  %v2176_v30 = vrot.slane %v2170_v40, 1  ;;  %v2115_v61 = vadd.f32 %v2113_v12, %v6028_v35  ;;  %v1203_v36 = vadd.f32 %v1198_v46, %v1169_v34 }
 0x1ee   :  { %v1290_v60 = vmax.f32 %v1267_v59, 0.0  ;;  %v1170_v56 = vadd.f32 %v6111_v11, %v1128_v26  ;;  %v2070_v5 = vadd.f32 %v6052_v13, %v2032_v42  ;;  %v2132_v28 = vadd.f32 %v6062_v38, %v2116_v17 }
 0x1ef   :  { %v6153_v14 = vpop.permute.xlu1 %2212  ;;  %v2179_v33 = vsel %vm135_vm0, %v2176_v30, %v2178_v21  ;;  %v1200_v43 = vsel %vm254_vm1, %v1197_v37, %v1199_v62  ;;  %v2131_v45 = vadd.f32 %v6056_v3, %v2115_v61  ;;  %v2184_v54 = vmul.f32 %v6183_v50, %v6118_v20 }
 0x1f0   :  { %v6155_v7 = vpop.permute.xlu0 %2163  ;;  %3495 = vmatmul.mubr.msk.f32.vlgmr.msra.gmra.mxu0 %vm2404_vm6, %v1290_v60  ;;  %3511 = vmatmul.mubr.msk.f32.vlgmr.msra.gmra.mxu1 %vm2404_vm6, %v1290_v60  ;;  %v2175_v60 = vrot.slane %v2169_v16, 1  ;;  %v2185_v35 = vmul.f32 %v6174_v44, %v6118_v20  ;;  %v2108_v55 = vadd.f32 %v6064_v51, %v2070_v5  ;;  %v2156_v13 = vadd.f32 %v6092_v31, %v2132_v28 }
 0x1f1   :  { %v2186_v38 = vmul.f32 %v5763_v29, %v6118_v20  ;;  %v2277_v57 = vmul.f32 %v5763_v29, %v6094_v25  ;;  %v2107_v3 = vadd.f32 %v6054_v27, %v6050_v4  ;;  %v2155_v10 = vadd.f32 %v6077_v0, %v2131_v45 }
 0x1f2   :  { %v1204_v24 = vadd.f32 %v1200_v43, %v1170_v56  ;;  %v2177_v15 = vsel %vm135_vm0, %v2175_v60, %v2176_v30  ;;  %v2275_v51 = vmul.f32 %v6183_v50, %v6094_v25  ;;  %v2276_v31 = vmul.f32 %v6174_v44, %v6094_v25 }
 0x1f3   :  { %v6166_v63 = vpop.permute.xlu1 %2248  ;;  %v2190_v20 = vrot.slane %v2184_v54, 1  ;;  %v2120_v40 = vadd.f32 %v2118_v19, %v2108_v55  ;;  %v2193_v12 = vrot.slane %v2186_v38, 1  ;;  %v2284_v27 = vrot.slane %v2277_v57, 2 }
 0x1f4   :  { %v1240_v48 = vpop.permute.xlu0 %1239  ;;  %v2119_v0 = vadd.f32 %v2117_v39, %v2107_v3  ;;  %v2182_v8 = vadd.f32 %v2177_v15, %v2155_v10  ;;  %v2191_v34 = vrot.slane %v2185_v35, 1  ;;  %v2281_v46 = vrot.slane %v2275_v51, 2 }
 0x1f5   :  { %v1245_v1 = vadd.f32 %v1240_v48, %v1203_v36  ;;  %v2183_v48 = vadd.f32 %v2179_v33, %v2156_v13  ;;  %v2144_v21 = vadd.f32 %v6120_v6, %v2120_v40  ;;  %v2282_v62 = vrot.slane %v2276_v31, 2 }
 0x1f6   :  { %v2143_v26 = vadd.f32 %v6113_v22, %v2119_v0  ;;  %v2216_v42 = vadd.f32 %v6141_v18, %v2182_v8  ;;  %v2292_v22 = vmul.f32 %v5763_v29, %v6137_v9  ;;  %v2192_v18 = vsel %vm135_vm0, %v2190_v20, %v2191_v34 }
 0x1f7   :  { %v2251_v59 = vpop.permute.xlu1 %2250  ;;  %v2217_v25 = vadd.f32 %v6153_v14, %v2183_v48  ;;  %v2168_v39 = vadd.f32 %v6155_v7, %v2144_v21  ;;  %v2285_v56 = vsel %vm254_vm1, %v2282_v62, %v2284_v27  ;;  %v2283_v7 = vsel %vm254_vm1, %v2281_v46, %v2282_v62 }
 0x1f8   :  { %v1242_v58 = vpop.permute.xlu0 %1241  ;;  %v2167_v6 = vadd.f32 %v6129_v53, %v2143_v26  ;;  %v2254_v14 = vadd.f32 %v6166_v63, %v2216_v42  ;;  %v2290_v60 = vmul.f32 %v6183_v50, %v6137_v9  ;;  %v2299_v43 = vrot.slane %v2292_v22, 2 }
 0x1f9   :  { %v1246_v2 = vadd.f32 %v1242_v58, %v1204_v24  ;;  %v2255_v30 = vadd.f32 %v2251_v59, %v2217_v25  ;;  %v2194_v58 = vsel %vm135_vm0, %v2191_v34, %v2193_v12  ;;  %v2291_v59 = vmul.f32 %v6174_v44, %v6137_v9 }
 0x1fa   :  { %v2198_v36 = vadd.f32 %v2194_v58, %v2168_v39  ;;  %v2197_v28 = vadd.f32 %v2192_v18, %v2167_v6  ;;  %v2288_v33 = vadd.f32 %v2283_v7, %v2254_v14  ;;  %v2296_v54 = vrot.slane %v2290_v60, 2 }
 0x1fb   :  { %v2230_v11 = vpop.permute.xlu1 %2229  ;;  %v2289_v63 = vadd.f32 %v2285_v56, %v2255_v30  ;;  %v2297_v29 = vrot.slane %v2291_v59, 2  ;;  %v3677_v0 = vmov 0.0   ;;  %v6262_v18 = vadd.s32 16, %v5717_v41 }
 0x1fc   :  { %v1282_v52 = vpop.permute.xlu0 %1281  ;;  %v2235_v35 = vadd.f32 %v2230_v11, %v2197_v28  ;;  %v2650_v60 = vmul.u32 2, %v5733_v47  ;;  %vm2888_vm0 = vcmask 64512  }
 0x1fd   :  { %v1287_v37 = vadd.f32 %v1282_v52, %v1245_v1  ;;  %v2300_v9 = vsel %vm254_vm1, %v2297_v29, %v2299_v43  ;;  %v2298_v10 = vsel %vm254_vm1, %v2296_v54, %v2297_v29  ;;  %vm3011_vm1 = vcmask 1043456  }
 0x1fe   :  { %v2666_v28 = vadd.s32 1, %v2650_v60  ;;  %vm2654_vm10 = vcmp.eq.s32.totalorder %v5709_v23, %v2650_v60 }
 0x1ff   :  { %v1291_v49 = vmax.f32 %v1287_v37, 0.0  ;;  %v2232_v32 = vpop.permute.xlu1 %2231 }
 0x200   :  { %v1284_v4 = vpop.permute.xlu0 %1283  ;;  %v2236_v45 = vadd.f32 %v2232_v32, %v2198_v36  ;;  %v2651_v36 = vmul.u32 2, %v6262_v18  ;;  %vm2670_vm11 = vcmp.eq.s32.totalorder %v5709_v23, %v2666_v28 }
 0x201   :  { %v1288_v16 = vadd.f32 %v1284_v4, %v1246_v2  ;;  %3497 = vmatprep.mubr.msk.f32.mxu0 %vm2404_vm6, %v1291_v49  ;;  %3513 = vmatprep.mubr.msk.f32.mxu1 %vm2404_vm6, %v1291_v49  ;;  %v2649_v4 = vmul.u32 2, %v5717_v41 }
 0x202   :  { %v2667_v43 = vadd.s32 1, %v2651_v36  ;;  %vm2655_vm12 = vcmp.eq.s32.totalorder %v5709_v23, %v2651_v36  ;;  %v3225_v36 = vadd.s32 1, %v6262_v18 }
 0x203   :  { %v1292_v17 = vmax.f32 %v1288_v16, 0.0  ;;  %v2317_v19 = vpop.permute.xlu1 %2316  ;;  %v2665_v27 = vadd.s32 1, %v2649_v4  ;;  %vm2653_vm7 = vcmp.eq.s32.totalorder %v5709_v23, %v2649_v4 }
 0x204   :  { %v2268_v61 = vpop.permute.xlu0 %2267  ;;  %v2322_v55 = vadd.f32 %v2317_v19, %v2288_v33  ;;  %v3394_v8 = vsel %vm2653_vm7, 1.0, %v3677_v0  ;;  %vm2671_vm13 = vcmp.eq.s32.totalorder %v5709_v23, %v2667_v43  ;;  %v3229_v43 = vmul.u32 4, %v3225_v36 }
 0x205   :  { %3498 = vmatmul.mubr.msk.f32.gmra.mxu0 %vm2404_vm6, %v1292_v17  ;;  %3514 = vmatmul.mubr.msk.f32.gmra.mxu1 %vm2404_vm6, %v1292_v17  ;;  %v2273_v57 = vadd.f32 %v2268_v61, %v2235_v35  ;;  %vm2669_vm8 = vcmp.eq.s32.totalorder %v5709_v23, %v2665_v27  ;;  %v3395_v35 = vsel %vm2654_vm10, 1.0, %v3677_v0 }
 0x206   :  { %v3398_v34 = vsel %vm2669_vm8, 1.0, %v3677_v0  ;;  %vm3233_vm10 = vcmp.lt.s32.totalorder %v5709_v23, %v3229_v43 }
 0x207   :  { %v2319_v53 = vpop.permute.xlu1 %2318  ;;  %v2303_v31 = vadd.f32 %v2298_v10, %v2273_v57 }
 0x208   :  { %v2270_v5 = vpop.permute.xlu0 %2269  ;;  %v2323_v1 = vadd.f32 %v2319_v53, %v2289_v63  ;;  %v6266_v53 = vadd.s32 24, %v5717_v41 }
 0x209   :  { %v2274_v52 = vadd.f32 %v2270_v5, %v2236_v45 }
 0x20a   :  { %v2652_v33 = vmul.u32 2, %v6266_v53  ;;  %v3226_v28 = vadd.s32 1, %v6266_v53 }
 0x20b   :  { %v2357_v13 = vpop.permute.xlu1 %2356  ;;  %v2304_v15 = vadd.f32 %v2300_v9, %v2274_v52  ;;  %v3400_v52 = vsel %vm2671_vm13, 1.0, %v3677_v0 }
 0x20c   :  { %v2361_v38 = vadd.f32 %v2357_v13, %v2323_v1  ;;  %v2355_v44 = vpop.permute.xlu0 %2354  ;;  %v2668_v29 = vadd.s32 1, %v2652_v33  ;;  %v3396_v13 = vsel %vm2655_vm12, 1.0, %v3677_v0  ;;  %vm2656_vm14 = vcmp.eq.s32.totalorder %v5709_v23, %v2652_v33 }
 0x20d   :  { %v2360_v3 = vadd.f32 %v2355_v44, %v2322_v55  ;;  %v3399_v55 = vsel %vm2670_vm11, 1.0, %v3677_v0  ;;  %v3397_v44 = vsel %vm2656_vm14, 1.0, %v3677_v0  ;;  %v3217_v33 = vmul.u32 4, %v6262_v18 }
 0x20e   :  { %v2382_v50 = vmax.f32 %v2361_v38, 0.0  ;;  %vm2672_vm15 = vcmp.eq.s32.totalorder %v5709_v23, %v2668_v29  ;;  %v2880_v38 = vld [vmem:[%s6341_s3] sm:$0xff] }
 0x20f   :  { %v2381_v24 = vmax.f32 %v2360_v3, 0.0  ;;  %v2338_v37 = vpop.permute.xlu1 %2337  ;;  %v3401_v57 = vsel %vm2672_vm15, 1.0, %v3677_v0 }
 0x210   :  { %v2336_v51 = vpop.permute.xlu0 %2335  ;;  %v2342_v11 = vadd.f32 %v2338_v37, %v2304_v15 }
 0x211   :  { %3500 = vmatprep.mubr.msk.f32.mxu0 %vm2404_vm6, %v2381_v24  ;;  %3516 = vmatprep.mubr.msk.f32.mxu1 %vm2404_vm6, %v2381_v24  ;;  %v2341_v2 = vadd.f32 %v2336_v51, %v2303_v31 }
 0x212   :  { %3501 = vmatmul.mubr.msk.f32.gmra.mxu0 %vm2404_vm6, %v2382_v50  ;;  %3517 = vmatmul.mubr.msk.f32.gmra.mxu1 %vm2404_vm6, %v2382_v50 }
 0x213   :  { %v2376_v20 = vpop.permute.xlu1 %2375 }
 0x214   :  { %v2380_v49 = vadd.f32 %v2376_v20, %v2342_v11  ;;  %v2374_v32 = vpop.permute.xlu0 %2373 }
 0x215   :  { %v2379_v40 = vadd.f32 %v2374_v32, %v2341_v2  ;;  %v3410_v32 = vld [vmem:[%s6342_s4] ss:$0 sm:$0xff] }
 0x216   :  { %v2384_v48 = vmax.f32 %v2380_v49, 0.0  ;;  %v2990_v49 = vld [vmem:[%s6343_s5] sm:$0xf] }
 0x217   :  { %v2383_v12 = vmax.f32 %v2379_v40, 0.0 }
 0x219   :  { %3503 = vmatprep.mubr.msk.f32.mxu0 %vm2404_vm6, %v2383_v12  ;;  %3519 = vmatprep.mubr.msk.f32.mxu1 %vm2404_vm6, %v2383_v12 }
 0x21a   :  { %3504 = vmatmul.mubr.msk.f32.gmra.mxu0 %vm2404_vm6, %v2384_v48  ;;  %3520 = vmatmul.mubr.msk.f32.gmra.mxu1 %vm2404_vm6, %v2384_v48 }
 0x21b   :  { %3538 = vmatprep.mubr.msk.f32.mxu0 %vm2681_vm9, %v3394_v8  ;;  %3560 = vmatprep.mubr.msk.f32.mxu1 %vm2681_vm9, %v3398_v34 }
 0x2b0   :  { %v3496_v16 = vpop.f32.mrf.mxu0  ;;  %v3512_v21 = vpop.f32.mrf.mxu1 }
 0x2b1   :  { %v2640_v1 = vmax.f32 %v3496_v16, %v3512_v21 }
 0x2b2   :  { %v2495_v25 = vpop.f32.mrf.mxu0  ;;  %v2600_v46 = vpop.f32.mrf.mxu1 }
 0x2b3   :  { %v2639_v54 = vmax.f32 %v2495_v25, %v2600_v46 }
 0x2c5   :  { %v3499_v62 = vpop.f32.mrf.mxu0  ;;  %v3515_v26 = vpop.f32.mrf.mxu1 }
 0x2c6   :  { %v2642_v5 = vmax.f32 %v3499_v62, %v3515_v26  ;;  %v3104_v26 = vand.u32 3, %v5709_v23 }
 0x2c7   :  { %v2505_v42 = vpop.f32.mrf.mxu0  ;;  %v2610_v17 = vpop.f32.mrf.mxu1 }
 0x2c8   :  { %v2641_v45 = vmax.f32 %v2505_v42, %v2610_v17  ;;  %vm3112_vm3 = vcmp.eq.s32.totalorder %v3104_v26, %v5717_v41 }
 0x2c9   :  { %v3421_v42 = vsel %vm3112_vm3, 1.0, %v3677_v0 }
 0x2d2   :  { %v3502_v19 = vpop.f32.mrf.mxu0  ;;  %v3518_v39 = vpop.f32.mrf.mxu1 }
 0x2d3   :  { %v2644_v59 = vmax.f32 %v3502_v19, %v3518_v39  ;;  %v3415_v19 = vld [vmem:[%s6344_s6] ss:$0 sm:$0xff]  ;;  %s3678_s6 = smov [#allocation7]  }
 0x2d4   :  { %v2515_v30 = vpop.f32.mrf.mxu0  ;;  %v2620_v58 = vpop.f32.mrf.mxu1  ;;  %s3267_s18 = sshll.u32 %s3678_s6, 4  ;;  %s3268_s18 = int_to_ptr.vmem [resolvable:$true] %s3267_s18 }
 0x2d5   :  { %v2643_v63 = vmax.f32 %v2515_v30, %v2620_v58  ;;  %s3646_s21 = scalar_lea.vmem %s3268_s18, 16  ;;  %s3650_s22 = scalar_lea.vmem %s3268_s18, 32 }
 0x2d6   :  { %p3647_p10 = scmp.ne.s32.totalorder %s3268_s18, %s3646_s21  ;;  %p3651_p11 = scmp.lt.s32.totalorder %s3268_s18, %s3268_s18 }
 0x2d7   :  { %p3652_p12 = scmp.lt.s32.totalorder %s3650_s22, %s3646_s21 }
 0x2d9   :  { %p3653_p13 = por %p3652_p12, %p3651_p11 }
 0x2da   :  { %v3505_v61 = vpop.f32.mrf.mxu0  ;;  %v3521_v56 = vpop.f32.mrf.mxu1 }
 0x2db   :  { %v2646_v6 = vmax.f32 %v3505_v61, %v3521_v56  ;;  %p3654_p0 = pnand %p3653_p13, %p3647_p10 }
 0x2dc   :  { %v2525_v14 = vpop.f32.mrf.mxu0  ;;  %v2630_v22 = vpop.f32.mrf.mxu1 }
 0x2dd   :  { %v2645_v7 = vmax.f32 %v2525_v14, %v2630_v22  ;;  %3522 = vmatprep.subr.mxu0 %v2646_v6  ;;  %3544 = vmatprep.subr.mxu1 %v2646_v6  ;;  %v3223_v22 = vadd.s32 1, %v5717_v41 }
 0x2de   :  { %3523 = vmatpush3.msra.mxu0 %v2646_v6  ;;  %3545 = vmatpush3.msra.mxu1 %v2646_v6 }
 0x2df   :  { %3524 = vmatprep.subr.mxu0 %v2645_v7  ;;  %3546 = vmatprep.subr.mxu1 %v2645_v7  ;;  %v3227_v60 = vmul.u32 4, %v3223_v22 }
 0x2e0   :  { %3525 = vmatpush3.msra.mxu0 %v2645_v7  ;;  %3547 = vmatpush3.msra.mxu1 %v2645_v7  ;;  %v3224_v7 = vadd.s32 1, %v5733_v47 }
 0x2e1   :  { %3526 = vmatprep.subr.mxu0 %v2644_v59  ;;  %3548 = vmatprep.subr.mxu1 %v2644_v59  ;;  %vm3231_vm5 = vcmp.lt.s32.totalorder %v5709_v23, %v3227_v60 }
 0x2e2   :  { %3527 = vmatpush3.msra.mxu0 %v2644_v59  ;;  %3549 = vmatpush3.msra.mxu1 %v2644_v59  ;;  %v3215_v59 = vmul.u32 4, %v5717_v41  ;;  %v3218_v41 = vmul.u32 4, %v6266_v53 }
 0x2e3   :  { %3528 = vmatprep.subr.mxu0 %v2643_v63  ;;  %3550 = vmatprep.subr.mxu1 %v2643_v63 }
 0x2e4   :  { %3529 = vmatpush3.msra.mxu0 %v2643_v63  ;;  %3551 = vmatpush3.msra.mxu1 %v2643_v63  ;;  %v3216_v63 = vmul.u32 4, %v5733_v47  ;;  %vm3219_vm4 = vcmp.ge.s32.totalorder %v5709_v23, %v3215_v59  ;;  %vm3222_vm12 = vcmp.ge.s32.totalorder %v5709_v23, %v3218_v41 }
 0x2e5   :  { %3530 = vmatprep.subr.mxu0 %v2642_v5  ;;  %3552 = vmatprep.subr.mxu1 %v2642_v5  ;;  %vm3235_vm8 = vmand %vm3219_vm4, %vm3231_vm5 }
 0x2e6   :  { %3531 = vmatpush3.msra.mxu0 %v2642_v5  ;;  %3553 = vmatpush3.msra.mxu1 %v2642_v5  ;;  %v3228_v5 = vmul.u32 4, %v3224_v7  ;;  %vm3220_vm6 = vcmp.ge.s32.totalorder %v5709_v23, %v3216_v63 }
 0x2e7   :  { %3532 = vmatprep.subr.mxu0 %v2641_v45  ;;  %3554 = vmatprep.subr.mxu1 %v2641_v45 }
 0x2e8   :  { %3533 = vmatpush3.msra.mxu0 %v2641_v45  ;;  %3555 = vmatpush3.msra.mxu1 %v2641_v45  ;;  %vm3232_vm7 = vcmp.lt.s32.totalorder %v5709_v23, %v3228_v5  ;;  %v3230_v45 = vmul.u32 4, %v3226_v28 }
 0x2e9   :  { %3534 = vmatprep.subr.mxu0 %v2640_v1  ;;  %3556 = vmatprep.subr.mxu1 %v2640_v1  ;;  %vm3236_vm11 = vmand %vm3220_vm6, %vm3232_vm7 }
 0x2ea   :  { %3535 = vmatpush3.msra.mxu0 %v2640_v1  ;;  %3557 = vmatpush3.msra.mxu1 %v2640_v1  ;;  %v3427_v1 = vsel %vm3235_vm8, 1.0, %v3677_v0  ;;  %vm3234_vm13 = vcmp.lt.s32.totalorder %v5709_v23, %v3230_v45  ;;  %v3428_v18 = vsel %vm3236_vm11, 1.0, %v3677_v0 }
 0x2eb   :  { %3536 = vmatprep.subr.mxu0 %v2639_v54  ;;  %3558 = vmatprep.subr.mxu1 %v2639_v54  ;;  %vm3238_vm15 = vmand %vm3222_vm12, %vm3234_vm13 }
 0x2ec   :  { %3537 = vmatpush3.msra.mxu0 %v2639_v54  ;;  %3559 = vmatpush3.msra.mxu1 %v2639_v54 }
 0x2ed   :  { %3539 = vmatmul.mubr.msk.f32.vlgmr.msra.gmra.mxu0 %vm2681_vm9, %v3395_v35  ;;  %3561 = vmatmul.mubr.msk.f32.vlgmr.msra.gmra.mxu1 %vm2681_vm9, %v3399_v55 }
 0x2ee   :  { %3541 = vmatprep.mubr.msk.f32.mxu0 %vm2681_vm9, %v3396_v13  ;;  %3563 = vmatprep.mubr.msk.f32.mxu1 %vm2681_vm9, %v3400_v52  ;;  %v3430_v13 = vsel %vm3238_vm15, 1.0, %v3677_v0 }
 0x2ef   :  { %3566 = vmatprep.subr.mxu0 %v2880_v38  ;;  %3590 = vmatprep.subr.mxu1 %v2880_v38 }
 0x2f0   :  { %3567 = vmatpush3.msra.mxu0 %v2880_v38  ;;  %3591 = vmatpush3.msra.mxu1 %v2880_v38 }
 0x2f1   :  { %3542 = vmatmul.mubr.msk.f32.gmra.mxu0 %vm2681_vm9, %v3397_v44  ;;  %3564 = vmatmul.mubr.msk.f32.gmra.mxu1 %vm2681_vm9, %v3401_v57  ;;  %vm3221_vm9 = vcmp.ge.s32.totalorder %v5709_v23, %v3217_v33 }
 0x2f2   :  { %3574 = vmatprep.subr.msk.mxu1 %vm3011_vm1, %v2990_v49  ;;  %3582 = vmatprep.subr.msk.mxu0 %vm3011_vm1, %v3421_v42  ;;  %vm3237_vm14 = vmand %vm3221_vm9, %vm3233_vm10 }
 0x2f3   :  { %v3429_v35 = vsel %vm3237_vm14, 1.0, %v3677_v0 }
 0x3ad   :  { %v3540_v3 = vpop.f32.mrf.mxu0  ;;  %v3562_v9 = vpop.f32.mrf.mxu1 }
 0x3ae   :  { %v2877_v37 = vmax.f32 %v3540_v3, %v3562_v9 }
 0x3af   :  { %v2760_v50 = vpop.f32.mrf.mxu0  ;;  %v2857_v10 = vpop.f32.mrf.mxu1 }
 0x3b0   :  { %v2876_v24 = vmax.f32 %v2760_v50, %v2857_v10 }
 0x3b1   :  { %v3543_v15 = vpop.f32.mrf.mxu0  ;;  %v3565_v51 = vpop.f32.mrf.mxu1 }
 0x3b2   :  { %3568 = vmatprep.mubr.msk.f32.mxu0 %vm2888_vm0, %v2876_v24  ;;  %v2879_v20 = vmax.f32 %v3543_v15, %v3565_v51 }
 0x3b3   :  { %v2770_v31 = vpop.f32.mrf.mxu0  ;;  %v2867_v11 = vpop.f32.mrf.mxu1  ;;  %3569 = vmatmul.mubr.msk.f32.vlgmr.msra.gmra.mxu0 %vm2888_vm0, %v2877_v37 }
 0x3b4   :  { %v2878_v2 = vmax.f32 %v2770_v31, %v2867_v11  ;;  %3583 = vmatpush3.msk.msra.mxu0 %vm3011_vm1, %v3421_v42 }
 0x3b6   :  { %3571 = vmatprep.mubr.msk.f32.mxu1 %vm2888_vm0, %v2878_v2 }
 0x3b7   :  { %3572 = vmatmul.mubr.msk.f32.vlgmr.msra.gmra.mxu1 %vm2888_vm0, %v2879_v20 }
 0x3b8   :  { %3575 = vmatpush3.msk.msra.mxu1 %vm3011_vm1, %v2990_v49 }
 0x473   :  { %v3570_v40 = vpop.f32.mrf.mxu0 }
 0x474   :  { %v2973_v48 = vadd.f32 %v3570_v40, %v3410_v32 }
 0x475   :  { %v2967_v12 = vpop.f32.mrf.mxu0 }
 0x476   :  { %v2968_v4 = vadd.f32 %v3410_v32, %v2967_v12  ;;  %v2987_v34 = vmax.f32 %v2973_v48, 0.0 }
 0x477   :  { %v3573_v27 = vpop.f32.mrf.mxu1 }
 0x478   :  { %v2986_v8 = vmax.f32 %v2968_v4, 0.0  ;;  %v2983_v16 = vadd.f32 %v3573_v27, %v3410_v32 }
 0x479   :  { %v2977_v21 = vpop.f32.mrf.mxu1 }
 0x47a   :  { %v2978_v25 = vadd.f32 %v3410_v32, %v2977_v21  ;;  %3576 = vmatprep.mubr.msk.f32.mxu1 %vm2998_vm2, %v2986_v8  ;;  %v2989_v62 = vmax.f32 %v2983_v16, 0.0 }
 0x47b   :  { %3577 = vmatmul.mubr.msk.f32.vlgmr.msra.gmra.mxu1 %vm2998_vm2, %v2987_v34 }
 0x47c   :  { %v2988_v46 = vmax.f32 %v2978_v25, 0.0 }
 0x47e   :  { %3579 = vmatprep.mubr.msk.f32.mxu1 %vm2998_vm2, %v2988_v46 }
 0x47f   :  { %3580 = vmatmul.mubr.msk.f32.gmra.mxu1 %vm2998_vm2, %v2989_v62 }
 0x53b   :  { %v3578_v17 = vpop.f32.mrf.mxu1 }
 0x53c   :  { %v3087_v58 = vadd.f32 %v3578_v17, %v3415_v19 }
 0x53d   :  { %v3081_v39 = vpop.f32.mrf.mxu1 }
 0x53e   :  { %v3082_v30 = vadd.f32 %v3415_v19, %v3081_v39 }
 0x53f   :  { %v3581_v61 = vpop.f32.mrf.mxu1 }
 0x540   :  { %3584 = vmatprep.mubr.msk.f32.mxu0 %vm2998_vm2, %v3082_v30  ;;  %v3097_v14 = vadd.f32 %v3581_v61, %v3415_v19 }
 0x541   :  { %v3091_v56 = vpop.f32.mrf.mxu1  ;;  %3585 = vmatmul.mubr.msk.f32.vlgmr.msra.gmra.mxu0 %vm2998_vm2, %v3087_v58 }
 0x542   :  { %v3092_v6 = vadd.f32 %v3415_v19, %v3091_v56 }
 0x544   :  { %3587 = vmatprep.mubr.msk.f32.mxu0 %vm2998_vm2, %v3092_v6 }
 0x545   :  { %3588 = vmatmul.mubr.msk.f32.gmra.mxu0 %vm2998_vm2, %v3097_v14 }
 0x601   :  { %v3586_v47 = vpop.f32.mrf.mxu0 }
 0x602   :  { %v3248_v55 = vmul.f32 %v3586_v47, %v3428_v18 }
 0x603   :  { %v3196_v29 = vpop.f32.mrf.mxu0 }
 0x604   :  { %v3247_v54 = vmul.f32 %v3427_v1, %v3196_v29 }
 0x605   :  { %v3589_v53 = vpop.f32.mrf.mxu0 }
 0x606   :  { %v3251_v38 = vadd.f32 %v3248_v55, %v3247_v54  ;;  %v3250_v57 = vmul.f32 %v3589_v53, %v3430_v13 }
 0x607   :  { %v3206_v52 = vpop.f32.mrf.mxu0 }
 0x608   :  { %v3249_v44 = vmul.f32 %v3429_v35, %v3206_v52 }
 0x60a   :  { %v3252_v3 = vadd.f32 %v3251_v38, %v3249_v44 }
 0x60c   :  { %v3253_v9 = vadd.f32 %v3252_v3, %v3250_v57 }
 0x60e   :  { %v3254_v50 = vrot.slane %v3253_v9, 4 }
 0x610   :  { %v3255_v23 = vadd.f32 %v3254_v50, %v3253_v9 }
 0x612   :  { %v3256_v10 = vrot.slane %v3255_v23, 2 }
 0x614   :  { %v3257_v24 = vadd.f32 %v3256_v10, %v3255_v23 }
 0x616   :  { %v3258_v37 = vrot.slane %v3257_v24, 1 }
 0x618   :  { %v3259_v15 = vadd.f32 %v3258_v37, %v3257_v24 }
 0x61a   :  { %3260 = vst [vmem:[#allocation7] sm:$0x1] %v3259_v15 }
 0x61b   :  { %3657 = shalt.err (!%p3654_p0)
}
 0x61c   :  { %3270 = dma.vmem_to_hbm [thread:$0]  %s3268_s18, 16, %s6345_s7, [#allocation3]  }
 0x61d   :  { %3670 = dma.done.wait [#allocation3], 16  }
 0x61e   :  { %3671 = vsyncadd [#allocation3], 4294967280 }
 0x61f   :  { %3274 = vsyncpa [#allocation3], 1 }
 0x620   :  { %3275 = vsyncpa [#allocation4], 1 }
 0x621   :  { %3276 = vsyncpa [#allocation6], 1 }

</bundles_post_ra>
